<compile_context>
chip_gen: v5e
topology: v5e:2x2
jax: 0.10.0
libtpu: 0.0.40
codegen_flags: <defaults>
</compile_context>

<pallas_src>
import functools

import numpy as np
import jax
import jax.numpy as jnp
from jax import lax
from jax.experimental import pallas as pl
from jax.experimental.pallas import tpu as pltpu


def _round_up(x, m):
    return ((x + m - 1) // m) * m


# ------------------------------ fused kernel --------------------------------

def diffmbir_fused_kernel(y_ref, cmat_ref, fbp_ref, mt_ref, o_ref, *,
                          bias, rho, ad_valid, cg_iters):
    """Fused DiffMBIR forward for one batch block.

    y_ref:    VMEM (BB, CIN_PAD)      f32   flattened cat([y1, y2], 1), zero-padded
    cmat_ref: VMEM (CIN_PAD, AD_PAD)  bf16  exact zero-padded 3x3 conv as a matrix
    fbp_ref:  VMEM (AD_PAD, N)        bf16  FBP operator (row form, zero-padded rows)
    mt_ref:   VMEM (N, N)             bf16  linearized fbp(create_sino(.)) (row form)
    o_ref:    VMEM (BB, N)            f32   lane-dense output (N = n*n = 256)
    bias, rho: compile-time scalars (model constants baked at init time).
    ad_valid:  number of valid sinogram columns (288) inside AD_PAD (384).
    """

    def rescale(x, valid_cols=None):
        # PyTorch `rescale`: per-sample min-max normalize to [0, 1].
        # TODO(synk): reference `rescale` source unavailable; per-image
        # normalization assumed (axis=-1).
        if valid_cols is not None:
            col = lax.broadcasted_iota(jnp.int32, x.shape, 1)
            m = col < valid_cols
            mn = jnp.min(jnp.where(m, x, jnp.inf), axis=-1, keepdims=True)
            mx = jnp.max(jnp.where(m, x, -jnp.inf), axis=-1, keepdims=True)
        else:
            mn = jnp.min(x, axis=-1, keepdims=True)
            mx = jnp.max(x, axis=-1, keepdims=True)
        inv = pl.reciprocal(mx - mn + 1e-12, approx=True)   # EUP slot
        return (x - mn) * inv

    # --- sino = rescale(unet(cat([y1, y2], 1))): 3x3 conv as one MXU dot ----
    sino = jnp.dot(y_ref[...].astype(jnp.bfloat16), cmat_ref[...],
                   preferred_element_type=jnp.float32) + bias      # (BB, AD_PAD)
    sino = rescale(sino, valid_cols=ad_valid)

    # --- diffpir prologue: rec = rescale(physics.fbp(sino)) -----------------
    # (padded sino columns hit zero rows of fbp_ref, so they contribute 0.)
    rec = rescale(jnp.dot(sino.astype(jnp.bfloat16), fbp_ref[...],
                          preferred_element_type=jnp.float32))     # (BB, N)

    # TODO(synk): pretrained diffusion denoiser (ckpt_1100000.pth, EMA) and
    # the stochastic DDPM sampling loop cannot be reproduced; the FBP
    # reconstruction stands in for the denoised estimate z.
    # data_consistency.forward: rhs = rec + rho*z, with z == rec here.
    rhs = (1.0 + rho) * rec

    mt = mt_ref[...]

    def AtA(p):
        # myAtA.forward: fbp(create_sino(im)) + rho*im, linearized as p @ Mt.
        # rho*p kept as an exact f32 epilogue (not folded into bf16 mt).
        return jnp.dot(p.astype(jnp.bfloat16), mt,
                       preferred_element_type=jnp.float32) + rho * p

    # --- myCG: 10 unrolled iterations, per-sample where-masked step sizes ---
    # x0 = zeros to match the PyTorch myCG reference (no warm start; a warm
    # start at rec would be a parity deviation).
    x = jnp.zeros_like(rhs)
    r = rhs
    p = rhs
    rtr = jnp.sum(r * r, axis=-1, keepdims=True)                   # (BB, 1)

    def cg_body(_, carry):
        x, r, p, rtr = carry
        live = rtr > 1e-10                                          # (BB, 1)
        ap = AtA(p)
        aaa = jnp.sum(p * ap, axis=-1, keepdims=True)
        alpha = jnp.where(live, rtr / (aaa + 1e-30), 0.0)
        x = x + alpha * p
        r = r - alpha * ap
        rtr_new = jnp.sum(r * r, axis=-1, keepdims=True)
        beta = jnp.where(live, rtr_new / (rtr + 1e-30), 0.0)
        p = r + beta * p
        rtr = jnp.where(live, rtr_new, rtr)
        return x, r, p, rtr

    x, _, _, _ = lax.fori_loop(0, cg_iters, cg_body, (x, r, p, rtr),
                               unroll=True)

    # `x0 = x0*2 - 1` followed by `x_0 = x_t/2 + 0.5` cancel exactly.
    # TODO(synk): the DDPM re-noising / multi-step loop between those two
    # statements is the unreproducible denoiser stage noted above.
    o_ref[...] = x


# --------------------------- operator construction --------------------------

def _conv3x3_as_matrix(w, A, D):
    """Exact dense (Cin*A*D, A*D) operator for a zero-padded 3x3 conv.

    sino_row = x_row @ C with x_row the row-major flattened (Cin, A, D) input
    (im2col-of-weights / Toeplitz form so the conv runs on the MXU with a
    lane-dense output instead of 18 unaligned slice taps).
    """
    Cin = w.shape[0]
    C = np.zeros((Cin * A * D, A * D), np.float32)
    for ci in range(Cin):
        for kh in range(3):
            for kw in range(3):
                wv = float(w[ci, kh, kw])
                for oh in range(A):
                    ih = oh + kh - 1
                    if ih < 0 or ih >= A:
                        continue
                    for ow in range(D):
                        iw = ow + kw - 1
                        if iw < 0 or iw >= D:
                            continue
                        C[ci * A * D + ih * D + iw, oh * D + ow] += wv
    return C


def make_rho(T=100, beta_start=1e-4, beta_end=2e-2, lambda_=1.0,
             sigma=0.08, iter_num=20):
    betas = np.linspace(beta_start, beta_end, T, dtype=np.float64)
    alphas = 1.0 - betas
    alphas_cumprod = np.cumprod(alphas)
    sqrt_ac = np.sqrt(alphas_cumprod)
    sqrt_1m = np.sqrt(1.0 - alphas_cumprod)
    reduced = sqrt_1m / sqrt_ac
    sigma_ks = sqrt_1m / sqrt_ac                        # pred_xstart / DiffPIR
    rhos = lambda_ * sigma ** 2 / sigma_ks ** 2
    skip = T // iter_num
    seq = [i * skip for i in range(iter_num)]
    if skip > 1:
        seq.append(T - 1)
    sigmas = reduced[::-1]                              # sigmas[i] = reduced[T-1-i]
    curr_sigma = sigmas[seq[0]]
    t_i = int(np.argmin(np.abs(reduced - curr_sigma)))  # utils_model.find_nearest
    return float(rhos[t_i])


def init_params(key, n=16, angles=12):
    det = int(n * 1.5)
    A, D, Cin = angles, det, 2
    AD = A * D                                      # 288
    CIN = Cin * AD                                  # 576
    AD_PAD = _round_up(AD, 128)                     # 384 (3 x 128)
    CIN_PAD = _round_up(CIN, 128)                   # 640 (5 x 128)
    N = n * n                                       # 256 (already 128-aligned)

    k1, k2 = jax.random.split(key, 2)

    # TODO(synk): full UNet(in=2, out=1, compact=3, residual=False) is not
    # defined in the reference source; a single 3x3 conv (2 -> 1, zero pad)
    # with deterministic weights stands in for it.
    w = np.asarray(jax.random.normal(k1, (Cin, 3, 3), jnp.float32)) / np.sqrt(Cin * 9.0)
    conv_mat = _conv3x3_as_matrix(w, A, D)                          # (576, 288)
    conv_mat = np.pad(conv_mat, ((0, CIN_PAD - CIN), (0, AD_PAD - AD)))
    bias = 0.0

    # TODO(synk): ASTRA Radon / FBP operators have no Pallas equivalent; use a
    # deterministic dense projection matrix P and FBP ~ scaled adjoint P^T.
    P = np.asarray(jax.random.normal(k2, (AD, N), jnp.float32)) / np.sqrt(N)
    F = P.T / float(angles)                 # (N, AD)   FBP operator
    fbp_t = np.pad(F.T, ((0, AD_PAD - AD), (0, 0)))     # (AD_PAD, N)
    M = F @ P                               # (N, N)    linearized fbp(create_sino(.))
    mt = M.T

    rho = make_rho()

    # bf16 for MXU operands (bf16-native MXU on all generations); all
    # elementwise/accumulation math stays f32 in-kernel.
    return dict(
        conv_mat=jnp.asarray(conv_mat, jnp.bfloat16),
        bias=bias,
        fbp_t=jnp.asarray(fbp_t, jnp.bfloat16),
        mt=jnp.asarray(mt, jnp.bfloat16),
        rho=rho,
        ad_valid=AD,
        n=n,
    )


# ------------------------------ full forward --------------------------------

def diffmbir_forward(y1, y2, params, batch_block=8, cg_iters=10):
    conv_mat = params["conv_mat"]
    fbp_t = params["fbp_t"]
    mt = params["mt"]
    n = params["n"]
    n2 = n * n
    cin_pad = conv_mat.shape[0]
    ad_pad = conv_mat.shape[1]

    B = y1.shape[0]
    # y = cat([y1, y2], dim=1), flattened row-major (lane-dense) per sample,
    # zero-padded to the 128-aligned conv-input width and to a sublane-full
    # batch block (>= 8 rows of the MXU instead of 2).
    y = jnp.concatenate([y1, y2], axis=1).reshape(B, -1).astype(jnp.float32)
    b_pad = max(batch_block, _round_up(B, batch_block))
    y = jnp.pad(y, ((0, b_pad - B), (0, cin_pad - y.shape[1])))
    nb = b_pad // batch_block

    kernel = functools.partial(
        diffmbir_fused_kernel,
        bias=float(params["bias"]),
        rho=float(params["rho"]),
        ad_valid=int(params["ad_valid"]),
        cg_iters=cg_iters,
    )

    # VMEM budget: flat operator bytes (shared tiles, re-fetched per batch
    # block at negligible cost) + double-buffered per-block y/output bytes +
    # headroom for Mosaic internal scratch.  At n=16 this is ~1 MiB; see the
    # header comment for the v7x (64 MiB) cliff as n grows toward 64+.
    op_bytes = sum(int(np.prod(a.shape)) * a.dtype.itemsize
                   for a in (conv_mat, fbp_t, mt))
    blk_bytes = batch_block * (cin_pad + n2) * 4
    vmem_limit = int(op_bytes + 2 * blk_bytes + (8 << 20))

    out = pl.pallas_call(
        kernel,
        out_shape=jax.ShapeDtypeStruct((b_pad, n2), jnp.float32),
        grid=(nb,),
        in_specs=[
            pl.BlockSpec((batch_block, cin_pad), lambda b: (b, 0)),
            pl.BlockSpec((cin_pad, ad_pad), lambda b: (0, 0)),
            pl.BlockSpec((ad_pad, n2), lambda b: (0, 0)),
            pl.BlockSpec((n2, n2), lambda b: (0, 0)),
        ],
        out_specs=pl.BlockSpec((batch_block, n2), lambda b: (b, 0)),
        compiler_params=pltpu.CompilerParams(
            dimension_semantics=("parallel",),     # v7x: split batch over TCs
            vmem_limit_bytes=vmem_limit),
    )(y, conv_mat, fbp_t, mt)

    return out[:B].reshape(B, 1, n, n)


if __name__ == "__main__":
    n, angles = 16, 12
    det = int(n * 1.5)
    key = jax.random.PRNGKey(0)
    kp, k1, k2 = jax.random.split(key, 3)
    params = init_params(kp, n=n, angles=angles)
    y1 = jax.random.normal(k1, (2, 1, angles, det), jnp.float32)
    y2 = jax.random.normal(k2, (2, 1, angles, det), jnp.float32)

    m = diffmbir_forward(y1, y2, params)
    m = jax.block_until_ready(m)
    assert m.shape == (2, 1, n, n), m.shape
    assert bool(jnp.all(jnp.isfinite(m)))
    print("KERNEL_OK")
</pallas_src>

<mosaic_0001>
module attributes {stable_mosaic.version = 11 : i64} {
  func.func @diffmbir_fused_kernel(%arg0: i32, %arg1: memref<8x640xf32, #tpu.memory_space<vmem>>, %arg2: memref<640x384xbf16, #tpu.memory_space<vmem>>, %arg3: memref<384x256xbf16, #tpu.memory_space<vmem>>, %arg4: memref<256x256xbf16, #tpu.memory_space<vmem>>, %arg5: memref<8x256xf32, #tpu.memory_space<vmem>>) attributes {dimension_semantics = [#tpu.dimension_semantics<parallel>], iteration_bounds = array<i64: 1>, scalar_prefetch = 0 : i64, scratch_operands = 0 : i64, tpu.core_type = #tpu.core_type<tc>, window_params = [{transform_indices = @transform_0, window_bounds = array<i64: 8, 640>}, {pipeline_mode = #tpu.pipeline_mode<synchronous>, transform_indices = @transform_1, window_bounds = array<i64: 640, 384>}, {pipeline_mode = #tpu.pipeline_mode<synchronous>, transform_indices = @transform_2, window_bounds = array<i64: 384, 256>}, {pipeline_mode = #tpu.pipeline_mode<synchronous>, transform_indices = @transform_3, window_bounds = array<i64: 256, 256>}, {transform_indices = @transform_4, window_bounds = array<i64: 8, 256>}]} {
    %c0 = arith.constant 0 : index
    %c0_0 = arith.constant 0 : index
    %0 = vector.load %arg1[%c0, %c0_0] : memref<8x640xf32, #tpu.memory_space<vmem>>, vector<8x640xf32>
    %1 = arith.truncf %0 : vector<8x640xf32> to vector<8x640xbf16>
    %c0_1 = arith.constant 0 : index
    %c0_2 = arith.constant 0 : index
    %2 = vector.load %arg2[%c0_1, %c0_2] : memref<640x384xbf16, #tpu.memory_space<vmem>>, vector<640x384xbf16>
    %cst = arith.constant dense<0.000000e+00> : vector<8x384xf32>
    %3 = tpu.matmul %1, %2, %cst {dimension_numbers = #tpu.dot_dimension_numbers<[1], [0], [0], [1], [0, 0, 1, 1], [], []>} : vector<8x640xbf16>, vector<640x384xbf16>, vector<8x384xf32> -> vector<8x384xf32>
    %cst_3 = arith.constant 0.000000e+00 : f32
    %4 = vector.broadcast %cst_3 : f32 to vector<8x384xf32>
    %5 = arith.addf %3, %4 : vector<8x384xf32>
    %6 = tpu.iota {dimensions = array<i32: 1>} : vector<8x384xi32>
    %c288_i32 = arith.constant 288 : i32
    %7 = vector.broadcast %c288_i32 : i32 to vector<8x384xi32>
    %8 = arith.cmpi slt, %6, %7 : vector<8x384xi32>
    %cst_4 = arith.constant 0x7F800000 : f32
    %9 = vector.broadcast %cst_4 : f32 to vector<8x384xf32>
    %10 = arith.select %8, %5, %9 : vector<8x384xi1>, vector<8x384xf32>
    %cst_5 = arith.constant dense<0x7F800000> : vector<8xf32>
    %11 = vector.multi_reduction <minimumf>, %10, %cst_5 [1] : vector<8x384xf32> to vector<8xf32>
    %12 = vector.shape_cast %11 : vector<8xf32> to vector<8x1xf32>
    %cst_6 = arith.constant 0xFF800000 : f32
    %13 = vector.broadcast %cst_6 : f32 to vector<8x384xf32>
    %14 = arith.select %8, %5, %13 : vector<8x384xi1>, vector<8x384xf32>
    %cst_7 = arith.constant dense<0xFF800000> : vector<8xf32>
    %15 = vector.multi_reduction <maximumf>, %14, %cst_7 [1] : vector<8x384xf32> to vector<8xf32>
    %16 = vector.shape_cast %15 : vector<8xf32> to vector<8x1xf32>
    %17 = arith.subf %16, %12 : vector<8x1xf32>
    %cst_8 = arith.constant 9.99999996E-13 : f32
    %18 = vector.broadcast %cst_8 : f32 to vector<8x1xf32>
    %19 = arith.addf %17, %18 : vector<8x1xf32>
    %20 = tpu.reciprocal %19 {approx = true} : vector<8x1xf32> -> vector<8x1xf32>
    %21 = vector.broadcast %12 : vector<8x1xf32> to vector<8x384xf32>
    %22 = arith.subf %5, %21 : vector<8x384xf32>
    %23 = vector.broadcast %20 : vector<8x1xf32> to vector<8x384xf32>
    %24 = arith.mulf %22, %23 : vector<8x384xf32>
    %25 = arith.truncf %24 : vector<8x384xf32> to vector<8x384xbf16>
    %c0_9 = arith.constant 0 : index
    %c0_10 = arith.constant 0 : index
    %26 = vector.load %arg3[%c0_9, %c0_10] : memref<384x256xbf16, #tpu.memory_space<vmem>>, vector<384x256xbf16>
    %cst_11 = arith.constant dense<0.000000e+00> : vector<8x256xf32>
    %27 = tpu.matmul %25, %26, %cst_11 {dimension_numbers = #tpu.dot_dimension_numbers<[1], [0], [0], [1], [0, 0, 1, 1], [], []>} : vector<8x384xbf16>, vector<384x256xbf16>, vector<8x256xf32> -> vector<8x256xf32>
    %cst_12 = arith.constant dense<0x7F800000> : vector<8xf32>
    %28 = vector.multi_reduction <minimumf>, %27, %cst_12 [1] : vector<8x256xf32> to vector<8xf32>
    %29 = vector.shape_cast %28 : vector<8xf32> to vector<8x1xf32>
    %cst_13 = arith.constant dense<0xFF800000> : vector<8xf32>
    %30 = vector.multi_reduction <maximumf>, %27, %cst_13 [1] : vector<8x256xf32> to vector<8xf32>
    %31 = vector.shape_cast %30 : vector<8xf32> to vector<8x1xf32>
    %32 = arith.subf %31, %29 : vector<8x1xf32>
    %cst_14 = arith.constant 9.99999996E-13 : f32
    %33 = vector.broadcast %cst_14 : f32 to vector<8x1xf32>
    %34 = arith.addf %32, %33 : vector<8x1xf32>
    %35 = tpu.reciprocal %34 {approx = true} : vector<8x1xf32> -> vector<8x1xf32>
    %36 = vector.broadcast %29 : vector<8x1xf32> to vector<8x256xf32>
    %37 = arith.subf %27, %36 : vector<8x256xf32>
    %38 = vector.broadcast %35 : vector<8x1xf32> to vector<8x256xf32>
    %39 = arith.mulf %37, %38 : vector<8x256xf32>
    %cst_15 = arith.constant 1.00365603 : f32
    %40 = vector.broadcast %cst_15 : f32 to vector<8x256xf32>
    %41 = arith.mulf %40, %39 : vector<8x256xf32>
    %c0_16 = arith.constant 0 : index
    %c0_17 = arith.constant 0 : index
    %42 = vector.load %arg4[%c0_16, %c0_17] : memref<256x256xbf16, #tpu.memory_space<vmem>>, vector<256x256xbf16>
    %cst_18 = arith.constant 0.000000e+00 : f32
    %43 = vector.broadcast %cst_18 : f32 to vector<8x256xf32>
    %44 = arith.mulf %41, %41 : vector<8x256xf32>
    %cst_19 = arith.constant dense<0.000000e+00> : vector<8xf32>
    %45 = vector.multi_reduction <add>, %44, %cst_19 [1] : vector<8x256xf32> to vector<8xf32>
    %46 = vector.shape_cast %45 : vector<8xf32> to vector<8x1xf32>
    %c0_i32 = arith.constant 0 : i32
    %cst_20 = arith.constant 1.000000e-10 : f32
    %47 = vector.broadcast %cst_20 : f32 to vector<8x1xf32>
    %48 = arith.cmpf ogt, %46, %47 : vector<8x1xf32>
    %49 = arith.truncf %41 : vector<8x256xf32> to vector<8x256xbf16>
    %cst_21 = arith.constant dense<0.000000e+00> : vector<8x256xf32>
    %50 = tpu.matmul %49, %42, %cst_21 {dimension_numbers = #tpu.dot_dimension_numbers<[1], [0], [0], [1], [0, 0, 1, 1], [], []>} : vector<8x256xbf16>, vector<256x256xbf16>, vector<8x256xf32> -> vector<8x256xf32>
    %cst_22 = arith.constant 0.00365598756 : f32
    %51 = vector.broadcast %cst_22 : f32 to vector<8x256xf32>
    %52 = arith.mulf %51, %41 : vector<8x256xf32>
    %53 = arith.addf %50, %52 : vector<8x256xf32>
    %54 = arith.mulf %41, %53 : vector<8x256xf32>
    %cst_23 = arith.constant dense<0.000000e+00> : vector<8xf32>
    %55 = vector.multi_reduction <add>, %54, %cst_23 [1] : vector<8x256xf32> to vector<8xf32>
    %56 = vector.shape_cast %55 : vector<8xf32> to vector<8x1xf32>
    %cst_24 = arith.constant 1.000000e-30 : f32
    %57 = vector.broadcast %cst_24 : f32 to vector<8x1xf32>
    %58 = arith.addf %56, %57 : vector<8x1xf32>
    %59 = arith.divf %46, %58 : vector<8x1xf32>
    %cst_25 = arith.constant 0.000000e+00 : f32
    %60 = vector.broadcast %cst_25 : f32 to vector<8x1xf32>
    %61 = arith.select %48, %59, %60 : vector<8x1xi1>, vector<8x1xf32>
    %62 = vector.broadcast %61 : vector<8x1xf32> to vector<8x256xf32>
    %63 = arith.mulf %62, %41 : vector<8x256xf32>
    %64 = arith.addf %43, %63 : vector<8x256xf32>
    %65 = vector.broadcast %61 : vector<8x1xf32> to vector<8x256xf32>
    %66 = arith.mulf %65, %53 : vector<8x256xf32>
    %67 = arith.subf %41, %66 : vector<8x256xf32>
    %68 = arith.mulf %67, %67 : vector<8x256xf32>
    %cst_26 = arith.constant dense<0.000000e+00> : vector<8xf32>
    %69 = vector.multi_reduction <add>, %68, %cst_26 [1] : vector<8x256xf32> to vector<8xf32>
    %70 = vector.shape_cast %69 : vector<8xf32> to vector<8x1xf32>
    %cst_27 = arith.constant 1.000000e-30 : f32
    %71 = vector.broadcast %cst_27 : f32 to vector<8x1xf32>
    %72 = arith.addf %46, %71 : vector<8x1xf32>
    %73 = arith.divf %70, %72 : vector<8x1xf32>
    %cst_28 = arith.constant 0.000000e+00 : f32
    %74 = vector.broadcast %cst_28 : f32 to vector<8x1xf32>
    %75 = arith.select %48, %73, %74 : vector<8x1xi1>, vector<8x1xf32>
    %76 = vector.broadcast %75 : vector<8x1xf32> to vector<8x256xf32>
    %77 = arith.mulf %76, %41 : vector<8x256xf32>
    %78 = arith.addf %67, %77 : vector<8x256xf32>
    %79 = arith.select %48, %70, %46 : vector<8x1xi1>, vector<8x1xf32>
    %c1_i32 = arith.constant 1 : i32
    %cst_29 = arith.constant 1.000000e-10 : f32
    %80 = vector.broadcast %cst_29 : f32 to vector<8x1xf32>
    %81 = arith.cmpf ogt, %79, %80 : vector<8x1xf32>
    %82 = arith.truncf %78 : vector<8x256xf32> to vector<8x256xbf16>
    %cst_30 = arith.constant dense<0.000000e+00> : vector<8x256xf32>
    %83 = tpu.matmul %82, %42, %cst_30 {dimension_numbers = #tpu.dot_dimension_numbers<[1], [0], [0], [1], [0, 0, 1, 1], [], []>} : vector<8x256xbf16>, vector<256x256xbf16>, vector<8x256xf32> -> vector<8x256xf32>
    %cst_31 = arith.constant 0.00365598756 : f32
    %84 = vector.broadcast %cst_31 : f32 to vector<8x256xf32>
    %85 = arith.mulf %84, %78 : vector<8x256xf32>
    %86 = arith.addf %83, %85 : vector<8x256xf32>
    %87 = arith.mulf %78, %86 : vector<8x256xf32>
    %cst_32 = arith.constant dense<0.000000e+00> : vector<8xf32>
    %88 = vector.multi_reduction <add>, %87, %cst_32 [1] : vector<8x256xf32> to vector<8xf32>
    %89 = vector.shape_cast %88 : vector<8xf32> to vector<8x1xf32>
    %cst_33 = arith.constant 1.000000e-30 : f32
    %90 = vector.broadcast %cst_33 : f32 to vector<8x1xf32>
    %91 = arith.addf %89, %90 : vector<8x1xf32>
    %92 = arith.divf %79, %91 : vector<8x1xf32>
    %cst_34 = arith.constant 0.000000e+00 : f32
    %93 = vector.broadcast %cst_34 : f32 to vector<8x1xf32>
    %94 = arith.select %81, %92, %93 : vector<8x1xi1>, vector<8x1xf32>
    %95 = vector.broadcast %94 : vector<8x1xf32> to vector<8x256xf32>
    %96 = arith.mulf %95, %78 : vector<8x256xf32>
    %97 = arith.addf %64, %96 : vector<8x256xf32>
    %98 = vector.broadcast %94 : vector<8x1xf32> to vector<8x256xf32>
    %99 = arith.mulf %98, %86 : vector<8x256xf32>
    %100 = arith.subf %67, %99 : vector<8x256xf32>
    %101 = arith.mulf %100, %100 : vector<8x256xf32>
    %cst_35 = arith.constant dense<0.000000e+00> : vector<8xf32>
    %102 = vector.multi_reduction <add>, %101, %cst_35 [1] : vector<8x256xf32> to vector<8xf32>
    %103 = vector.shape_cast %102 : vector<8xf32> to vector<8x1xf32>
    %cst_36 = arith.constant 1.000000e-30 : f32
    %104 = vector.broadcast %cst_36 : f32 to vector<8x1xf32>
    %105 = arith.addf %79, %104 : vector<8x1xf32>
    %106 = arith.divf %103, %105 : vector<8x1xf32>
    %cst_37 = arith.constant 0.000000e+00 : f32
    %107 = vector.broadcast %cst_37 : f32 to vector<8x1xf32>
    %108 = arith.select %81, %106, %107 : vector<8x1xi1>, vector<8x1xf32>
    %109 = vector.broadcast %108 : vector<8x1xf32> to vector<8x256xf32>
    %110 = arith.mulf %109, %78 : vector<8x256xf32>
    %111 = arith.addf %100, %110 : vector<8x256xf32>
    %112 = arith.select %81, %103, %79 : vector<8x1xi1>, vector<8x1xf32>
    %c2_i32 = arith.constant 2 : i32
    %cst_38 = arith.constant 1.000000e-10 : f32
    %113 = vector.broadcast %cst_38 : f32 to vector<8x1xf32>
    %114 = arith.cmpf ogt, %112, %113 : vector<8x1xf32>
    %115 = arith.truncf %111 : vector<8x256xf32> to vector<8x256xbf16>
    %cst_39 = arith.constant dense<0.000000e+00> : vector<8x256xf32>
    %116 = tpu.matmul %115, %42, %cst_39 {dimension_numbers = #tpu.dot_dimension_numbers<[1], [0], [0], [1], [0, 0, 1, 1], [], []>} : vector<8x256xbf16>, vector<256x256xbf16>, vector<8x256xf32> -> vector<8x256xf32>
    %cst_40 = arith.constant 0.00365598756 : f32
    %117 = vector.broadcast %cst_40 : f32 to vector<8x256xf32>
    %118 = arith.mulf %117, %111 : vector<8x256xf32>
    %119 = arith.addf %116, %118 : vector<8x256xf32>
    %120 = arith.mulf %111, %119 : vector<8x256xf32>
    %cst_41 = arith.constant dense<0.000000e+00> : vector<8xf32>
    %121 = vector.multi_reduction <add>, %120, %cst_41 [1] : vector<8x256xf32> to vector<8xf32>
    %122 = vector.shape_cast %121 : vector<8xf32> to vector<8x1xf32>
    %cst_42 = arith.constant 1.000000e-30 : f32
    %123 = vector.broadcast %cst_42 : f32 to vector<8x1xf32>
    %124 = arith.addf %122, %123 : vector<8x1xf32>
    %125 = arith.divf %112, %124 : vector<8x1xf32>
    %cst_43 = arith.constant 0.000000e+00 : f32
    %126 = vector.broadcast %cst_43 : f32 to vector<8x1xf32>
    %127 = arith.select %114, %125, %126 : vector<8x1xi1>, vector<8x1xf32>
    %128 = vector.broadcast %127 : vector<8x1xf32> to vector<8x256xf32>
    %129 = arith.mulf %128, %111 : vector<8x256xf32>
    %130 = arith.addf %97, %129 : vector<8x256xf32>
    %131 = vector.broadcast %127 : vector<8x1xf32> to vector<8x256xf32>
    %132 = arith.mulf %131, %119 : vector<8x256xf32>
    %133 = arith.subf %100, %132 : vector<8x256xf32>
    %134 = arith.mulf %133, %133 : vector<8x256xf32>
    %cst_44 = arith.constant dense<0.000000e+00> : vector<8xf32>
    %135 = vector.multi_reduction <add>, %134, %cst_44 [1] : vector<8x256xf32> to vector<8xf32>
    %136 = vector.shape_cast %135 : vector<8xf32> to vector<8x1xf32>
    %cst_45 = arith.constant 1.000000e-30 : f32
    %137 = vector.broadcast %cst_45 : f32 to vector<8x1xf32>
    %138 = arith.addf %112, %137 : vector<8x1xf32>
    %139 = arith.divf %136, %138 : vector<8x1xf32>
    %cst_46 = arith.constant 0.000000e+00 : f32
    %140 = vector.broadcast %cst_46 : f32 to vector<8x1xf32>
    %141 = arith.select %114, %139, %140 : vector<8x1xi1>, vector<8x1xf32>
    %142 = vector.broadcast %141 : vector<8x1xf32> to vector<8x256xf32>
    %143 = arith.mulf %142, %111 : vector<8x256xf32>
    %144 = arith.addf %133, %143 : vector<8x256xf32>
    %145 = arith.select %114, %136, %112 : vector<8x1xi1>, vector<8x1xf32>
    %c3_i32 = arith.constant 3 : i32
    %cst_47 = arith.constant 1.000000e-10 : f32
    %146 = vector.broadcast %cst_47 : f32 to vector<8x1xf32>
    %147 = arith.cmpf ogt, %145, %146 : vector<8x1xf32>
    %148 = arith.truncf %144 : vector<8x256xf32> to vector<8x256xbf16>
    %cst_48 = arith.constant dense<0.000000e+00> : vector<8x256xf32>
    %149 = tpu.matmul %148, %42, %cst_48 {dimension_numbers = #tpu.dot_dimension_numbers<[1], [0], [0], [1], [0, 0, 1, 1], [], []>} : vector<8x256xbf16>, vector<256x256xbf16>, vector<8x256xf32> -> vector<8x256xf32>
    %cst_49 = arith.constant 0.00365598756 : f32
    %150 = vector.broadcast %cst_49 : f32 to vector<8x256xf32>
    %151 = arith.mulf %150, %144 : vector<8x256xf32>
    %152 = arith.addf %149, %151 : vector<8x256xf32>
    %153 = arith.mulf %144, %152 : vector<8x256xf32>
    %cst_50 = arith.constant dense<0.000000e+00> : vector<8xf32>
    %154 = vector.multi_reduction <add>, %153, %cst_50 [1] : vector<8x256xf32> to vector<8xf32>
    %155 = vector.shape_cast %154 : vector<8xf32> to vector<8x1xf32>
    %cst_51 = arith.constant 1.000000e-30 : f32
    %156 = vector.broadcast %cst_51 : f32 to vector<8x1xf32>
    %157 = arith.addf %155, %156 : vector<8x1xf32>
    %158 = arith.divf %145, %157 : vector<8x1xf32>
    %cst_52 = arith.constant 0.000000e+00 : f32
    %159 = vector.broadcast %cst_52 : f32 to vector<8x1xf32>
    %160 = arith.select %147, %158, %159 : vector<8x1xi1>, vector<8x1xf32>
    %161 = vector.broadcast %160 : vector<8x1xf32> to vector<8x256xf32>
    %162 = arith.mulf %161, %144 : vector<8x256xf32>
    %163 = arith.addf %130, %162 : vector<8x256xf32>
    %164 = vector.broadcast %160 : vector<8x1xf32> to vector<8x256xf32>
    %165 = arith.mulf %164, %152 : vector<8x256xf32>
    %166 = arith.subf %133, %165 : vector<8x256xf32>
    %167 = arith.mulf %166, %166 : vector<8x256xf32>
    %cst_53 = arith.constant dense<0.000000e+00> : vector<8xf32>
    %168 = vector.multi_reduction <add>, %167, %cst_53 [1] : vector<8x256xf32> to vector<8xf32>
    %169 = vector.shape_cast %168 : vector<8xf32> to vector<8x1xf32>
    %cst_54 = arith.constant 1.000000e-30 : f32
    %170 = vector.broadcast %cst_54 : f32 to vector<8x1xf32>
    %171 = arith.addf %145, %170 : vector<8x1xf32>
    %172 = arith.divf %169, %171 : vector<8x1xf32>
    %cst_55 = arith.constant 0.000000e+00 : f32
    %173 = vector.broadcast %cst_55 : f32 to vector<8x1xf32>
    %174 = arith.select %147, %172, %173 : vector<8x1xi1>, vector<8x1xf32>
    %175 = vector.broadcast %174 : vector<8x1xf32> to vector<8x256xf32>
    %176 = arith.mulf %175, %144 : vector<8x256xf32>
    %177 = arith.addf %166, %176 : vector<8x256xf32>
    %178 = arith.select %147, %169, %145 : vector<8x1xi1>, vector<8x1xf32>
    %c4_i32 = arith.constant 4 : i32
    %cst_56 = arith.constant 1.000000e-10 : f32
    %179 = vector.broadcast %cst_56 : f32 to vector<8x1xf32>
    %180 = arith.cmpf ogt, %178, %179 : vector<8x1xf32>
    %181 = arith.truncf %177 : vector<8x256xf32> to vector<8x256xbf16>
    %cst_57 = arith.constant dense<0.000000e+00> : vector<8x256xf32>
    %182 = tpu.matmul %181, %42, %cst_57 {dimension_numbers = #tpu.dot_dimension_numbers<[1], [0], [0], [1], [0, 0, 1, 1], [], []>} : vector<8x256xbf16>, vector<256x256xbf16>, vector<8x256xf32> -> vector<8x256xf32>
    %cst_58 = arith.constant 0.00365598756 : f32
    %183 = vector.broadcast %cst_58 : f32 to vector<8x256xf32>
    %184 = arith.mulf %183, %177 : vector<8x256xf32>
    %185 = arith.addf %182, %184 : vector<8x256xf32>
    %186 = arith.mulf %177, %185 : vector<8x256xf32>
    %cst_59 = arith.constant dense<0.000000e+00> : vector<8xf32>
    %187 = vector.multi_reduction <add>, %186, %cst_59 [1] : vector<8x256xf32> to vector<8xf32>
    %188 = vector.shape_cast %187 : vector<8xf32> to vector<8x1xf32>
    %cst_60 = arith.constant 1.000000e-30 : f32
    %189 = vector.broadcast %cst_60 : f32 to vector<8x1xf32>
    %190 = arith.addf %188, %189 : vector<8x1xf32>
    %191 = arith.divf %178, %190 : vector<8x1xf32>
    %cst_61 = arith.constant 0.000000e+00 : f32
    %192 = vector.broadcast %cst_61 : f32 to vector<8x1xf32>
    %193 = arith.select %180, %191, %192 : vector<8x1xi1>, vector<8x1xf32>
    %194 = vector.broadcast %193 : vector<8x1xf32> to vector<8x256xf32>
    %195 = arith.mulf %194, %177 : vector<8x256xf32>
    %196 = arith.addf %163, %195 : vector<8x256xf32>
    %197 = vector.broadcast %193 : vector<8x1xf32> to vector<8x256xf32>
    %198 = arith.mulf %197, %185 : vector<8x256xf32>
    %199 = arith.subf %166, %198 : vector<8x256xf32>
    %200 = arith.mulf %199, %199 : vector<8x256xf32>
    %cst_62 = arith.constant dense<0.000000e+00> : vector<8xf32>
    %201 = vector.multi_reduction <add>, %200, %cst_62 [1] : vector<8x256xf32> to vector<8xf32>
    %202 = vector.shape_cast %201 : vector<8xf32> to vector<8x1xf32>
    %cst_63 = arith.constant 1.000000e-30 : f32
    %203 = vector.broadcast %cst_63 : f32 to vector<8x1xf32>
    %204 = arith.addf %178, %203 : vector<8x1xf32>
    %205 = arith.divf %202, %204 : vector<8x1xf32>
    %cst_64 = arith.constant 0.000000e+00 : f32
    %206 = vector.broadcast %cst_64 : f32 to vector<8x1xf32>
    %207 = arith.select %180, %205, %206 : vector<8x1xi1>, vector<8x1xf32>
    %208 = vector.broadcast %207 : vector<8x1xf32> to vector<8x256xf32>
    %209 = arith.mulf %208, %177 : vector<8x256xf32>
    %210 = arith.addf %199, %209 : vector<8x256xf32>
    %211 = arith.select %180, %202, %178 : vector<8x1xi1>, vector<8x1xf32>
    %c5_i32 = arith.constant 5 : i32
    %cst_65 = arith.constant 1.000000e-10 : f32
    %212 = vector.broadcast %cst_65 : f32 to vector<8x1xf32>
    %213 = arith.cmpf ogt, %211, %212 : vector<8x1xf32>
    %214 = arith.truncf %210 : vector<8x256xf32> to vector<8x256xbf16>
    %cst_66 = arith.constant dense<0.000000e+00> : vector<8x256xf32>
    %215 = tpu.matmul %214, %42, %cst_66 {dimension_numbers = #tpu.dot_dimension_numbers<[1], [0], [0], [1], [0, 0, 1, 1], [], []>} : vector<8x256xbf16>, vector<256x256xbf16>, vector<8x256xf32> -> vector<8x256xf32>
    %cst_67 = arith.constant 0.00365598756 : f32
    %216 = vector.broadcast %cst_67 : f32 to vector<8x256xf32>
    %217 = arith.mulf %216, %210 : vector<8x256xf32>
    %218 = arith.addf %215, %217 : vector<8x256xf32>
    %219 = arith.mulf %210, %218 : vector<8x256xf32>
    %cst_68 = arith.constant dense<0.000000e+00> : vector<8xf32>
    %220 = vector.multi_reduction <add>, %219, %cst_68 [1] : vector<8x256xf32> to vector<8xf32>
    %221 = vector.shape_cast %220 : vector<8xf32> to vector<8x1xf32>
    %cst_69 = arith.constant 1.000000e-30 : f32
    %222 = vector.broadcast %cst_69 : f32 to vector<8x1xf32>
    %223 = arith.addf %221, %222 : vector<8x1xf32>
    %224 = arith.divf %211, %223 : vector<8x1xf32>
    %cst_70 = arith.constant 0.000000e+00 : f32
    %225 = vector.broadcast %cst_70 : f32 to vector<8x1xf32>
    %226 = arith.select %213, %224, %225 : vector<8x1xi1>, vector<8x1xf32>
    %227 = vector.broadcast %226 : vector<8x1xf32> to vector<8x256xf32>
    %228 = arith.mulf %227, %210 : vector<8x256xf32>
    %229 = arith.addf %196, %228 : vector<8x256xf32>
    %230 = vector.broadcast %226 : vector<8x1xf32> to vector<8x256xf32>
    %231 = arith.mulf %230, %218 : vector<8x256xf32>
    %232 = arith.subf %199, %231 : vector<8x256xf32>
    %233 = arith.mulf %232, %232 : vector<8x256xf32>
    %cst_71 = arith.constant dense<0.000000e+00> : vector<8xf32>
    %234 = vector.multi_reduction <add>, %233, %cst_71 [1] : vector<8x256xf32> to vector<8xf32>
    %235 = vector.shape_cast %234 : vector<8xf32> to vector<8x1xf32>
    %cst_72 = arith.constant 1.000000e-30 : f32
    %236 = vector.broadcast %cst_72 : f32 to vector<8x1xf32>
    %237 = arith.addf %211, %236 : vector<8x1xf32>
    %238 = arith.divf %235, %237 : vector<8x1xf32>
    %cst_73 = arith.constant 0.000000e+00 : f32
    %239 = vector.broadcast %cst_73 : f32 to vector<8x1xf32>
    %240 = arith.select %213, %238, %239 : vector<8x1xi1>, vector<8x1xf32>
    %241 = vector.broadcast %240 : vector<8x1xf32> to vector<8x256xf32>
    %242 = arith.mulf %241, %210 : vector<8x256xf32>
    %243 = arith.addf %232, %242 : vector<8x256xf32>
    %244 = arith.select %213, %235, %211 : vector<8x1xi1>, vector<8x1xf32>
    %c6_i32 = arith.constant 6 : i32
    %cst_74 = arith.constant 1.000000e-10 : f32
    %245 = vector.broadcast %cst_74 : f32 to vector<8x1xf32>
    %246 = arith.cmpf ogt, %244, %245 : vector<8x1xf32>
    %247 = arith.truncf %243 : vector<8x256xf32> to vector<8x256xbf16>
    %cst_75 = arith.constant dense<0.000000e+00> : vector<8x256xf32>
    %248 = tpu.matmul %247, %42, %cst_75 {dimension_numbers = #tpu.dot_dimension_numbers<[1], [0], [0], [1], [0, 0, 1, 1], [], []>} : vector<8x256xbf16>, vector<256x256xbf16>, vector<8x256xf32> -> vector<8x256xf32>
    %cst_76 = arith.constant 0.00365598756 : f32
    %249 = vector.broadcast %cst_76 : f32 to vector<8x256xf32>
    %250 = arith.mulf %249, %243 : vector<8x256xf32>
    %251 = arith.addf %248, %250 : vector<8x256xf32>
    %252 = arith.mulf %243, %251 : vector<8x256xf32>
    %cst_77 = arith.constant dense<0.000000e+00> : vector<8xf32>
    %253 = vector.multi_reduction <add>, %252, %cst_77 [1] : vector<8x256xf32> to vector<8xf32>
    %254 = vector.shape_cast %253 : vector<8xf32> to vector<8x1xf32>
    %cst_78 = arith.constant 1.000000e-30 : f32
    %255 = vector.broadcast %cst_78 : f32 to vector<8x1xf32>
    %256 = arith.addf %254, %255 : vector<8x1xf32>
    %257 = arith.divf %244, %256 : vector<8x1xf32>
    %cst_79 = arith.constant 0.000000e+00 : f32
    %258 = vector.broadcast %cst_79 : f32 to vector<8x1xf32>
    %259 = arith.select %246, %257, %258 : vector<8x1xi1>, vector<8x1xf32>
    %260 = vector.broadcast %259 : vector<8x1xf32> to vector<8x256xf32>
    %261 = arith.mulf %260, %243 : vector<8x256xf32>
    %262 = arith.addf %229, %261 : vector<8x256xf32>
    %263 = vector.broadcast %259 : vector<8x1xf32> to vector<8x256xf32>
    %264 = arith.mulf %263, %251 : vector<8x256xf32>
    %265 = arith.subf %232, %264 : vector<8x256xf32>
    %266 = arith.mulf %265, %265 : vector<8x256xf32>
    %cst_80 = arith.constant dense<0.000000e+00> : vector<8xf32>
    %267 = vector.multi_reduction <add>, %266, %cst_80 [1] : vector<8x256xf32> to vector<8xf32>
    %268 = vector.shape_cast %267 : vector<8xf32> to vector<8x1xf32>
    %cst_81 = arith.constant 1.000000e-30 : f32
    %269 = vector.broadcast %cst_81 : f32 to vector<8x1xf32>
    %270 = arith.addf %244, %269 : vector<8x1xf32>
    %271 = arith.divf %268, %270 : vector<8x1xf32>
    %cst_82 = arith.constant 0.000000e+00 : f32
    %272 = vector.broadcast %cst_82 : f32 to vector<8x1xf32>
    %273 = arith.select %246, %271, %272 : vector<8x1xi1>, vector<8x1xf32>
    %274 = vector.broadcast %273 : vector<8x1xf32> to vector<8x256xf32>
    %275 = arith.mulf %274, %243 : vector<8x256xf32>
    %276 = arith.addf %265, %275 : vector<8x256xf32>
    %277 = arith.select %246, %268, %244 : vector<8x1xi1>, vector<8x1xf32>
    %c7_i32 = arith.constant 7 : i32
    %cst_83 = arith.constant 1.000000e-10 : f32
    %278 = vector.broadcast %cst_83 : f32 to vector<8x1xf32>
    %279 = arith.cmpf ogt, %277, %278 : vector<8x1xf32>
    %280 = arith.truncf %276 : vector<8x256xf32> to vector<8x256xbf16>
    %cst_84 = arith.constant dense<0.000000e+00> : vector<8x256xf32>
    %281 = tpu.matmul %280, %42, %cst_84 {dimension_numbers = #tpu.dot_dimension_numbers<[1], [0], [0], [1], [0, 0, 1, 1], [], []>} : vector<8x256xbf16>, vector<256x256xbf16>, vector<8x256xf32> -> vector<8x256xf32>
    %cst_85 = arith.constant 0.00365598756 : f32
    %282 = vector.broadcast %cst_85 : f32 to vector<8x256xf32>
    %283 = arith.mulf %282, %276 : vector<8x256xf32>
    %284 = arith.addf %281, %283 : vector<8x256xf32>
    %285 = arith.mulf %276, %284 : vector<8x256xf32>
    %cst_86 = arith.constant dense<0.000000e+00> : vector<8xf32>
    %286 = vector.multi_reduction <add>, %285, %cst_86 [1] : vector<8x256xf32> to vector<8xf32>
    %287 = vector.shape_cast %286 : vector<8xf32> to vector<8x1xf32>
    %cst_87 = arith.constant 1.000000e-30 : f32
    %288 = vector.broadcast %cst_87 : f32 to vector<8x1xf32>
    %289 = arith.addf %287, %288 : vector<8x1xf32>
    %290 = arith.divf %277, %289 : vector<8x1xf32>
    %cst_88 = arith.constant 0.000000e+00 : f32
    %291 = vector.broadcast %cst_88 : f32 to vector<8x1xf32>
    %292 = arith.select %279, %290, %291 : vector<8x1xi1>, vector<8x1xf32>
    %293 = vector.broadcast %292 : vector<8x1xf32> to vector<8x256xf32>
    %294 = arith.mulf %293, %276 : vector<8x256xf32>
    %295 = arith.addf %262, %294 : vector<8x256xf32>
    %296 = vector.broadcast %292 : vector<8x1xf32> to vector<8x256xf32>
    %297 = arith.mulf %296, %284 : vector<8x256xf32>
    %298 = arith.subf %265, %297 : vector<8x256xf32>
    %299 = arith.mulf %298, %298 : vector<8x256xf32>
    %cst_89 = arith.constant dense<0.000000e+00> : vector<8xf32>
    %300 = vector.multi_reduction <add>, %299, %cst_89 [1] : vector<8x256xf32> to vector<8xf32>
    %301 = vector.shape_cast %300 : vector<8xf32> to vector<8x1xf32>
    %cst_90 = arith.constant 1.000000e-30 : f32
    %302 = vector.broadcast %cst_90 : f32 to vector<8x1xf32>
    %303 = arith.addf %277, %302 : vector<8x1xf32>
    %304 = arith.divf %301, %303 : vector<8x1xf32>
    %cst_91 = arith.constant 0.000000e+00 : f32
    %305 = vector.broadcast %cst_91 : f32 to vector<8x1xf32>
    %306 = arith.select %279, %304, %305 : vector<8x1xi1>, vector<8x1xf32>
    %307 = vector.broadcast %306 : vector<8x1xf32> to vector<8x256xf32>
    %308 = arith.mulf %307, %276 : vector<8x256xf32>
    %309 = arith.addf %298, %308 : vector<8x256xf32>
    %310 = arith.select %279, %301, %277 : vector<8x1xi1>, vector<8x1xf32>
    %c8_i32 = arith.constant 8 : i32
    %cst_92 = arith.constant 1.000000e-10 : f32
    %311 = vector.broadcast %cst_92 : f32 to vector<8x1xf32>
    %312 = arith.cmpf ogt, %310, %311 : vector<8x1xf32>
    %313 = arith.truncf %309 : vector<8x256xf32> to vector<8x256xbf16>
    %cst_93 = arith.constant dense<0.000000e+00> : vector<8x256xf32>
    %314 = tpu.matmul %313, %42, %cst_93 {dimension_numbers = #tpu.dot_dimension_numbers<[1], [0], [0], [1], [0, 0, 1, 1], [], []>} : vector<8x256xbf16>, vector<256x256xbf16>, vector<8x256xf32> -> vector<8x256xf32>
    %cst_94 = arith.constant 0.00365598756 : f32
    %315 = vector.broadcast %cst_94 : f32 to vector<8x256xf32>
    %316 = arith.mulf %315, %309 : vector<8x256xf32>
    %317 = arith.addf %314, %316 : vector<8x256xf32>
    %318 = arith.mulf %309, %317 : vector<8x256xf32>
    %cst_95 = arith.constant dense<0.000000e+00> : vector<8xf32>
    %319 = vector.multi_reduction <add>, %318, %cst_95 [1] : vector<8x256xf32> to vector<8xf32>
    %320 = vector.shape_cast %319 : vector<8xf32> to vector<8x1xf32>
    %cst_96 = arith.constant 1.000000e-30 : f32
    %321 = vector.broadcast %cst_96 : f32 to vector<8x1xf32>
    %322 = arith.addf %320, %321 : vector<8x1xf32>
    %323 = arith.divf %310, %322 : vector<8x1xf32>
    %cst_97 = arith.constant 0.000000e+00 : f32
    %324 = vector.broadcast %cst_97 : f32 to vector<8x1xf32>
    %325 = arith.select %312, %323, %324 : vector<8x1xi1>, vector<8x1xf32>
    %326 = vector.broadcast %325 : vector<8x1xf32> to vector<8x256xf32>
    %327 = arith.mulf %326, %309 : vector<8x256xf32>
    %328 = arith.addf %295, %327 : vector<8x256xf32>
    %329 = vector.broadcast %325 : vector<8x1xf32> to vector<8x256xf32>
    %330 = arith.mulf %329, %317 : vector<8x256xf32>
    %331 = arith.subf %298, %330 : vector<8x256xf32>
    %332 = arith.mulf %331, %331 : vector<8x256xf32>
    %cst_98 = arith.constant dense<0.000000e+00> : vector<8xf32>
    %333 = vector.multi_reduction <add>, %332, %cst_98 [1] : vector<8x256xf32> to vector<8xf32>
    %334 = vector.shape_cast %333 : vector<8xf32> to vector<8x1xf32>
    %cst_99 = arith.constant 1.000000e-30 : f32
    %335 = vector.broadcast %cst_99 : f32 to vector<8x1xf32>
    %336 = arith.addf %310, %335 : vector<8x1xf32>
    %337 = arith.divf %334, %336 : vector<8x1xf32>
    %cst_100 = arith.constant 0.000000e+00 : f32
    %338 = vector.broadcast %cst_100 : f32 to vector<8x1xf32>
    %339 = arith.select %312, %337, %338 : vector<8x1xi1>, vector<8x1xf32>
    %340 = vector.broadcast %339 : vector<8x1xf32> to vector<8x256xf32>
    %341 = arith.mulf %340, %309 : vector<8x256xf32>
    %342 = arith.addf %331, %341 : vector<8x256xf32>
    %343 = arith.select %312, %334, %310 : vector<8x1xi1>, vector<8x1xf32>
    %c9_i32 = arith.constant 9 : i32
    %cst_101 = arith.constant 1.000000e-10 : f32
    %344 = vector.broadcast %cst_101 : f32 to vector<8x1xf32>
    %345 = arith.cmpf ogt, %343, %344 : vector<8x1xf32>
    %346 = arith.truncf %342 : vector<8x256xf32> to vector<8x256xbf16>
    %cst_102 = arith.constant dense<0.000000e+00> : vector<8x256xf32>
    %347 = tpu.matmul %346, %42, %cst_102 {dimension_numbers = #tpu.dot_dimension_numbers<[1], [0], [0], [1], [0, 0, 1, 1], [], []>} : vector<8x256xbf16>, vector<256x256xbf16>, vector<8x256xf32> -> vector<8x256xf32>
    %cst_103 = arith.constant 0.00365598756 : f32
    %348 = vector.broadcast %cst_103 : f32 to vector<8x256xf32>
    %349 = arith.mulf %348, %342 : vector<8x256xf32>
    %350 = arith.addf %347, %349 : vector<8x256xf32>
    %351 = arith.mulf %342, %350 : vector<8x256xf32>
    %cst_104 = arith.constant dense<0.000000e+00> : vector<8xf32>
    %352 = vector.multi_reduction <add>, %351, %cst_104 [1] : vector<8x256xf32> to vector<8xf32>
    %353 = vector.shape_cast %352 : vector<8xf32> to vector<8x1xf32>
    %cst_105 = arith.constant 1.000000e-30 : f32
    %354 = vector.broadcast %cst_105 : f32 to vector<8x1xf32>
    %355 = arith.addf %353, %354 : vector<8x1xf32>
    %356 = arith.divf %343, %355 : vector<8x1xf32>
    %cst_106 = arith.constant 0.000000e+00 : f32
    %357 = vector.broadcast %cst_106 : f32 to vector<8x1xf32>
    %358 = arith.select %345, %356, %357 : vector<8x1xi1>, vector<8x1xf32>
    %359 = vector.broadcast %358 : vector<8x1xf32> to vector<8x256xf32>
    %360 = arith.mulf %359, %342 : vector<8x256xf32>
    %361 = arith.addf %328, %360 : vector<8x256xf32>
    %362 = vector.broadcast %358 : vector<8x1xf32> to vector<8x256xf32>
    %363 = arith.mulf %362, %350 : vector<8x256xf32>
    %364 = arith.subf %331, %363 : vector<8x256xf32>
    %365 = arith.mulf %364, %364 : vector<8x256xf32>
    %cst_107 = arith.constant dense<0.000000e+00> : vector<8xf32>
    %366 = vector.multi_reduction <add>, %365, %cst_107 [1] : vector<8x256xf32> to vector<8xf32>
    %367 = vector.shape_cast %366 : vector<8xf32> to vector<8x1xf32>
    %cst_108 = arith.constant 1.000000e-30 : f32
    %368 = vector.broadcast %cst_108 : f32 to vector<8x1xf32>
    %369 = arith.addf %343, %368 : vector<8x1xf32>
    %370 = arith.divf %367, %369 : vector<8x1xf32>
    %cst_109 = arith.constant 0.000000e+00 : f32
    %371 = vector.broadcast %cst_109 : f32 to vector<8x1xf32>
    %372 = arith.select %345, %370, %371 : vector<8x1xi1>, vector<8x1xf32>
    %373 = vector.broadcast %372 : vector<8x1xf32> to vector<8x256xf32>
    %374 = arith.mulf %373, %342 : vector<8x256xf32>
    %375 = arith.addf %364, %374 : vector<8x256xf32>
    %376 = arith.select %345, %367, %343 : vector<8x1xi1>, vector<8x1xf32>
    %c0_110 = arith.constant 0 : index
    %c0_111 = arith.constant 0 : index
    %377 = vector.load %arg5[%c0_110, %c0_111] : memref<8x256xf32, #tpu.memory_space<vmem>>, vector<8x256xf32>
    tpu.vector_store %arg5[%c0_110, %c0_111], %361 {strides = array<i32>} : memref<8x256xf32, #tpu.memory_space<vmem>>, vector<8x256xf32>,
    return
  }
  func.func @transform_0(%arg0: i32) -> (i32, i32) {
    %c0_i32 = arith.constant 0 : i32
    %c0_i32_0 = arith.constant 0 : i32
    return %arg0, %c0_i32 : i32, i32
  }
  func.func @transform_1(%arg0: i32) -> (i32, i32) {
    %c0_i32 = arith.constant 0 : i32
    %c0_i32_0 = arith.constant 0 : i32
    %c0_i32_1 = arith.constant 0 : i32
    return %c0_i32, %c0_i32_0 : i32, i32
  }
  func.func @transform_2(%arg0: i32) -> (i32, i32) {
    %c0_i32 = arith.constant 0 : i32
    %c0_i32_0 = arith.constant 0 : i32
    %c0_i32_1 = arith.constant 0 : i32
    return %c0_i32, %c0_i32_0 : i32, i32
  }
  func.func @transform_3(%arg0: i32) -> (i32, i32) {
    %c0_i32 = arith.constant 0 : i32
    %c0_i32_0 = arith.constant 0 : i32
    %c0_i32_1 = arith.constant 0 : i32
    return %c0_i32, %c0_i32_0 : i32, i32
  }
  func.func @transform_4(%arg0: i32) -> (i32, i32) {
    %c0_i32 = arith.constant 0 : i32
    %c0_i32_0 = arith.constant 0 : i32
    return %arg0, %c0_i32 : i32, i32
  }
}

</mosaic_0001>

<bundles_post_ra>
// kernel: tpu_custom_call.1
= control target key start
LH: loop header
LB: loop body
LE: loop exit
PB: predicated region body
PF: predicated region fallthrough
CT: control target
= control target key end

     0   :  { %9 = vsyncpa [#allocation3], 0  ;;  %s4926_s0 = inlined_call_operand.hbm [shape: f32[8,640], index: 0, kind: input, shape index: {}]   ;;  %s4927_s1 = inlined_call_operand.hbm [shape: bf16[640,384], index: 1, kind: input, shape index: {}]   ;;  %s4928_s2 = inlined_call_operand.hbm [shape: bf16[384,256], index: 2, kind: input, shape index: {}]   ;;  %s4929_s3 = inlined_call_operand.hbm [shape: bf16[256,256], index: 3, kind: input, shape index: {}]   ;;  %s4930_s4 = inlined_call_operand.hbm [shape: f32[8,256], index: 4, kind: output, shape index: {}]  }
   0x1   :  { %10 = vsyncpa [#allocation6], 0 }
   0x2   :  { %11 = vsyncpa [#allocation9], 0  ;;  %s28_s17 = sshll.u32 %s4927_s1, 4  ;;  %s29_s17 = int_to_ptr.hbm [resolvable:$true] %s28_s17 }
   0x3   :  { %12 = vsyncpa [#allocation4], 0  ;;  %s4004_s18 = smov [#allocation5]   ;;  %s18_s22 = sshll.u32 %s4926_s0, 4  ;;  %s19_s22 = int_to_ptr.hbm [resolvable:$true] %s18_s22 }
   0x4   :  { %s30_s19 = sshll.u32 %s4004_s18, 4  ;;  %s4005_s23 = smov 192   ;;  %s31_s19 = int_to_ptr.vmem [resolvable:$true] %s30_s19 }
   0x5   :  { %s4006_s24 = smov 12   ;;  %s4007_s25 = smov [#allocation2]  }
   0x6   :  { %36 = dma.hbm_to_vmem [thread:$0]  %s29_s17, 15360, %s31_s19, [#allocation6], %s4005_s23, %s4005_s23, %s4006_s24  }
   0x7   :  { %s20_s26 = sshll.u32 %s4007_s25, 4  ;;  %s41_s29 = sshll.u32 %s4928_s2, 4  ;;  %s21_s26 = int_to_ptr.vmem [resolvable:$true] %s20_s26  ;;  %s42_s29 = int_to_ptr.hbm [resolvable:$true] %s41_s29 }
   0x8   :  { %23 = dma.hbm_to_vmem [thread:$0]  %s19_s22, 640, %s21_s26, [#allocation3]  }
   0x9   :  { %s4008_s1 = smov [#allocation7]   ;;  %s54_s0 = sshll.u32 %s4929_s3, 4  ;;  %s55_s0 = int_to_ptr.hbm [resolvable:$true] %s54_s0 }
   0xa   :  { %s43_s30 = sshll.u32 %s4008_s1, 4  ;;  %s4009_s7 = smov 128   ;;  %s44_s30 = int_to_ptr.vmem [resolvable:$true] %s43_s30 }
   0xb   :  { %s4010_s8 = smov 8   ;;  %s4011_s9 = smov [#allocation8]  }
   0xc   :  { %49 = dma.hbm_to_vmem [thread:$0]  %s42_s29, 6144, %s44_s30, [#allocation6], %s4009_s7, %s4009_s7, %s4010_s8  }
   0xd   :  { %s56_s10 = sshll.u32 %s4011_s9, 4  ;;  %s57_s10 = int_to_ptr.vmem [resolvable:$true] %s56_s10 }
   0xe   :  { %62 = dma.hbm_to_vmem [thread:$0]  %s55_s0, 4096, %s57_s10, [#allocation9], %s4009_s7, %s4009_s7, %s4010_s8  }
   0xf   :  { %3996 = dma.done.wait [#allocation3], 640  }
  0x10   :  { %3997 = vsyncadd [#allocation3], 4294966656 }
  0x11   :  { %3998 = dma.done.wait [#allocation6], 21504  }
  0x12   :  { %3999 = vsyncadd [#allocation6], 4294945792 }
  0x13   :  { %4000 = dma.done.wait [#allocation9], 4096  }
  0x14   :  { %4001 = vsyncadd [#allocation9], 4294963200  ;;  %v2911_v0 = vld [vmem:[#allocation5 + $0xa8] sm:$0xf]  ;;  %v3647_v1 = vld [vmem:[#allocation5 + $0xb0] sm:$0xf0] }
  0x15   :  { %v3007_v2 = vld [vmem:[#allocation5 + $0x168] sm:$0xf]  ;;  %v2912_v3 = vor.u32 %v3647_v1, %v2911_v0  ;;  %v3671_v4 = vld [vmem:[#allocation5 + $0x170] sm:$0xf0]  ;;  %v2899_v9 = vld [vmem:[#allocation5 + $0x90] sm:$0xf] }
  0x16   :  { %v3103_v5 = vld [vmem:[#allocation5 + $0x228] sm:$0xf]  ;;  %v3695_v6 = vld [vmem:[#allocation5 + $0x230] sm:$0xf0]  ;;  %v3008_v7 = vor.u32 %v3671_v4, %v3007_v2  ;;  %v3644_v10 = vld [vmem:[#allocation5 + $0x98] sm:$0xf0] }
  0x17   :  { %v3104_v8 = vor.u32 %v3695_v6, %v3103_v5  ;;  %v2995_v11 = vld [vmem:[#allocation5 + $0x150] sm:$0xf]  ;;  %889 = vmatpush.bf16.msra.mxu0 %v2912_v3  ;;  %v2900_v12 = vor.u32 %v3644_v10, %v2899_v9  ;;  %v3668_v13 = vld [vmem:[#allocation5 + $0x158] sm:$0xf0]  ;;  %v2887_v18 = vld [vmem:[#allocation5 + $0x78] sm:$0xf] }
  0x18   :  { %v3091_v14 = vld [vmem:[#allocation5 + $0x210] sm:$0xf]  ;;  %v3692_v15 = vld [vmem:[#allocation5 + $0x218] sm:$0xf0]  ;;  %902 = vmatpush.bf16.msra.mxu1 %v3008_v7  ;;  %v2996_v16 = vor.u32 %v3668_v13, %v2995_v11  ;;  %v3641_v19 = vld [vmem:[#allocation5 + $0x80] sm:$0xf0] }
  0x19   :  { %915 = vmatpush.bf16.msra.mxu2 %v3104_v8  ;;  %v3092_v17 = vor.u32 %v3692_v15, %v3091_v14  ;;  %v2983_v20 = vld [vmem:[#allocation5 + $0x138] sm:$0xf]  ;;  %v3665_v21 = vld [vmem:[#allocation5 + $0x140] sm:$0xf0]  ;;  %v2888_v24 = vor.u32 %v3641_v19, %v2887_v18  ;;  %v2875_v25 = vld [vmem:[#allocation5 + $0x60] sm:$0xf] }
  0x1a   :  { %v3079_v22 = vld [vmem:[#allocation5 + $0x1f8] sm:$0xf]  ;;  %v3689_v23 = vld [vmem:[#allocation5 + $0x200] sm:$0xf0]  ;;  %v3638_v26 = vld [vmem:[#allocation5 + $0x68] sm:$0xf0]  ;;  %v2984_v27 = vor.u32 %v3665_v21, %v2983_v20 }
  0x1b   :  { %890 = vmatpush.bf16.msra.mxu0 %v2900_v12  ;;  %v3080_v28 = vor.u32 %v3689_v23, %v3079_v22  ;;  %v2971_v29 = vld [vmem:[#allocation5 + $0x120] sm:$0xf]  ;;  %v3199_v30 = vld [vmem:[#allocation5 + $0x2e8] sm:$0xf]  ;;  %v3719_v31 = vld [vmem:[#allocation5 + $0x2f0] sm:$0xf0]  ;;  %v2876_v37 = vor.u32 %v3638_v26, %v2875_v25 }
  0x1c   :  { %903 = vmatpush.bf16.msra.mxu1 %v2996_v16  ;;  %v3662_v32 = vld [vmem:[#allocation5 + $0x128] sm:$0xf0]  ;;  %v3067_v33 = vld [vmem:[#allocation5 + $0x1e0] sm:$0xf]  ;;  %v3200_v35 = vor.u32 %v3719_v31, %v3199_v30  ;;  %v3187_v36 = vld [vmem:[#allocation5 + $0x2d0] sm:$0xf] }
  0x1d   :  { %916 = vmatpush.bf16.msra.mxu2 %v3092_v17  ;;  %v3686_v34 = vld [vmem:[#allocation5 + $0x1e8] sm:$0xf0]  ;;  %v2863_v38 = vld [vmem:[#allocation5 + $0x48] sm:$0xf]  ;;  %v3635_v39 = vld [vmem:[#allocation5 + $0x50] sm:$0xf0]  ;;  %v2972_v41 = vor.u32 %v3662_v32, %v2971_v29 }
  0x1e   :  { %928 = vmatpush.bf16.msra.mxu3 %v3200_v35  ;;  %v3716_v40 = vld [vmem:[#allocation5 + $0x2d8] sm:$0xf0]  ;;  %v3068_v42 = vor.u32 %v3686_v34, %v3067_v33  ;;  %v2959_v43 = vld [vmem:[#allocation5 + $0x108] sm:$0xf]  ;;  %v3659_v44 = vld [vmem:[#allocation5 + $0x110] sm:$0xf0]  ;;  %v2864_v50 = vor.u32 %v3635_v39, %v2863_v38 }
  0x1f   :  { %891 = vmatpush.bf16.msra.mxu0 %v2888_v24  ;;  %v3055_v45 = vld [vmem:[#allocation5 + $0x1c8] sm:$0xf]  ;;  %v3188_v46 = vor.u32 %v3716_v40, %v3187_v36  ;;  %v3683_v47 = vld [vmem:[#allocation5 + $0x1d0] sm:$0xf0]  ;;  %v3175_v48 = vld [vmem:[#allocation5 + $0x2b8] sm:$0xf]  ;;  %v2960_v54 = vor.u32 %v3659_v44, %v2959_v43 }
  0x20   :  { %904 = vmatpush.bf16.msra.mxu1 %v2984_v27  ;;  %v3713_v49 = vld [vmem:[#allocation5 + $0x2c0] sm:$0xf0]  ;;  %v2851_v51 = vld [vmem:[#allocation5 + $0x30] sm:$0xf]  ;;  %v3632_v52 = vld [vmem:[#allocation5 + $0x38] sm:$0xf0]  ;;  %v3056_v55 = vor.u32 %v3683_v47, %v3055_v45 }
  0x21   :  { %917 = vmatpush.bf16.msra.mxu2 %v3080_v28  ;;  %v3176_v53 = vor.u32 %v3713_v49, %v3175_v48  ;;  %v2947_v56 = vld [vmem:[#allocation5 + $0xf0] sm:$0xf]  ;;  %v3163_v57 = vld [vmem:[#allocation5 + $0x2a0] sm:$0xf]  ;;  %v3710_v58 = vld [vmem:[#allocation5 + $0x2a8] sm:$0xf0]  ;;  %v2852_v62 = vor.u32 %v3632_v52, %v2851_v51 }
  0x22   :  { %929 = vmatpush.bf16.msra.mxu3 %v3188_v46  ;;  %v3656_v59 = vld [vmem:[#allocation5 + $0xf8] sm:$0xf0]  ;;  %v3043_v60 = vld [vmem:[#allocation5 + $0x1b0] sm:$0xf]  ;;  %v2839_v63 = vld [vmem:[#allocation5 + $0x18] sm:$0xf]  ;;  %v3164_v1 = vor.u32 %v3710_v58, %v3163_v57 }
  0x23   :  { %892 = vmatpush.bf16.msra.mxu0 %v2876_v37  ;;  %v3680_v61 = vld [vmem:[#allocation5 + $0x1b8] sm:$0xf0]  ;;  %v3629_v0 = vld [vmem:[#allocation5 + $0x20] sm:$0xf0]  ;;  %v2948_v2 = vor.u32 %v3656_v59, %v2947_v56  ;;  %v2935_v4 = vld [vmem:[#allocation5 + $0xd8] sm:$0xf] }
  0x24   :  { %905 = vmatpush.bf16.msra.mxu1 %v2972_v41  ;;  %v3044_v3 = vor.u32 %v3680_v61, %v3043_v60  ;;  %v3151_v5 = vld [vmem:[#allocation5 + $0x288] sm:$0xf]  ;;  %v3707_v6 = vld [vmem:[#allocation5 + $0x290] sm:$0xf0]  ;;  %v3653_v7 = vld [vmem:[#allocation5 + $0xe0] sm:$0xf0]  ;;  %v2840_v10 = vor.u32 %v3629_v0, %v2839_v63 }
  0x25   :  { %918 = vmatpush.bf16.msra.mxu2 %v3068_v42  ;;  %v3031_v8 = vld [vmem:[#allocation5 + $0x198] sm:$0xf]  ;;  %v3677_v9 = vld [vmem:[#allocation5 + $0x1a0] sm:$0xf0]  ;;  %v2827_v11 = vld [vmem:[#allocation5] sm:$0xf]  ;;  %v3152_v14 = vor.u32 %v3707_v6, %v3151_v5  ;;  %v2936_v15 = vor.u32 %v3653_v7, %v2935_v4 }
  0x26   :  { %930 = vmatpush.bf16.msra.mxu3 %v3176_v53  ;;  %v3626_v12 = vld [vmem:[#allocation5 + $0x8] sm:$0xf0]  ;;  %v2923_v13 = vld [vmem:[#allocation5 + $0xc0] sm:$0xf]  ;;  %v3032_v16 = vor.u32 %v3677_v9, %v3031_v8  ;;  %v3139_v18 = vld [vmem:[#allocation5 + $0x270] sm:$0xf] }
  0x27   :  { %893 = vmatpush.bf16.msra.mxu0 %v2864_v50  ;;  %v3650_v17 = vld [vmem:[#allocation5 + $0xc8] sm:$0xf0]  ;;  %v3704_v19 = vld [vmem:[#allocation5 + $0x278] sm:$0xf0]  ;;  %v3019_v20 = vld [vmem:[#allocation5 + $0x180] sm:$0xf]  ;;  %v2828_v26 = vor.u32 %v3626_v12, %v2827_v11 }
  0x28   :  { %906 = vmatpush.bf16.msra.mxu1 %v2960_v54  ;;  %v3674_v21 = vld [vmem:[#allocation5 + $0x188] sm:$0xf0]  ;;  %v3295_v22 = vld [vmem:[#allocation5 + $0x3a8] sm:$0xf]  ;;  %v3743_v23 = vld [vmem:[#allocation5 + $0x3b0] sm:$0xf0]  ;;  %v3140_v29 = vor.u32 %v3704_v19, %v3139_v18  ;;  %v2924_v30 = vor.u32 %v3650_v17, %v2923_v13 }
  0x29   :  { %919 = vmatpush.bf16.msra.mxu2 %v3056_v55  ;;  %v3646_v24 = vld [vmem:[#allocation5 + $0xac] sm:$0xf]  ;;  %v2913_v25 = vld [vmem:[#allocation5 + $0xb4] sm:$0xf0]  ;;  %v3020_v31 = vor.u32 %v3674_v21, %v3019_v20  ;;  %v3701_v33 = vld [vmem:[#allocation5 + $0x260] sm:$0xf0]  ;;  %v3296_v34 = vor.u32 %v3743_v23, %v3295_v22 }
  0x2a   :  { %931 = vmatpush.bf16.msra.mxu3 %v3164_v1  ;;  %v3670_v27 = vld [vmem:[#allocation5 + $0x16c] sm:$0xf]  ;;  %v3009_v28 = vld [vmem:[#allocation5 + $0x174] sm:$0xf0]  ;;  %v2916_v35 = vor.u32 %v3646_v24, %v2913_v25  ;;  %v3283_v36 = vld [vmem:[#allocation5 + $0x390] sm:$0xf] }
  0x2b   :  { %894 = vmatpush.bf16.msra.mxu0 %v2852_v62  ;;  %v3127_v32 = vld [vmem:[#allocation5 + $0x258] sm:$0xf]  ;;  %v3012_v37 = vor.u32 %v3670_v27, %v3009_v28  ;;  %v3740_v38 = vld [vmem:[#allocation5 + $0x398] sm:$0xf0]  ;;  %v3643_v39 = vld [vmem:[#allocation5 + $0x94] sm:$0xf] }
  0x2c   :  { %907 = vmatpush.bf16.msra.mxu1 %v2948_v2  ;;  %v2901_v40 = vld [vmem:[#allocation5 + $0x9c] sm:$0xf0]  ;;  %v3667_v41 = vld [vmem:[#allocation5 + $0x154] sm:$0xf]  ;;  %v3128_v43 = vor.u32 %v3701_v33, %v3127_v32  ;;  %v3271_v44 = vld [vmem:[#allocation5 + $0x378] sm:$0xf]  ;;  %v3284_v47 = vor.u32 %v3740_v38, %v3283_v36 }
  0x2d   :  { %920 = vmatpush.bf16.msra.mxu2 %v3044_v3  ;;  %v2997_v42 = vld [vmem:[#allocation5 + $0x15c] sm:$0xf0]  ;;  %v3698_v46 = vld [vmem:[#allocation5 + $0x248] sm:$0xf0]  ;;  %v2904_v48 = vor.u32 %v3643_v39, %v2901_v40  ;;  %v3737_v49 = vld [vmem:[#allocation5 + $0x380] sm:$0xf0] }
  0x2e   :  { %932 = vmatpush.bf16.msra.mxu3 %v3152_v14  ;;  %v3115_v45 = vld [vmem:[#allocation5 + $0x240] sm:$0xf]  ;;  %v3694_v50 = vld [vmem:[#allocation5 + $0x22c] sm:$0xf]  ;;  %v3105_v51 = vld [vmem:[#allocation5 + $0x234] sm:$0xf0]  ;;  %v3000_v52 = vor.u32 %v3667_v41, %v2997_v42  ;;  %v3272_v0 = vor.u32 %v3737_v49, %v3271_v44 }
  0x2f   :  { %895 = vmatpush.bf16.msra.mxu0 %v2840_v10  ;;  %v3640_v53 = vld [vmem:[#allocation5 + $0x7c] sm:$0xf]  ;;  %v2889_v54 = vld [vmem:[#allocation5 + $0x84] sm:$0xf0]  ;;  %v3116_v58 = vor.u32 %v3698_v46, %v3115_v45  ;;  %v3259_v61 = vld [vmem:[#allocation5 + $0x360] sm:$0xf]  ;;  %v3108_v62 = vor.u32 %v3694_v50, %v3105_v51 }
  0x30   :  { %908 = vmatpush.bf16.msra.mxu1 %v2936_v15  ;;  %v79_v55 = vld [vmem:[#allocation2] sm:$0xff]  ;;  %v2985_v57 = vld [vmem:[#allocation5 + $0x144] sm:$0xf0]  ;;  %v2892_v1 = vor.u32 %v3640_v53, %v2889_v54  ;;  %v3734_v2 = vld [vmem:[#allocation5 + $0x368] sm:$0xf0]  ;;  %s4012_s2 = smov [#allocation10]  }
  0x31   :  { %921 = vmatpush.bf16.msra.mxu2 %v3032_v16  ;;  %v3664_v56 = vld [vmem:[#allocation5 + $0x13c] sm:$0xf]  ;;  %v4050_v59 = vpack.c.bf16 %v79_v55, %v79_v55  ;;  %v81_v60 = vld [vmem:[#allocation2 + $0x10] sm:$0xff]  ;;  %v3691_v3 = vld [vmem:[#allocation5 + $0x214] sm:$0xf]  ;;  %v3260_v14 = vor.u32 %v3734_v2, %v3259_v61  ;;  %s2811_s3 = sshll.u32 %s4012_s2, 4  ;;  %s2812_s3 = int_to_ptr.vmem [resolvable:$true] %s2811_s3 }
  0x32   :  { %933 = vmatpush.bf16.msra.mxu3 %v3140_v29  ;;  %v4052_v63 = vpack.c.bf16 %v81_v60, %v81_v60  ;;  %v3093_v4 = vld [vmem:[#allocation5 + $0x21c] sm:$0xf0]  ;;  %v2988_v5 = vor.u32 %v3664_v56, %v2985_v57  ;;  %v3637_v6 = vld [vmem:[#allocation5 + $0x64] sm:$0xf]  ;;  %v2877_v7 = vld [vmem:[#allocation5 + $0x6c] sm:$0xf0] }
  0x33   :  { %896 = vmatpush.bf16.msra.mxu0 %v2828_v26  ;;  %v80_v8 = vld [vmem:[#allocation2 + $0x8] sm:$0xff]  ;;  %v2973_v10 = vld [vmem:[#allocation5 + $0x12c] sm:$0xf0]  ;;  %v3247_v12 = vld [vmem:[#allocation5 + $0x348] sm:$0xf]  ;;  %v3096_v13 = vor.u32 %v3691_v3, %v3093_v4  ;;  %v2880_v15 = vor.u32 %v3637_v6, %v2877_v7  ;;  %s2813_s13 = sshll.u32 %s4930_s4, 4  ;;  %s2814_s13 = int_to_ptr.hbm [resolvable:$true] %s2813_s13 }
  0x34   :  { %909 = vmatpush.bf16.msra.mxu1 %v2924_v30  ;;  %v3661_v9 = vld [vmem:[#allocation5 + $0x124] sm:$0xf]  ;;  %v4056_v11 = vpack.c.bf16 %v80_v8, %v80_v8  ;;  %v3688_v16 = vld [vmem:[#allocation5 + $0x1fc] sm:$0xf]  ;;  %v3081_v17 = vld [vmem:[#allocation5 + $0x204] sm:$0xf0] }
  0x35   :  { %922 = vmatpush.bf16.msra.mxu2 %v3020_v31  ;;  %v82_v18 = vld [vmem:[#allocation2 + $0x18] sm:$0xff]  ;;  %v2976_v19 = vor.u32 %v3661_v9, %v2973_v10  ;;  %v3634_v21 = vld [vmem:[#allocation5 + $0x4c] sm:$0xf]  ;;  %v2865_v22 = vld [vmem:[#allocation5 + $0x54] sm:$0xf0]  ;;  %v3084_v26 = vor.u32 %v3688_v16, %v3081_v17 }
  0x36   :  { %934 = vmatpush.bf16.msra.mxu3 %v3128_v43  ;;  %897 = vmatmul.bf16.vlgmr.msra.gmra.mxu0 %v4050_v59  ;;  %v3731_v20 = vld [vmem:[#allocation5 + $0x350] sm:$0xf0]  ;;  %v4059_v23 = vpack.c.bf16 %v82_v18, %v82_v18  ;;  %v3658_v24 = vld [vmem:[#allocation5 + $0x10c] sm:$0xf]  ;;  %v2961_v25 = vld [vmem:[#allocation5 + $0x114] sm:$0xf0]  ;;  %v2868_v28 = vor.u32 %v3634_v21, %v2865_v22 }
  0x37   :  { %941 = vmatpush.bf16.msrb.mxu0 %v3296_v34  ;;  %910 = vmatmul.bf16.vlgmr.msra.gmra.mxu1 %v4056_v11  ;;  %v3248_v27 = vor.u32 %v3731_v20, %v3247_v12  ;;  %v3235_v29 = vld [vmem:[#allocation5 + $0x330] sm:$0xf]  ;;  %v3685_v30 = vld [vmem:[#allocation5 + $0x1e4] sm:$0xf]  ;;  %v2964_v32 = vor.u32 %v3658_v24, %v2961_v25  ;;  %v3728_v33 = vld [vmem:[#allocation5 + $0x338] sm:$0xf0] }
  0x38   :  { %954 = vmatpush.bf16.msrb.mxu1 %v2916_v35  ;;  %923 = vmatmul.bf16.vlgmr.msra.gmra.mxu2 %v4052_v63  ;;  %v3069_v31 = vld [vmem:[#allocation5 + $0x1ec] sm:$0xf0]  ;;  %v3631_v34 = vld [vmem:[#allocation5 + $0x34] sm:$0xf]  ;;  %v2853_v35 = vld [vmem:[#allocation5 + $0x3c] sm:$0xf0]  ;;  %v3236_v39 = vor.u32 %v3728_v33, %v3235_v29 }
  0x39   :  { %967 = vmatpush.bf16.msrb.mxu2 %v3012_v37  ;;  %v3655_v36 = vld [vmem:[#allocation5 + $0xf4] sm:$0xf]  ;;  %v2949_v37 = vld [vmem:[#allocation5 + $0xfc] sm:$0xf0]  ;;  %v3072_v38 = vor.u32 %v3685_v30, %v3069_v31  ;;  %v2856_v40 = vor.u32 %v3631_v34, %v2853_v35  ;;  %v3223_v41 = vld [vmem:[#allocation5 + $0x318] sm:$0xf] }
  0x3a   :  { %935 = vmatpush.bf16.msra.mxu3 %v3116_v58  ;;  %v3682_v42 = vld [vmem:[#allocation5 + $0x1cc] sm:$0xf]  ;;  %v3057_v43 = vld [vmem:[#allocation5 + $0x1d4] sm:$0xf0]  ;;  %v2952_v44 = vor.u32 %v3655_v36, %v2949_v37  ;;  %v3725_v45 = vld [vmem:[#allocation5 + $0x320] sm:$0xf0] }
  0x3b   :  { %942 = vmatpush.bf16.msrb.mxu0 %v3284_v47  ;;  %v3628_v46 = vld [vmem:[#allocation5 + $0x1c] sm:$0xf]  ;;  %v2841_v47 = vld [vmem:[#allocation5 + $0x24] sm:$0xf0]  ;;  %v3211_v50 = vld [vmem:[#allocation5 + $0x300] sm:$0xf]  ;;  %v3224_v53 = vor.u32 %v3725_v45, %v3223_v41 }
  0x3c   :  { %955 = vmatpush.bf16.msrb.mxu1 %v2904_v48  ;;  %v3652_v48 = vld [vmem:[#allocation5 + $0xdc] sm:$0xf]  ;;  %v2937_v49 = vld [vmem:[#allocation5 + $0xe4] sm:$0xf0]  ;;  %v3722_v51 = vld [vmem:[#allocation5 + $0x308] sm:$0xf0]  ;;  %v2844_v54 = vor.u32 %v3628_v46, %v2841_v47 }
  0x3d   :  { %968 = vmatpush.bf16.msrb.mxu2 %v3000_v52  ;;  %936 = vmatmul.bf16.vlgmr.msra.gmra.mxu3 %v4059_v23  ;;  %v3060_v52 = vor.u32 %v3682_v42, %v3057_v43  ;;  %v3625_v55 = vld [vmem:[#allocation5 + $0x4] sm:$0xf]  ;;  %v3679_v56 = vld [vmem:[#allocation5 + $0x1b4] sm:$0xf]  ;;  %v3045_v57 = vld [vmem:[#allocation5 + $0x1bc] sm:$0xf0]  ;;  %v2940_v58 = vor.u32 %v3652_v48, %v2937_v49  ;;  %v3212_v7 = vor.u32 %v3722_v51, %v3211_v50 }
  0x3e   :  { %980 = vmatpush.bf16.msrb.mxu3 %v3108_v62  ;;  %v2829_v60 = vld [vmem:[#allocation5 + $0xc] sm:$0xf0]  ;;  %v3649_v61 = vld [vmem:[#allocation5 + $0xc4] sm:$0xf]  ;;  %v3742_v2 = vld [vmem:[#allocation5 + $0x3ac] sm:$0xf]  ;;  %v3048_v6 = vor.u32 %v3679_v56, %v3045_v57 }
  0x3f   :  { %943 = vmatpush.bf16.msrb.mxu0 %v3272_v0  ;;  %v2925_v62 = vld [vmem:[#allocation5 + $0xcc] sm:$0xf0]  ;;  %v3718_v0 = vld [vmem:[#allocation5 + $0x2ec] sm:$0xf]  ;;  %v3297_v3 = vld [vmem:[#allocation5 + $0x3b4] sm:$0xf0]  ;;  %v2832_v8 = vor.u32 %v3625_v55, %v2829_v60 }
  0x40   :  { %956 = vmatpush.bf16.msrb.mxu1 %v2892_v1  ;;  %v3201_v1 = vld [vmem:[#allocation5 + $0x2f4] sm:$0xf0]  ;;  %v2919_v4 = vld [vmem:[#allocation5 + $0xb0] sm:$0xf]  ;;  %v3676_v10 = vld [vmem:[#allocation5 + $0x19c] sm:$0xf] }
  0x41   :  { %969 = vmatpush.bf16.msrb.mxu2 %v2988_v5  ;;  %v3648_v5 = vld [vmem:[#allocation5 + $0xb8] sm:$0xf0]  ;;  %v3033_v12 = vld [vmem:[#allocation5 + $0x1a4] sm:$0xf0]  ;;  %v3715_v17 = vld [vmem:[#allocation5 + $0x2d4] sm:$0xf] }
  0x42   :  { %981 = vmatpush.bf16.msrb.mxu3 %v3096_v13  ;;  %v83_v9 = vld [vmem:[#allocation2 + $0x20] sm:$0xff]  ;;  %v2928_v13 = vor.u32 %v3649_v61, %v2925_v62  ;;  %v2920_v16 = vor.u32 %v3648_v5, %v2919_v4  ;;  %v3189_v18 = vld [vmem:[#allocation5 + $0x2dc] sm:$0xf0]  ;;  %v3645_v22 = vld [vmem:[#allocation5 + $0xa0] sm:$0xf0]  ;;  %v3036_v25 = vor.u32 %v3676_v10, %v3033_v12 }
  0x43   :  { %944 = vmatpush.bf16.msrb.mxu0 %v3260_v14  ;;  %v3204_v14 = vor.u32 %v3718_v0, %v3201_v1  ;;  %v3285_v20 = vld [vmem:[#allocation5 + $0x39c] sm:$0xf0]  ;;  %v2907_v21 = vld [vmem:[#allocation5 + $0x98] sm:$0xf]  ;;  %v4062_v24 = vpack.c.bf16 %v83_v9, %v83_v9  ;;  %v3015_v29 = vld [vmem:[#allocation5 + $0x170] sm:$0xf] }
  0x44   :  { %957 = vmatpush.bf16.msrb.mxu1 %v2880_v15  ;;  %v3300_v15 = vor.u32 %v3742_v2, %v3297_v3  ;;  %v3672_v30 = vld [vmem:[#allocation5 + $0x178] sm:$0xf0]  ;;  %v3177_v34 = vld [vmem:[#allocation5 + $0x2c4] sm:$0xf0]  ;;  %v2895_v37 = vld [vmem:[#allocation5 + $0x80] sm:$0xf] }
  0x45   :  { %970 = vmatpush.bf16.msrb.mxu2 %v2976_v19  ;;  %v3739_v19 = vld [vmem:[#allocation5 + $0x394] sm:$0xf]  ;;  %v3712_v33 = vld [vmem:[#allocation5 + $0x2bc] sm:$0xf]  ;;  %v3273_v36 = vld [vmem:[#allocation5 + $0x384] sm:$0xf0] }
  0x46   :  { %982 = vmatpush.bf16.msrb.mxu3 %v3084_v26  ;;  %v3673_v26 = vld [vmem:[#allocation5 + $0x184] sm:$0xf]  ;;  %v3288_v31 = vor.u32 %v3739_v19, %v3285_v20  ;;  %v3736_v35 = vld [vmem:[#allocation5 + $0x37c] sm:$0xf]  ;;  %v3180_v41 = vor.u32 %v3712_v33, %v3177_v34  ;;  %v3003_v42 = vld [vmem:[#allocation5 + $0x158] sm:$0xf] }
  0x47   :  { %945 = vmatpush.bf16.msrb.mxu0 %v3248_v27  ;;  %v3021_v27 = vld [vmem:[#allocation5 + $0x18c] sm:$0xf0]  ;;  %v3669_v43 = vld [vmem:[#allocation5 + $0x160] sm:$0xf0]  ;;  %v2883_v50 = vld [vmem:[#allocation5 + $0x68] sm:$0xf] }
  0x48   :  { %958 = vmatpush.bf16.msrb.mxu1 %v2868_v28  ;;  %v3192_v28 = vor.u32 %v3715_v17, %v3189_v18  ;;  %v3709_v46 = vld [vmem:[#allocation5 + $0x2a4] sm:$0xf]  ;;  %v3165_v47 = vld [vmem:[#allocation5 + $0x2ac] sm:$0xf0]  ;;  %v3639_v51 = vld [vmem:[#allocation5 + $0x70] sm:$0xf0] }
  0x49   :  { %971 = vmatpush.bf16.msrb.mxu2 %v2964_v32  ;;  %v2908_v32 = vor.u32 %v3645_v22, %v2907_v21  ;;  %v3733_v48 = vld [vmem:[#allocation5 + $0x364] sm:$0xf]  ;;  %v3261_v49 = vld [vmem:[#allocation5 + $0x36c] sm:$0xf0]  ;;  %v3666_v55 = vld [vmem:[#allocation5 + $0x148] sm:$0xf0]  ;;  %v2884_v57 = vor.u32 %v3639_v51, %v2883_v50 }
  0x4a   :  { %983 = vmatpush.bf16.msrb.mxu3 %v3072_v38  ;;  %v3642_v38 = vld [vmem:[#allocation5 + $0x88] sm:$0xf0]  ;;  %v3264_v56 = vor.u32 %v3733_v48, %v3261_v49  ;;  %v3153_v60 = vld [vmem:[#allocation5 + $0x294] sm:$0xf0]  ;;  %v2871_v0 = vld [vmem:[#allocation5 + $0x50] sm:$0xf] }
  0x4b   :  { %946 = vmatpush.bf16.msrb.mxu0 %v3236_v39  ;;  %v3024_v39 = vor.u32 %v3673_v26, %v3021_v27  ;;  %v2896_v45 = vor.u32 %v3642_v38, %v2895_v37  ;;  %v3730_v61 = vld [vmem:[#allocation5 + $0x34c] sm:$0xf]  ;;  %v3249_v62 = vld [vmem:[#allocation5 + $0x354] sm:$0xf0]  ;;  %v3636_v1 = vld [vmem:[#allocation5 + $0x58] sm:$0xf0] }
  0x4c   :  { %959 = vmatpush.bf16.msrb.mxu1 %v2856_v40  ;;  %v3016_v40 = vor.u32 %v3672_v30, %v3015_v29  ;;  %v2979_v4 = vld [vmem:[#allocation5 + $0x128] sm:$0xf]  ;;  %v3663_v5 = vld [vmem:[#allocation5 + $0x130] sm:$0xf0]  ;;  %v3141_v9 = vld [vmem:[#allocation5 + $0x27c] sm:$0xf0] }
  0x4d   :  { %972 = vmatpush.bf16.msrb.mxu2 %v2952_v44  ;;  %v3276_v44 = vor.u32 %v3736_v35, %v3273_v36  ;;  %v3727_v10 = vld [vmem:[#allocation5 + $0x334] sm:$0xf]  ;;  %v3237_v12 = vld [vmem:[#allocation5 + $0x33c] sm:$0xf0]  ;;  %v2967_v17 = vld [vmem:[#allocation5 + $0x110] sm:$0xf] }
  0x4e   :  { %984 = vmatpush.bf16.msrb.mxu3 %v3060_v52  ;;  %v3004_v52 = vor.u32 %v3669_v43, %v3003_v42  ;;  %v3660_v18 = vld [vmem:[#allocation5 + $0x118] sm:$0xf0]  ;;  %v3240_v19 = vor.u32 %v3727_v10, %v3237_v12  ;;  %v3129_v22 = vld [vmem:[#allocation5 + $0x264] sm:$0xf0]  ;;  %v2847_v27 = vld [vmem:[#allocation5 + $0x20] sm:$0xf] }
  0x4f   :  { %947 = vmatpush.bf16.msrb.mxu0 %v3224_v53  ;;  %v3168_v53 = vor.u32 %v3709_v46, %v3165_v47  ;;  %v3700_v21 = vld [vmem:[#allocation5 + $0x25c] sm:$0xf]  ;;  %v3225_v26 = vld [vmem:[#allocation5 + $0x324] sm:$0xf0]  ;;  %v2968_v29 = vor.u32 %v3660_v18, %v2967_v17  ;;  %v3657_v33 = vld [vmem:[#allocation5 + $0x100] sm:$0xf0] }
  0x50   :  { %960 = vmatpush.bf16.msrb.mxu1 %v2844_v54  ;;  %v2991_v54 = vld [vmem:[#allocation5 + $0x140] sm:$0xf]  ;;  %v3132_v30 = vor.u32 %v3700_v21, %v3129_v22  ;;  %v3117_v36 = vld [vmem:[#allocation5 + $0x24c] sm:$0xf0]  ;;  %v3721_v37 = vld [vmem:[#allocation5 + $0x304] sm:$0xf] }
  0x51   :  { %973 = vmatpush.bf16.msrb.mxu2 %v2940_v58  ;;  %v3706_v58 = vld [vmem:[#allocation5 + $0x28c] sm:$0xf]  ;;  %v2992_v2 = vor.u32 %v3666_v55, %v2991_v54  ;;  %v3213_v38 = vld [vmem:[#allocation5 + $0x30c] sm:$0xf0]  ;;  %v3696_v42 = vld [vmem:[#allocation5 + $0x238] sm:$0xf0] }
  0x52   :  { %985 = vmatpush.bf16.msrb.mxu3 %v3048_v6  ;;  %v3156_v3 = vor.u32 %v3706_v58, %v3153_v60  ;;  %v3252_v6 = vor.u32 %v3730_v61, %v3249_v62  ;;  %v3207_v43 = vld [vmem:[#allocation5 + $0x2f0] sm:$0xf]  ;;  %v3744_v48 = vld [vmem:[#allocation5 + $0x3b8] sm:$0xf0]  ;;  %v3216_v49 = vor.u32 %v3721_v37, %v3213_v38  ;;  %v2943_v54 = vld [vmem:[#allocation5 + $0xe0] sm:$0xf] }
  0x53   :  { %948 = vmatpush.bf16.msrb.mxu0 %v3212_v7  ;;  %v2872_v7 = vor.u32 %v3636_v1, %v2871_v0  ;;  %v3303_v47 = vld [vmem:[#allocation5 + $0x3b0] sm:$0xf]  ;;  %v3654_v55 = vld [vmem:[#allocation5 + $0xe8] sm:$0xf0]  ;;  %v3195_v58 = vld [vmem:[#allocation5 + $0x2d8] sm:$0xf] }
  0x54   :  { %961 = vmatpush.bf16.msrb.mxu1 %v2832_v8  ;;  %v3703_v8 = vld [vmem:[#allocation5 + $0x274] sm:$0xf]  ;;  %v3717_v60 = vld [vmem:[#allocation5 + $0x2e0] sm:$0xf0]  ;;  %v3291_v61 = vld [vmem:[#allocation5 + $0x398] sm:$0xf]  ;;  %v2944_v0 = vor.u32 %v3654_v55, %v2943_v54 }
  0x55   :  { %974 = vmatpush.bf16.msrb.mxu2 %v2928_v13  ;;  %v2859_v13 = vld [vmem:[#allocation5 + $0x38] sm:$0xf]  ;;  %v3741_v62 = vld [vmem:[#allocation5 + $0x3a0] sm:$0xf0]  ;;  %v3279_v10 = vld [vmem:[#allocation5 + $0x380] sm:$0xf] }
  0x56   :  { %949 = vmatmul.bf16.vlgmr.msrb.gmra.mxu0 %v4062_v24  ;;  %986 = vmatpush.bf16.msrb.mxu3 %v3036_v25  ;;  %v3724_v25 = vld [vmem:[#allocation5 + $0x31c] sm:$0xf]  ;;  %v3738_v12 = vld [vmem:[#allocation5 + $0x388] sm:$0xf0]  ;;  %v3687_v18 = vld [vmem:[#allocation5 + $0x1f0] sm:$0xf0] }
  0x57   :  { %993 = vmatpush.bf16.msra.mxu0 %v3204_v14  ;;  %962 = vmatmul.bf16.vlgmr.msrb.gmra.mxu1 %v4050_v59  ;;  %v3633_v14 = vld [vmem:[#allocation5 + $0x40] sm:$0xf0]  ;;  %v3228_v34 = vor.u32 %v3724_v25, %v3225_v26  ;;  %v3280_v17 = vor.u32 %v3738_v12, %v3279_v10  ;;  %v3267_v21 = vld [vmem:[#allocation5 + $0x368] sm:$0xf]  ;;  %v3735_v22 = vld [vmem:[#allocation5 + $0x370] sm:$0xf0] }
  0x58   :  { %1006 = vmatpush.bf16.msra.mxu1 %v3300_v15  ;;  %975 = vmatmul.bf16.vlgmr.msrb.gmra.mxu2 %v4056_v11  ;;  %v2980_v15 = vor.u32 %v3663_v5, %v2979_v4  ;;  %v2860_v20 = vor.u32 %v3633_v14, %v2859_v13  ;;  %v2931_v4 = vld [vmem:[#allocation5 + $0xc8] sm:$0xf]  ;;  %v3651_v5 = vld [vmem:[#allocation5 + $0xd0] sm:$0xf0]  ;;  %v3063_v26 = vld [vmem:[#allocation5 + $0x1d0] sm:$0xf] }
  0x59   :  { %1019 = vmatpush.bf16.msra.mxu2 %v2920_v16  ;;  %v3144_v16 = vor.u32 %v3703_v8, %v3141_v9  ;;  %v3183_v8 = vld [vmem:[#allocation5 + $0x2c0] sm:$0xf]  ;;  %v3714_v9 = vld [vmem:[#allocation5 + $0x2c8] sm:$0xf0]  ;;  %v2932_v13 = vor.u32 %v3651_v5, %v2931_v4  ;;  %v3681_v37 = vld [vmem:[#allocation5 + $0x1c0] sm:$0xf0] }
  0x5a   :  { %987 = vmatpush.bf16.msrb.mxu3 %v3024_v39  ;;  %v2835_v39 = vld [vmem:[#allocation5 + $0x8] sm:$0xf]  ;;  %v3147_v38 = vld [vmem:[#allocation5 + $0x278] sm:$0xf]  ;;  %v3675_v54 = vld [vmem:[#allocation5 + $0x190] sm:$0xf0] }
  0x5b   :  { %994 = vmatpush.bf16.msra.mxu0 %v3192_v28  ;;  %v3630_v28 = vld [vmem:[#allocation5 + $0x28] sm:$0xf0]  ;;  %v3123_v55 = vld [vmem:[#allocation5 + $0x248] sm:$0xf] }
  0x5c   :  { %1007 = vmatpush.bf16.msra.mxu1 %v3288_v31  ;;  %v3697_v31 = vld [vmem:[#allocation5 + $0x244] sm:$0xf]  ;;  %v2848_v35 = vor.u32 %v3630_v28, %v2847_v27  ;;  %v3268_v27 = vor.u32 %v3735_v22, %v3267_v21  ;;  %v3684_v28 = vld [vmem:[#allocation5 + $0x1d8] sm:$0xf0] }
  0x5d   :  { %1020 = vmatpush.bf16.msra.mxu2 %v2908_v32  ;;  %988 = vmatmul.bf16.vlgmr.msrb.gmra.mxu3 %v4052_v63  ;;  %v2955_v32 = vld [vmem:[#allocation5 + $0xf8] sm:$0xf]  ;;  %v3120_v46 = vor.u32 %v3697_v31, %v3117_v36  ;;  %v3255_v31 = vld [vmem:[#allocation5 + $0x350] sm:$0xf] }
  0x5e   :  { %1032 = vmatpush.bf16.msra.mxu3 %v3016_v40  ;;  %v3627_v40 = vld [vmem:[#allocation5 + $0x10] sm:$0xf0] }
  0x5f   :  { %995 = vmatpush.bf16.msra.mxu0 %v3180_v41  ;;  %v3111_v41 = vld [vmem:[#allocation5 + $0x230] sm:$0xf]  ;;  %v2836_v50 = vor.u32 %v3627_v40, %v2835_v39  ;;  %v3705_v39 = vld [vmem:[#allocation5 + $0x280] sm:$0xf0]  ;;  %v3243_v40 = vld [vmem:[#allocation5 + $0x338] sm:$0xf] }
  0x60   :  { %1008 = vmatpush.bf16.msra.mxu1 %v3276_v44  ;;  %v3720_v44 = vld [vmem:[#allocation5 + $0x2f8] sm:$0xf0]  ;;  %v3112_v51 = vor.u32 %v3696_v42, %v3111_v41  ;;  %v3729_v41 = vld [vmem:[#allocation5 + $0x340] sm:$0xf0] }
  0x61   :  { %1021 = vmatpush.bf16.msra.mxu2 %v2896_v45  ;;  %v2956_v45 = vor.u32 %v3657_v33, %v2955_v32  ;;  %v3732_v32 = vld [vmem:[#allocation5 + $0x358] sm:$0xf0]  ;;  %v3064_v33 = vor.u32 %v3684_v28, %v3063_v26  ;;  %v3363_v26 = vld [vmem:[#allocation7 + $0x70] sm:$0xf] }
  0x62   :  { %1033 = vmatpush.bf16.msra.mxu3 %v3004_v52  ;;  %v3208_v52 = vor.u32 %v3720_v44, %v3207_v43  ;;  %v3256_v36 = vor.u32 %v3732_v32, %v3255_v31  ;;  %v3148_v43 = vor.u32 %v3705_v39, %v3147_v38  ;;  %v3039_v44 = vld [vmem:[#allocation5 + $0x1a0] sm:$0xf]  ;;  %v3427_v28 = vld [vmem:[#allocation7 + $0xf0] sm:$0xf]  ;;  %v3758_v32 = vld [vmem:[#allocation7 + $0x64] sm:$0xf0] }
  0x63   :  { %996 = vmatpush.bf16.msra.mxu0 %v3168_v53  ;;  %v3099_v53 = vld [vmem:[#allocation5 + $0x218] sm:$0xf]  ;;  %v3355_v31 = vld [vmem:[#allocation7 + $0x60] sm:$0xf] }
  0x64   :  { %1009 = vmatpush.bf16.msra.mxu1 %v3264_v56  ;;  %v3304_v56 = vor.u32 %v3744_v48, %v3303_v47  ;;  %v3702_v47 = vld [vmem:[#allocation5 + $0x268] sm:$0xf0]  ;;  %v3231_v48 = vld [vmem:[#allocation5 + $0x320] sm:$0xf] }
  0x65   :  { %1022 = vmatpush.bf16.msra.mxu2 %v2884_v57  ;;  %v3693_v57 = vld [vmem:[#allocation5 + $0x220] sm:$0xf0] }
  0x66   :  { %1034 = vmatpush.bf16.msra.mxu3 %v2992_v2  ;;  %v3100_v1 = vor.u32 %v3693_v57, %v3099_v53  ;;  %v3196_v2 = vor.u32 %v3717_v60, %v3195_v58  ;;  %v3219_v57 = vld [vmem:[#allocation5 + $0x308] sm:$0xf]  ;;  %v3723_v58 = vld [vmem:[#allocation5 + $0x310] sm:$0xf0] }
  0x67   :  { %997 = vmatpush.bf16.msra.mxu0 %v3156_v3  ;;  %v3087_v3 = vld [vmem:[#allocation5 + $0x200] sm:$0xf] }
  0x68   :  { %1010 = vmatpush.bf16.msra.mxu1 %v3252_v6  ;;  %v3292_v6 = vor.u32 %v3741_v62, %v3291_v61  ;;  %v3220_v62 = vor.u32 %v3723_v58, %v3219_v57  ;;  %v3757_v57 = vld [vmem:[#allocation7 + $0x64] sm:$0xf]  ;;  %v3403_v58 = vld [vmem:[#allocation7 + $0xc0] sm:$0xf] }
  0x69   :  { %1023 = vmatpush.bf16.msra.mxu2 %v2872_v7  ;;  %v3690_v7 = vld [vmem:[#allocation5 + $0x208] sm:$0xf0] }
  0x6a   :  { %1035 = vmatpush.bf16.msra.mxu3 %v2980_v15  ;;  %v3088_v14 = vor.u32 %v3690_v7, %v3087_v3  ;;  %v3184_v15 = vor.u32 %v3714_v9, %v3183_v8 }
  0x6b   :  { %998 = vmatpush.bf16.msra.mxu0 %v3144_v16  ;;  %v3075_v16 = vld [vmem:[#allocation5 + $0x1e8] sm:$0xf] }
  0x6c   :  { %1011 = vmatpush.bf16.msra.mxu1 %v3240_v19  ;;  %v3171_v19 = vld [vmem:[#allocation5 + $0x2a8] sm:$0xf] }
  0x6d   :  { %1024 = vmatpush.bf16.msra.mxu2 %v2860_v20  ;;  %v3711_v20 = vld [vmem:[#allocation5 + $0x2b0] sm:$0xf0] }
  0x6e   :  { %1036 = vmatpush.bf16.msra.mxu3 %v2968_v29  ;;  %v3172_v25 = vor.u32 %v3711_v20, %v3171_v19  ;;  %v3159_v29 = vld [vmem:[#allocation5 + $0x290] sm:$0xf] }
  0x6f   :  { %999 = vmatpush.bf16.msra.mxu0 %v3132_v30  ;;  %v3708_v30 = vld [vmem:[#allocation5 + $0x298] sm:$0xf0] }
  0x70   :  { %1012 = vmatpush.bf16.msra.mxu1 %v3228_v34  ;;  %v3160_v34 = vor.u32 %v3708_v30, %v3159_v29  ;;  %v3776_v30 = vld [vmem:[#allocation7 + $0xf4] sm:$0xf0] }
  0x71   :  { %1025 = vmatpush.bf16.msra.mxu2 %v2848_v35  ;;  %v3051_v35 = vld [vmem:[#allocation5 + $0x1b8] sm:$0xf] }
  0x72   :  { %1037 = vmatpush.bf16.msra.mxu3 %v2956_v45  ;;  %v3052_v42 = vor.u32 %v3681_v37, %v3051_v35  ;;  %v3678_v45 = vld [vmem:[#allocation5 + $0x1a8] sm:$0xf0]  ;;  %v3774_v35 = vld [vmem:[#allocation7 + $0xe4] sm:$0xf0] }
  0x73   :  { %1000 = vmatpush.bf16.msra.mxu0 %v3120_v46  ;;  %v3135_v46 = vld [vmem:[#allocation5 + $0x260] sm:$0xf] }
  0x74   :  { %1013 = vmatpush.bf16.msra.mxu1 %v3216_v49  ;;  %v3726_v49 = vld [vmem:[#allocation5 + $0x328] sm:$0xf0] }
  0x75   :  { %1026 = vmatpush.bf16.msra.mxu2 %v2836_v50  ;;  %v3040_v50 = vor.u32 %v3678_v45, %v3039_v44  ;;  %v3232_v53 = vor.u32 %v3726_v49, %v3231_v48  ;;  %v3491_v44 = vld [vmem:[#allocation7 + $0x170] sm:$0xf]  ;;  %v1084_v45 = vlaneseq  ;;  %v3365_v48 = vld [vmem:[#allocation7 + $0x78] sm:$0xf0] }
  0x76   :  { %1001 = vmatmul.bf16.vlgmr.msra.gmra.mxu0 %v4059_v23  ;;  %1038 = vmatpush.bf16.msra.mxu3 %v2944_v0 }
  0x77   :  { %1045 = vmatpush.bf16.msrb.mxu0 %v3112_v51  ;;  %1014 = vmatmul.bf16.vlgmr.msra.gmra.mxu1 %v4062_v24  ;;  %v3136_v51 = vor.u32 %v3702_v47, %v3135_v46  ;;  %v3759_v47 = vld [vmem:[#allocation7 + $0x74] sm:$0xf] }
  0x78   :  { %1058 = vmatpush.bf16.msrb.mxu1 %v3208_v52  ;;  %1027 = vmatmul.bf16.vlgmr.msra.gmra.mxu2 %v4050_v59  ;;  %v3076_v59 = vor.u32 %v3687_v18, %v3075_v16  ;;  %v3027_v52 = vld [vmem:[#allocation5 + $0x188] sm:$0xf] }
  0x79   :  { %1071 = vmatpush.bf16.msrb.mxu2 %v3304_v56  ;;  %v3699_v56 = vld [vmem:[#allocation5 + $0x250] sm:$0xf0]  ;;  %v3028_v60 = vor.u32 %v3675_v54, %v3027_v52  ;;  %v3368_v52 = vor.u32 %v3759_v47, %v3365_v48 }
  0x7a   :  { %1039 = vmatpush.bf16.msra.mxu3 %v2932_v13  ;;  %v3124_v61 = vor.u32 %v3699_v56, %v3123_v55  ;;  %v3483_v55 = vld [vmem:[#allocation7 + $0x160] sm:$0xf]  ;;  %v3790_v56 = vld [vmem:[#allocation7 + $0x164] sm:$0xf0] }
  0x7b   :  { %1046 = vmatpush.bf16.msrb.mxu0 %v3100_v1 }
  0x7c   :  { %1059 = vmatpush.bf16.msrb.mxu1 %v3196_v2 }
  0x7d   :  { %1072 = vmatpush.bf16.msrb.mxu2 %v3292_v6  ;;  %1040 = vmatmul.bf16.vlgmr.msra.gmra.mxu3 %v4056_v11  ;;  %v3244_v11 = vor.u32 %v3729_v41, %v3243_v40  ;;  %v3347_v40 = vld [vmem:[#allocation7 + $0x50] sm:$0xf]  ;;  %v3756_v41 = vld [vmem:[#allocation7 + $0x54] sm:$0xf0] }
  0x7e   :  { %v3348_v49 = vor.u32 %v3756_v41, %v3347_v40  ;;  %v3315_v41 = vld [vmem:[#allocation7 + $0x10] sm:$0xf] }
  0x7f   :  { %1047 = vmatpush.bf16.msrb.mxu0 %v3088_v14 }
  0x80   :  { %1060 = vmatpush.bf16.msrb.mxu1 %v3184_v15 }
  0x81   :  { %1073 = vmatpush.bf16.msrb.mxu2 %v3280_v17 }
  0x83   :  { %1048 = vmatpush.bf16.msrb.mxu0 %v3076_v59 }
  0x84   :  { %1061 = vmatpush.bf16.msrb.mxu1 %v3172_v25 }
  0x85   :  { %1074 = vmatpush.bf16.msrb.mxu2 %v3268_v27  ;;  %v3760_v27 = vld [vmem:[#allocation7 + $0x74] sm:$0xf0] }
  0x86   :  { %v3364_v29 = vor.u32 %v3760_v27, %v3363_v26 }
  0x87   :  { %1049 = vmatpush.bf16.msrb.mxu0 %v3064_v33  ;;  %v3428_v33 = vor.u32 %v3776_v30, %v3427_v28 }
  0x88   :  { %1062 = vmatpush.bf16.msrb.mxu1 %v3160_v34  ;;  %v3419_v34 = vld [vmem:[#allocation7 + $0xe0] sm:$0xf]  ;;  %1405 = vmatpush.bf16.msrb.mxu3 %v3364_v29 }
  0x89   :  { %1075 = vmatpush.bf16.msrb.mxu2 %v3256_v36  ;;  %v3356_v36 = vor.u32 %v3758_v32, %v3355_v31  ;;  %v3420_v39 = vor.u32 %v3774_v35, %v3419_v34  ;;  %v3475_v35 = vld [vmem:[#allocation7 + $0x150] sm:$0xf] }
  0x8b   :  { %1050 = vmatpush.bf16.msrb.mxu0 %v3052_v42  ;;  %v3411_v42 = vld [vmem:[#allocation7 + $0xd0] sm:$0xf] }
  0x8c   :  { %1063 = vmatpush.bf16.msrb.mxu1 %v3148_v43  ;;  %v3772_v43 = vld [vmem:[#allocation7 + $0xd4] sm:$0xf0]  ;;  %1406 = vmatpush.bf16.msrb.mxu3 %v3356_v36 }
  0x8d   :  { %1076 = vmatpush.bf16.msrb.mxu2 %v3244_v11  ;;  %v3792_v11 = vld [vmem:[#allocation7 + $0x174] sm:$0xf0]  ;;  %v3412_v54 = vor.u32 %v3772_v43, %v3411_v42  ;;  %v3379_v43 = vld [vmem:[#allocation7 + $0x90] sm:$0xf] }
  0x8e   :  { %v3492_v46 = vor.u32 %v3792_v11, %v3491_v44  ;;  %v3788_v36 = vld [vmem:[#allocation7 + $0x154] sm:$0xf0] }
  0x8f   :  { %1051 = vmatpush.bf16.msrb.mxu0 %v3040_v50  ;;  %v3339_v50 = vld [vmem:[#allocation7 + $0x40] sm:$0xf]  ;;  %v3748_v42 = vld [vmem:[#allocation7 + $0x14] sm:$0xf0] }
  0x90   :  { %1064 = vmatpush.bf16.msrb.mxu1 %v3136_v51  ;;  %v3754_v51 = vld [vmem:[#allocation7 + $0x44] sm:$0xf0]  ;;  %1407 = vmatpush.bf16.msrb.mxu3 %v3348_v49  ;;  %v3316_v44 = vor.u32 %v3748_v42, %v3315_v41  ;;  %v3764_v11 = vld [vmem:[#allocation7 + $0x94] sm:$0xf0]  ;;  %v3753_v49 = vld [vmem:[#allocation7 + $0x44] sm:$0xf] }
  0x91   :  { %1077 = vmatpush.bf16.msrb.mxu2 %v3232_v53  ;;  %v3380_v47 = vor.u32 %v3764_v11, %v3379_v43  ;;  %v3785_v41 = vld [vmem:[#allocation7 + $0x144] sm:$0xf] }
  0x93   :  { %1052 = vmatpush.bf16.msrb.mxu0 %v3028_v60  ;;  %v3770_v60 = vld [vmem:[#allocation7 + $0xc4] sm:$0xf0] }
  0x94   :  { %1065 = vmatpush.bf16.msrb.mxu1 %v3124_v61  ;;  %v3484_v61 = vor.u32 %v3790_v56, %v3483_v55  ;;  %v3762_v55 = vld [vmem:[#allocation7 + $0x84] sm:$0xf0] }
  0x95   :  { %1078 = vmatpush.bf16.msrb.mxu2 %v3220_v62  ;;  %v3357_v62 = vld [vmem:[#allocation7 + $0x68] sm:$0xf0] }
  0x96   :  { %1053 = vmatmul.bf16.vlgmr.msrb.gmra.mxu0 %v4052_v63 }
  0x97   :  { %1066 = vmatmul.bf16.vlgmr.msrb.gmra.mxu1 %v4059_v23  ;;  %1418 = vmatpush.bf16.msra.mxu0 %v3428_v33 }
  0x98   :  { %1079 = vmatmul.bf16.vlgmr.msrb.gmra.mxu2 %v4062_v24  ;;  %1431 = vmatpush.bf16.msra.mxu1 %v3492_v46  ;;  %v3786_v46 = vld [vmem:[#allocation7 + $0x144] sm:$0xf0] }
  0x99   :  { %1444 = vmatpush.bf16.msra.mxu2 %v3368_v52 }
  0x9b   :  { %1419 = vmatpush.bf16.msra.mxu0 %v3420_v39  ;;  %v3349_v39 = vld [vmem:[#allocation7 + $0x58] sm:$0xf0] }
  0x9c   :  { %1432 = vmatpush.bf16.msra.mxu1 %v3484_v61  ;;  %v3751_v61 = vld [vmem:[#allocation7 + $0x34] sm:$0xf] }
  0x9f   :  { %1420 = vmatpush.bf16.msra.mxu0 %v3412_v54  ;;  %v3371_v54 = vld [vmem:[#allocation7 + $0x80] sm:$0xf] }
  0xb3   :  { %v898_v0 = vpop.f32.mrf.mxu0 }
  0xb4   :  { %v911_v1 = vpop.f32.mrf.mxu1 }
  0xb5   :  { %v912_v2 = vadd.f32 %v911_v1, %v898_v0  ;;  %v1085_v0 = vand.u32 127, %v1084_v45  ;;  %v3360_v1 = vor.u32 %v3757_v57, %v3357_v62  ;;  %v3467_v45 = vld [vmem:[#allocation7 + $0x140] sm:$0xf]  ;;  %v3372_v57 = vor.u32 %v3762_v55, %v3371_v54  ;;  %v3453_v55 = vld [vmem:[#allocation7 + $0x128] sm:$0xf0] }
  0xb6   :  { %v3468_v48 = vor.u32 %v3786_v46, %v3467_v45  ;;  %v3767_v45 = vld [vmem:[#allocation7 + $0xb4] sm:$0xf]  ;;  %v3397_v46 = vld [vmem:[#allocation7 + $0xb8] sm:$0xf0] }
  0xb7   :  { %1445 = vmatpush.bf16.msra.mxu2 %v3360_v1  ;;  %v3775_v1 = vld [vmem:[#allocation7 + $0xf4] sm:$0xf] }
  0xbb   :  { %v924_v3 = vpop.f32.mrf.mxu2  ;;  %v900_v5 = vpop.f32.mrf.mxu0 }
  0xbc   :  { %v925_v4 = vadd.f32 %v924_v3, %v912_v2  ;;  %v913_v6 = vpop.f32.mrf.mxu1  ;;  %v3340_v5 = vor.u32 %v3754_v51, %v3339_v50  ;;  %v3341_v50 = vld [vmem:[#allocation7 + $0x48] sm:$0xf0]  ;;  %v3307_v51 = vld [vmem:[#allocation7] sm:$0xf] }
  0xbd   :  { %v3344_v52 = vor.u32 %v3753_v49, %v3341_v50  ;;  %v3461_v49 = vld [vmem:[#allocation7 + $0x138] sm:$0xf0] }
  0xbe   :  { %1408 = vmatpush.bf16.msrb.mxu3 %v3340_v5  ;;  %v3791_v5 = vld [vmem:[#allocation7 + $0x174] sm:$0xf] }
  0xc0   :  { %v937_v7 = vpop.f32.mrf.mxu3 }
  0xc1   :  { %v938_v9 = vadd.f32 %v937_v7, %v925_v4  ;;  %v3404_v7 = vor.u32 %v3770_v60, %v3403_v58  ;;  %v3459_v58 = vld [vmem:[#allocation7 + $0x130] sm:$0xf]  ;;  %v3784_v60 = vld [vmem:[#allocation7 + $0x134] sm:$0xf0] }
  0xc2   :  { %v3460_v62 = vor.u32 %v3784_v60, %v3459_v58  ;;  %v3381_v58 = vld [vmem:[#allocation7 + $0x98] sm:$0xf0]  ;;  %v3779_v60 = vld [vmem:[#allocation7 + $0x114] sm:$0xf] }
  0xc3   :  { %v926_v8 = vpop.f32.mrf.mxu2  ;;  %1421 = vmatpush.bf16.msra.mxu0 %v3404_v7 }
  0xc4   :  { %v3331_v8 = vld [vmem:[#allocation7 + $0x30] sm:$0xf] }
  0xc8   :  { %v939_v10 = vpop.f32.mrf.mxu3 }
  0xd3   :  { %v950_v12 = vpop.f32.mrf.mxu0 }
  0xd4   :  { %v4075_v13 = vadd.f32 %v950_v12, %v938_v9  ;;  %v963_v14 = vpop.f32.mrf.mxu1  ;;  %v3752_v9 = vld [vmem:[#allocation7 + $0x34] sm:$0xf0]  ;;  %v3395_v12 = vld [vmem:[#allocation7 + $0xb0] sm:$0xf] }
  0xdb   :  { %v976_v63 = vpop.f32.mrf.mxu2  ;;  %v952_v15 = vpop.f32.mrf.mxu0 }
  0xdc   :  { %v965_v23 = vpop.f32.mrf.mxu1  ;;  %v977_v37 = vadd.f32 %v976_v63, %v963_v14  ;;  %v3768_v14 = vld [vmem:[#allocation7 + $0xb4] sm:$0xf0]  ;;  %v1087_v63 = vadd.s32 256, %v1085_v0  ;;  %v3332_v15 = vor.u32 %v3752_v9, %v3331_v8  ;;  %v3333_v0 = vld [vmem:[#allocation7 + $0x38] sm:$0xf0] }
  0xdd   :  { %v3451_v8 = vld [vmem:[#allocation7 + $0x120] sm:$0xf]  ;;  %v3782_v9 = vld [vmem:[#allocation7 + $0x124] sm:$0xf0] }
  0xde   :  { %vm1090_vm0 = vcmp.lt.s32.totalorder %v1087_v63, 288  ;;  %1409 = vmatpush.bf16.msrb.mxu3 %v3332_v15  ;;  %v3773_v63 = vld [vmem:[#allocation7 + $0xe4] sm:$0xf]  ;;  %v3421_v15 = vld [vmem:[#allocation7 + $0xe8] sm:$0xf0] }
  0xe0   :  { %v989_v16 = vpop.f32.mrf.mxu3 }
  0xe1   :  { %v990_v53 = vadd.f32 %v989_v16, %v977_v37  ;;  %v3396_v16 = vor.u32 %v3768_v14, %v3395_v12  ;;  %v3755_v37 = vld [vmem:[#allocation7 + $0x54] sm:$0xf]  ;;  %v3452_v12 = vor.u32 %v3782_v9, %v3451_v8  ;;  %v3325_v14 = vld [vmem:[#allocation7 + $0x28] sm:$0xf0] }
  0xe2   :  { %v3352_v40 = vor.u32 %v3755_v37, %v3349_v39  ;;  %v3309_v37 = vld [vmem:[#allocation7 + $0x8] sm:$0xf0]  ;;  %v3769_v39 = vld [vmem:[#allocation7 + $0xc4] sm:$0xf] }
  0xe3   :  { %v978_v24 = vpop.f32.mrf.mxu2  ;;  %1422 = vmatpush.bf16.msra.mxu0 %v3396_v16 }
  0xe4   :  { %v3323_v24 = vld [vmem:[#allocation7 + $0x20] sm:$0xf]  ;;  %1446 = vmatpush.bf16.msra.mxu2 %v3352_v40  ;;  %v3405_v40 = vld [vmem:[#allocation7 + $0xc8] sm:$0xf0] }
  0xe5   :  { %v3408_v43 = vor.u32 %v3769_v39, %v3405_v40  ;;  %v3611_v39 = vld [vmem:[#allocation8 + $0xe0] sm:$0xf]  ;;  %v3822_v40 = vld [vmem:[#allocation8 + $0xe4] sm:$0xf0] }
  0xe8   :  { %v991_v17 = vpop.f32.mrf.mxu3  ;;  %1447 = vmatpush.bf16.msra.mxu2 %v3344_v52  ;;  %v3389_v52 = vld [vmem:[#allocation7 + $0xa8] sm:$0xf0] }
  0xe9   :  { %v3750_v17 = vld [vmem:[#allocation7 + $0x24] sm:$0xf0] }
  0xea   :  { %v3324_v27 = vor.u32 %v3750_v17, %v3323_v24  ;;  %v3424_v24 = vor.u32 %v3773_v63, %v3421_v15  ;;  %v3789_v17 = vld [vmem:[#allocation7 + $0x164] sm:$0xf] }
  0xec   :  { %1410 = vmatpush.bf16.msrb.mxu3 %v3324_v27  ;;  %v3317_v27 = vld [vmem:[#allocation7 + $0x18] sm:$0xf0] }
  0xf0   :  { %1411 = vmatpush.bf16.msrb.mxu3 %v3316_v44  ;;  %v3469_v44 = vld [vmem:[#allocation7 + $0x148] sm:$0xf0] }
  0xf1   :  { %v3472_v11 = vor.u32 %v3785_v41, %v3469_v44  ;;  %v3805_v44 = vld [vmem:[#allocation8 + $0x64] sm:$0xf] }
  0xf3   :  { %v1002_v18 = vpop.f32.mrf.mxu0 }
  0xf4   :  { %v4077_v19 = vpop.f32.mrf.mxu1  ;;  %v1003_v6 = vadd.f32 %v1002_v18, %v990_v53  ;;  %v3746_v53 = vld [vmem:[#allocation7 + $0x4] sm:$0xf0] }
  0xf5   :  { %v3308_v56 = vor.u32 %v3746_v53, %v3307_v51  ;;  %v3765_v51 = vld [vmem:[#allocation7 + $0xa4] sm:$0xf] }
  0xf6   :  { %v4080_v23 = vadd.f32 %v4077_v19, %v1003_v6  ;;  %v3493_v6 = vld [vmem:[#allocation7 + $0x178] sm:$0xf0]  ;;  %v3781_v53 = vld [vmem:[#allocation7 + $0x124] sm:$0xf]  ;;  %v3392_v54 = vor.u32 %v3765_v51, %v3389_v52 }
  0xf7   :  { %1412 = vmatpush.bf16.msrb.mxu3 %v3308_v56  ;;  %v3496_v7 = vor.u32 %v3791_v5, %v3493_v6  ;;  %v3456_v56 = vor.u32 %v3781_v53, %v3453_v55  ;;  %v3437_v5 = vld [vmem:[#allocation7 + $0x108] sm:$0xf0] }
  0xf8   :  { %v1094_v28 = vmin.f32 %v4075_v13, %v4080_v23  ;;  %v1101_v33 = vmax.f32 %v4075_v13, %v4080_v23 }
  0xfb   :  { %v1028_v20 = vpop.f32.mrf.mxu2  ;;  %v1004_v21 = vpop.f32.mrf.mxu0 }
  0xfc   :  { %v1017_v22 = vpop.f32.mrf.mxu1  ;;  %v3766_v21 = vld [vmem:[#allocation7 + $0xa4] sm:$0xf0] }
 0x100   :  { %v1041_v25 = vpop.f32.mrf.mxu3 }
 0x101   :  { %v1042_v2 = vadd.f32 %v1041_v25, %v1028_v20  ;;  %v3387_v20 = vld [vmem:[#allocation7 + $0xa0] sm:$0xf] }
 0x102   :  { %v3388_v19 = vor.u32 %v3766_v21, %v3387_v20  ;;  %v3443_v21 = vld [vmem:[#allocation7 + $0x110] sm:$0xf] }
 0x103   :  { %v1030_v59 = vpop.f32.mrf.mxu2 }
 0x104   :  { %1423 = vmatpush.bf16.msra.mxu0 %v3388_v19  ;;  %v3413_v19 = vld [vmem:[#allocation7 + $0xd8] sm:$0xf0] }
 0x108   :  { %v1043_v38 = vpop.f32.mrf.mxu3  ;;  %1424 = vmatpush.bf16.msra.mxu0 %v3380_v47  ;;  %v3783_v47 = vld [vmem:[#allocation7 + $0x134] sm:$0xf] }
 0x109   :  { %v3476_v38 = vor.u32 %v3788_v36, %v3475_v35  ;;  %v3778_v35 = vld [vmem:[#allocation7 + $0x104] sm:$0xf0]  ;;  %v3745_v36 = vld [vmem:[#allocation7 + $0x4] sm:$0xf]  ;;  %v3464_v50 = vor.u32 %v3783_v47, %v3461_v49  ;;  %v3613_v47 = vld [vmem:[#allocation8 + $0xe8] sm:$0xf0] }
 0x10a   :  { %v3312_v42 = vor.u32 %v3745_v36, %v3309_v37 }
 0x10b   :  { %1433 = vmatpush.bf16.msra.mxu1 %v3476_v38 }
 0x10c   :  { %1425 = vmatpush.bf16.msra.mxu0 %v3372_v57  ;;  %v3763_v57 = vld [vmem:[#allocation7 + $0x94] sm:$0xf] }
 0x10f   :  { %1434 = vmatpush.bf16.msra.mxu1 %v3468_v48  ;;  %v3400_v48 = vor.u32 %v3767_v45, %v3397_v46  ;;  %v3821_v45 = vld [vmem:[#allocation8 + $0xe4] sm:$0xf] }
 0x110   :  { %1470 = vmatpush.bf16.msrb.mxu0 %v3496_v7 }
 0x113   :  { %v1054_v3 = vpop.f32.mrf.mxu0  ;;  %1435 = vmatpush.bf16.msra.mxu1 %v3460_v62  ;;  %v3384_v62 = vor.u32 %v3763_v57, %v3381_v58 }
 0x114   :  { %v1067_v4 = vpop.f32.mrf.mxu1  ;;  %v1055_v10 = vadd.f32 %v1054_v3, %v1042_v2  ;;  %v3429_v2 = vld [vmem:[#allocation7 + $0xf8] sm:$0xf0]  ;;  %v3336_v3 = vor.u32 %v3751_v61, %v3333_v0 }
 0x115   :  { %v3445_v61 = vld [vmem:[#allocation7 + $0x118] sm:$0xf0] }
 0x116   :  { %v1068_v18 = vadd.f32 %v1067_v4, %v1055_v10  ;;  %v3432_v4 = vor.u32 %v3775_v1, %v3429_v2  ;;  %1448 = vmatpush.bf16.msra.mxu2 %v3336_v3  ;;  %v3749_v10 = vld [vmem:[#allocation7 + $0x24] sm:$0xf]  ;;  %v3448_v0 = vor.u32 %v3779_v60, %v3445_v61  ;;  %v3373_v2 = vld [vmem:[#allocation7 + $0x88] sm:$0xf0] }
 0x117   :  { %v3328_v16 = vor.u32 %v3749_v10, %v3325_v14  ;;  %1436 = vmatpush.bf16.msra.mxu1 %v3452_v12  ;;  %v3761_v1 = vld [vmem:[#allocation7 + $0x84] sm:$0xf] }
 0x118   :  { %1457 = vmatpush.bf16.msra.mxu3 %v3432_v4  ;;  %v3777_v4 = vld [vmem:[#allocation7 + $0x104] sm:$0xf]  ;;  %v3376_v6 = vor.u32 %v3761_v1, %v3373_v2  ;;  %v3603_v1 = vld [vmem:[#allocation8 + $0xd0] sm:$0xf] }
 0x119   :  { %v3440_v7 = vor.u32 %v3777_v4, %v3437_v5  ;;  %v3803_v4 = vld [vmem:[#allocation8 + $0x54] sm:$0xf]  ;;  %v3541_v5 = vld [vmem:[#allocation8 + $0x58] sm:$0xf0] }
 0x11a   :  { %1449 = vmatpush.bf16.msra.mxu2 %v3328_v16 }
 0x11b   :  { %v1080_v22 = vpop.f32.mrf.mxu2  ;;  %v1056_v25 = vpop.f32.mrf.mxu0 }
 0x11c   :  { %v4082_v59 = vadd.f32 %v1080_v22, %v1068_v18  ;;  %v1069_v26 = vpop.f32.mrf.mxu1  ;;  %v3485_v18 = vld [vmem:[#allocation7 + $0x168] sm:$0xf0]  ;;  %v3780_v22 = vld [vmem:[#allocation7 + $0x114] sm:$0xf0]  ;;  %v3747_v25 = vld [vmem:[#allocation7 + $0x14] sm:$0xf]  ;;  %1458 = vmatpush.bf16.msra.mxu3 %v3424_v24 }
 0x11d   :  { %v3488_v20 = vor.u32 %v3789_v17, %v3485_v18  ;;  %v3444_v26 = vor.u32 %v3780_v22, %v3443_v21 }
 0x11e   :  { %v1093_v29 = vsel %vm1090_vm0, %v4082_v59, inf  ;;  %v1100_v32 = vsel %vm1090_vm0, %v4082_v59, -inf }
 0x11f   :  { %v1095_v30 = vmin.f32 %v1094_v28, %v1093_v29  ;;  %v1102_v34 = vmax.f32 %v1101_v33, %v1100_v32  ;;  %v3771_v28 = vld [vmem:[#allocation7 + $0xd4] sm:$0xf]  ;;  %1471 = vmatpush.bf16.msrb.mxu0 %v3488_v20  ;;  %v3320_v29 = vor.u32 %v3747_v25, %v3317_v27  ;;  %v3477_v32 = vld [vmem:[#allocation7 + $0x158] sm:$0xf0]  ;;  %v3435_v33 = vld [vmem:[#allocation7 + $0x100] sm:$0xf]  ;;  %1437 = vmatpush.bf16.msra.mxu1 %v3444_v26 }
 0x120   :  { %v3436_v38 = vor.u32 %v3778_v35, %v3435_v33  ;;  %v3808_v26 = vld [vmem:[#allocation8 + $0x74] sm:$0xf0]  ;;  %v3823_v33 = vld [vmem:[#allocation8 + $0xf4] sm:$0xf]  ;;  %v3547_v35 = vld [vmem:[#allocation8 + $0x60] sm:$0xf] }
 0x121   :  { %1096 = vmin.xlane.f32.xlu0 %v1095_v30  ;;  %v3416_v30 = vor.u32 %v3771_v28, %v3413_v19  ;;  %1450 = vmatpush.bf16.msra.mxu2 %v3320_v29  ;;  %v3824_v28 = vld [vmem:[#allocation8 + $0xf4] sm:$0xf0]  ;;  %v3807_v19 = vld [vmem:[#allocation8 + $0x74] sm:$0xf]  ;;  %v3557_v29 = vld [vmem:[#allocation8 + $0x78] sm:$0xf0] }
 0x123   :  { %v1082_v31 = vpop.f32.mrf.mxu2  ;;  %1459 = vmatpush.bf16.msra.mxu3 %v3416_v30  ;;  %1438 = vmatpush.bf16.msra.mxu1 %v3436_v38  ;;  %v3806_v38 = vld [vmem:[#allocation8 + $0x64] sm:$0xf0] }
 0x124   :  { %v3787_v31 = vld [vmem:[#allocation7 + $0x154] sm:$0xf] }
 0x125   :  { %1451 = vmatpush.bf16.msra.mxu2 %v3312_v42  ;;  %v4104_v42 = vor.u32 %v3806_v38, %v3547_v35  ;;  %v3589_v35 = vld [vmem:[#allocation8 + $0xb8] sm:$0xf0]  ;;  %v3515_v38 = vld [vmem:[#allocation8 + $0x20] sm:$0xf] }
 0x127   :  { %1460 = vmatpush.bf16.msra.mxu3 %v3408_v43  ;;  %v4106_v43 = vor.u32 %v3822_v40, %v3611_v39  ;;  %v3798_v39 = vld [vmem:[#allocation8 + $0x24] sm:$0xf0]  ;;  %v3579_v40 = vld [vmem:[#allocation8 + $0xa0] sm:$0xf] }
 0x129   :  { %1103 = vmax.xlane.f32.xlu0 %v1102_v34  ;;  %v3480_v34 = vor.u32 %v3787_v31, %v3477_v32  ;;  %v4097_v32 = vor.u32 %v3807_v19, %v3557_v29  ;;  %v3799_v19 = vld [vmem:[#allocation8 + $0x34] sm:$0xf]  ;;  %v3525_v29 = vld [vmem:[#allocation8 + $0x38] sm:$0xf0] }
 0x12b   :  { %1472 = vmatpush.bf16.msrb.mxu0 %v3480_v34  ;;  %1461 = vmatpush.bf16.msra.mxu3 %v3400_v48  ;;  %v3621_v34 = vld [vmem:[#allocation8 + $0xf8] sm:$0xf0]  ;;  %v4111_v48 = vor.u32 %v3821_v45, %v3613_v47  ;;  %v3517_v45 = vld [vmem:[#allocation8 + $0x28] sm:$0xf0] }
 0x12c   :  { %v4100_v37 = vor.u32 %v3823_v33, %v3621_v34  ;;  %v4153_v33 = vor.u32 %v3799_v19, %v3525_v29  ;;  %v3815_v34 = vld [vmem:[#allocation8 + $0xb4] sm:$0xf] }
 0x12f   :  { %1473 = vmatpush.bf16.msrb.mxu0 %v3472_v11  ;;  %1462 = vmatpush.bf16.msra.mxu3 %v3392_v54  ;;  %v3549_v11 = vld [vmem:[#allocation8 + $0x68] sm:$0xf0] }
 0x130   :  { %v4109_v46 = vor.u32 %v3805_v44, %v3549_v11  ;;  %v3814_v44 = vld [vmem:[#allocation8 + $0xa4] sm:$0xf0]  ;;  %v3797_v11 = vld [vmem:[#allocation8 + $0x24] sm:$0xf] }
 0x131   :  { %v4163_v47 = vor.u32 %v3814_v44, %v3579_v40 }
 0x133   :  { %1474 = vmatpush.bf16.msrb.mxu0 %v3464_v50  ;;  %1463 = vmatpush.bf16.msra.mxu3 %v3384_v62  ;;  %v3539_v62 = vld [vmem:[#allocation8 + $0x50] sm:$0xf] }
 0x137   :  { %1475 = vmatpush.bf16.msrb.mxu0 %v3456_v56  ;;  %1464 = vmatpush.bf16.msra.mxu3 %v3376_v6 }
 0x13b   :  { %1476 = vmatpush.bf16.msrb.mxu0 %v3448_v0  ;;  %v3804_v0 = vld [vmem:[#allocation8 + $0x54] sm:$0xf0] }
 0x13c   :  { %v4125_v2 = vor.u32 %v3804_v0, %v3539_v62  ;;  %v3509_v62 = vld [vmem:[#allocation8 + $0x18] sm:$0xf0] }
 0x13f   :  { %1477 = vmatpush.bf16.msrb.mxu0 %v3440_v7  ;;  %v4129_v7 = vor.u32 %v3803_v4, %v3541_v5  ;;  %v3573_v4 = vld [vmem:[#allocation8 + $0x98] sm:$0xf0] }
 0x194   :  { %v1097_v3 = vpop.xlane.xlu0 %1096 }
 0x195   :  { %v1108_v12 = vsub.f32 %v4075_v13, %v1097_v3  ;;  %v1109_v14 = vsub.f32 %v4080_v23, %v1097_v3  ;;  %v1110_v63 = vsub.f32 %v4082_v59, %v1097_v3  ;;  %v3555_v13 = vld [vmem:[#allocation8 + $0x70] sm:$0xf] }
 0x196   :  { %v3619_v23 = vld [vmem:[#allocation8 + $0xf0] sm:$0xf]  ;;  %v4093_v59 = vor.u32 %v3808_v26, %v3555_v13  ;;  %v3800_v26 = vld [vmem:[#allocation8 + $0x34] sm:$0xf0] }
 0x197   :  { %v4095_v31 = vor.u32 %v3824_v28, %v3619_v23  ;;  %v3523_v13 = vld [vmem:[#allocation8 + $0x30] sm:$0xf]  ;;  %v3816_v28 = vld [vmem:[#allocation8 + $0xb4] sm:$0xf0] }
 0x198   :  { %1700 = vmatpush.bf16.msrb.mxu1 %v4093_v59  ;;  %v3587_v23 = vld [vmem:[#allocation8 + $0xb0] sm:$0xf] }
 0x199   :  { %1713 = vmatpush.bf16.msrb.mxu2 %v4095_v31 }
 0x19c   :  { %v1104_v8 = vpop.xlane.xlu0 %1103  ;;  %1701 = vmatpush.bf16.msrb.mxu1 %v4104_v42 }
 0x19d   :  { %v1105_v9 = vsub.f32 %v1104_v8, %v1097_v3  ;;  %1714 = vmatpush.bf16.msrb.mxu2 %v4106_v43  ;;  %v3820_v3 = vld [vmem:[#allocation8 + $0xd4] sm:$0xf0]  ;;  %v3819_v8 = vld [vmem:[#allocation8 + $0xd4] sm:$0xf] }
 0x19e   :  { %v4127_v6 = vor.u32 %v3820_v3, %v3603_v1  ;;  %v3811_v3 = vld [vmem:[#allocation8 + $0x94] sm:$0xf] }
 0x19f   :  { %v1106_v10 = vadd.f32 1e-12, %v1105_v9  ;;  %v3605_v9 = vld [vmem:[#allocation8 + $0xd8] sm:$0xf0]  ;;  %v4180_v5 = vor.u32 %v3811_v3, %v3573_v4 }
 0x1a0   :  { %1702 = vmatpush.bf16.msrb.mxu1 %v4125_v2 }
 0x1a1   :  { %3834 = vrcp.f32 %v1106_v10  ;;  %v3531_v10 = vld [vmem:[#allocation8 + $0x40] sm:$0xf]  ;;  %1715 = vmatpush.bf16.msrb.mxu2 %v4127_v6 }
 0x1a7   :  { %v3835_v15 = vpop.eup %3834 }
 0x1a8   :  { %v1111_v16 = vmul.f32 %v3835_v15, %v1108_v12  ;;  %v1112_v24 = vmul.f32 %v3835_v15, %v1109_v14  ;;  %v1113_v17 = vmul.f32 %v3835_v15, %v1110_v63  ;;  %v4132_v12 = vor.u32 %v3819_v8, %v3605_v9  ;;  %v3802_v14 = vld [vmem:[#allocation8 + $0x44] sm:$0xf0]  ;;  %v3595_v63 = vld [vmem:[#allocation8 + $0xc0] sm:$0xf] }
 0x1a9   :  { %v3818_v15 = vld [vmem:[#allocation8 + $0xc4] sm:$0xf0]  ;;  %v3499_v8 = vld [vmem:[#allocation8] sm:$0xf] }
 0x1aa   :  { %v1114_v18 = vpack.c.bf16 %v1111_v16, %v1111_v16  ;;  %v1115_v20 = vpack.c.bf16 %v1112_v24, %v1112_v24  ;;  %v1116_v21 = vpack.c.bf16 %v1113_v17, %v1113_v17  ;;  %v4136_v16 = vor.u32 %v3802_v14, %v3531_v10  ;;  %v3801_v17 = vld [vmem:[#allocation8 + $0x44] sm:$0xf]  ;;  %v3794_v9 = vld [vmem:[#allocation8 + $0x4] sm:$0xf0]  ;;  %v3563_v10 = vld [vmem:[#allocation8 + $0x80] sm:$0xf] }
 0x1ab   :  { %v4138_v24 = vor.u32 %v3818_v15, %v3595_v63  ;;  %v4185_v14 = vor.u32 %v3794_v9, %v3499_v8  ;;  %v3810_v63 = vld [vmem:[#allocation8 + $0x84] sm:$0xf0]  ;;  %v3793_v15 = vld [vmem:[#allocation8 + $0x4] sm:$0xf] }
 0x1ac   :  { %1413 = vmatmul.bf16.vlgmr.msrb.gmra.mxu3 %v1114_v18  ;;  %1426 = vmatmul.bf16.vlgmr.msra.gmra.mxu0 %v1115_v20 }
 0x1ad   :  { %1439 = vmatmul.bf16.vlgmr.msra.gmra.mxu1 %v1116_v21  ;;  %1452 = vmatmul.bf16.vlgmr.msra.gmra.mxu2 %v1114_v18  ;;  %v3533_v18 = vld [vmem:[#allocation8 + $0x48] sm:$0xf0] }
 0x1ae   :  { %1726 = vmatpush.bf16.msrb.mxu3 %v4097_v32  ;;  %1739 = vmatpush.bf16.msra.mxu0 %v4100_v37 }
 0x1af   :  { %1703 = vmatpush.bf16.msrb.mxu1 %v4136_v16  ;;  %1716 = vmatpush.bf16.msrb.mxu2 %v4138_v24 }
 0x1b2   :  { %1727 = vmatpush.bf16.msrb.mxu3 %v4109_v46  ;;  %1740 = vmatpush.bf16.msra.mxu0 %v4111_v48 }
 0x1b6   :  { %1728 = vmatpush.bf16.msrb.mxu3 %v4129_v7  ;;  %1741 = vmatpush.bf16.msra.mxu0 %v4132_v12 }
 0x1bc   :  { %1465 = vmatmul.bf16.vlgmr.msra.gmra.mxu3 %v1115_v20  ;;  %1478 = vmatmul.bf16.vlgmr.msrb.gmra.mxu0 %v1116_v21  ;;  %v3817_v20 = vld [vmem:[#allocation8 + $0xc4] sm:$0xf]  ;;  %v4141_v21 = vor.u32 %v3801_v17, %v3533_v18  ;;  %v3501_v17 = vld [vmem:[#allocation8 + $0x8] sm:$0xf0]  ;;  %v4187_v18 = vor.u32 %v3810_v63, %v3563_v10 }
 0x1be   :  { %1729 = vmatpush.bf16.msrb.mxu3 %v4141_v21 }
 0x1c2   :  { %1730 = vmatpush.bf16.msrb.mxu3 %v4153_v33 }
 0x229   :  { %v1427_v22 = vpop.f32.mrf.mxu0 }
 0x22a   :  { %v1440_v25 = vpop.f32.mrf.mxu1 }
 0x22f   :  { %v1414_v27 = vpop.f32.mrf.mxu3 }
 0x230   :  { %v1453_v30 = vpop.f32.mrf.mxu2  ;;  %v1428_v52 = vadd.f32 %v1427_v22, %v1414_v27  ;;  %v3597_v22 = vld [vmem:[#allocation8 + $0xc8] sm:$0xf0]  ;;  %v4149_v27 = vor.u32 %v3800_v26, %v3523_v13 }
 0x231   :  { %v1429_v36 = vpop.f32.mrf.mxu0  ;;  %v3565_v13 = vld [vmem:[#allocation8 + $0x88] sm:$0xf0] }
 0x232   :  { %v1442_v41 = vpop.f32.mrf.mxu1  ;;  %v4117_v56 = vadd.f32 %v1440_v25, %v1428_v52  ;;  %v4143_v25 = vor.u32 %v3817_v20, %v3597_v22  ;;  %1704 = vmatpush.bf16.msrb.mxu1 %v4149_v27  ;;  %v4156_v36 = vor.u32 %v3815_v34, %v3589_v35  ;;  %v4189_v20 = vor.u32 %v3793_v15, %v3501_v17  ;;  %v3809_v22 = vld [vmem:[#allocation8 + $0x84] sm:$0xf] }
 0x233   :  { %v4161_v41 = vor.u32 %v3798_v39, %v3515_v38  ;;  %v4192_v26 = vor.u32 %v3809_v22, %v3565_v13 }
 0x234   :  { %1742 = vmatpush.bf16.msra.mxu0 %v4143_v25 }
 0x236   :  { %1705 = vmatpush.bf16.msrb.mxu1 %v4161_v41 }
 0x237   :  { %v1416_v49 = vpop.f32.mrf.mxu3 }
 0x238   :  { %v1455_v50 = vpop.f32.mrf.mxu2  ;;  %1743 = vmatpush.bf16.msra.mxu0 %v4156_v36  ;;  %v4165_v49 = vor.u32 %v3797_v11, %v3517_v45 }
 0x239   :  { %v1479_v51 = vpop.f32.mrf.mxu0  ;;  %v3813_v50 = vld [vmem:[#allocation8 + $0xa4] sm:$0xf] }
 0x23a   :  { %1731 = vmatpush.bf16.msrb.mxu3 %v4165_v49 }
 0x23f   :  { %v1466_v53 = vpop.f32.mrf.mxu3 }
 0x240   :  { %v1467_v54 = vadd.f32 %v1466_v53, %v1453_v30  ;;  %v4151_v30 = vor.u32 %v3816_v28, %v3587_v23  ;;  %v3507_v53 = vld [vmem:[#allocation8 + $0x10] sm:$0xf] }
 0x241   :  { %v1481_v55 = vpop.f32.mrf.mxu0 }
 0x242   :  { %v4119_v57 = vadd.f32 %v1479_v51, %v1467_v54  ;;  %1717 = vmatpush.bf16.msrb.mxu2 %v4151_v30  ;;  %v3581_v51 = vld [vmem:[#allocation8 + $0xa8] sm:$0xf0]  ;;  %v3796_v54 = vld [vmem:[#allocation8 + $0x14] sm:$0xf0]  ;;  %v3571_v55 = vld [vmem:[#allocation8 + $0x90] sm:$0xf] }
 0x243   :  { %v4168_v52 = vor.u32 %v3813_v50, %v3581_v51 }
 0x244   :  { %v1483_v58 = vmin.f32 %v4117_v56, %v4119_v57  ;;  %v1486_v61 = vmax.f32 %v4117_v56, %v4119_v57 }
 0x245   :  { %1744 = vmatpush.bf16.msra.mxu0 %v4168_v52 }
 0x246   :  { %1484 = vmin.xlane.f32.xlu1 %v1483_v58  ;;  %1718 = vmatpush.bf16.msrb.mxu2 %v4163_v47  ;;  %v4173_v58 = vor.u32 %v3796_v54, %v3507_v53 }
 0x247   :  { %v1468_v60 = vpop.f32.mrf.mxu3 }
 0x248   :  { %v3812_v60 = vld [vmem:[#allocation8 + $0x94] sm:$0xf0]  ;;  %1706 = vmatpush.bf16.msrb.mxu1 %v4173_v58 }
 0x249   :  { %v4175_v0 = vor.u32 %v3812_v60, %v3571_v55  ;;  %1745 = vmatpush.bf16.msra.mxu0 %v4180_v5 }
 0x24b   :  { %1719 = vmatpush.bf16.msrb.mxu2 %v4175_v0 }
 0x24c   :  { %1707 = vmatpush.bf16.msrb.mxu1 %v4185_v14 }
 0x24d   :  { %1746 = vmatpush.bf16.msra.mxu0 %v4192_v26 }
 0x24e   :  { %1487 = vmax.xlane.f32.xlu1 %v1486_v61  ;;  %v3795_v61 = vld [vmem:[#allocation8 + $0x14] sm:$0xf] }
 0x24f   :  { %v4177_v1 = vor.u32 %v3795_v61, %v3509_v62  ;;  %1720 = vmatpush.bf16.msrb.mxu2 %v4187_v18 }
 0x250   :  { %1814 = vmatpush.bf16.msra.mxu1 %v4093_v59 }
 0x251   :  { %1732 = vmatpush.bf16.msrb.mxu3 %v4177_v1  ;;  %1853 = vmatpush.bf16.msrb.mxu0 %v4100_v37 }
 0x253   :  { %1827 = vmatpush.bf16.msra.mxu2 %v4095_v31 }
 0x254   :  { %1815 = vmatpush.bf16.msra.mxu1 %v4104_v42 }
 0x255   :  { %1733 = vmatpush.bf16.msrb.mxu3 %v4189_v20  ;;  %1854 = vmatpush.bf16.msrb.mxu0 %v4111_v48 }
 0x257   :  { %1828 = vmatpush.bf16.msra.mxu2 %v4106_v43 }
 0x258   :  { %1816 = vmatpush.bf16.msra.mxu1 %v4125_v2 }
 0x259   :  { %1840 = vmatpush.bf16.msra.mxu3 %v4097_v32  ;;  %1855 = vmatpush.bf16.msrb.mxu0 %v4132_v12 }
 0x25b   :  { %1829 = vmatpush.bf16.msra.mxu2 %v4127_v6 }
 0x25c   :  { %1817 = vmatpush.bf16.msra.mxu1 %v4136_v16 }
 0x25d   :  { %1841 = vmatpush.bf16.msra.mxu3 %v4109_v46  ;;  %1856 = vmatpush.bf16.msrb.mxu0 %v4143_v25 }
 0x25f   :  { %1830 = vmatpush.bf16.msra.mxu2 %v4138_v24 }
 0x260   :  { %1818 = vmatpush.bf16.msra.mxu1 %v4149_v27 }
 0x261   :  { %1842 = vmatpush.bf16.msra.mxu3 %v4129_v7  ;;  %1857 = vmatpush.bf16.msrb.mxu0 %v4156_v36 }
 0x263   :  { %1831 = vmatpush.bf16.msra.mxu2 %v4151_v30 }
 0x264   :  { %1819 = vmatpush.bf16.msra.mxu1 %v4161_v41 }
 0x265   :  { %1843 = vmatpush.bf16.msra.mxu3 %v4141_v21  ;;  %1858 = vmatpush.bf16.msrb.mxu0 %v4168_v52 }
 0x267   :  { %1832 = vmatpush.bf16.msra.mxu2 %v4163_v47 }
 0x268   :  { %1820 = vmatpush.bf16.msra.mxu1 %v4173_v58 }
 0x269   :  { %1844 = vmatpush.bf16.msra.mxu3 %v4153_v33  ;;  %1859 = vmatpush.bf16.msrb.mxu0 %v4180_v5 }
 0x26b   :  { %1833 = vmatpush.bf16.msra.mxu2 %v4175_v0 }
 0x26c   :  { %1821 = vmatpush.bf16.msra.mxu1 %v4185_v14 }
 0x26d   :  { %1845 = vmatpush.bf16.msra.mxu3 %v4165_v49  ;;  %1860 = vmatpush.bf16.msrb.mxu0 %v4192_v26 }
 0x26f   :  { %1834 = vmatpush.bf16.msra.mxu2 %v4187_v18 }
 0x271   :  { %1846 = vmatpush.bf16.msra.mxu3 %v4177_v1 }
 0x275   :  { %1847 = vmatpush.bf16.msra.mxu3 %v4189_v20 }
 0x2b9   :  { %v1485_v23 = vpop.xlane.xlu1 %1484 }
 0x2ba   :  { %v1492_v34 = vsub.f32 %v4117_v56, %v1485_v23  ;;  %v1493_v35 = vsub.f32 %v4119_v57, %v1485_v23 }
 0x2c1   :  { %v1488_v28 = vpop.xlane.xlu1 %1487 }
 0x2c2   :  { %v1489_v19 = vsub.f32 %v1488_v28, %v1485_v23 }
 0x2c4   :  { %v1490_v29 = vadd.f32 1e-12, %v1489_v19 }
 0x2c6   :  { %3836 = vrcp.f32 %v1490_v29 }
 0x2cc   :  { %v3837_v38 = vpop.eup %3836 }
 0x2cd   :  { %v1494_v39 = vmul.f32 %v3837_v38, %v1492_v34  ;;  %v1495_v40 = vmul.f32 %v3837_v38, %v1493_v35 }
 0x2cf   :  { %v4227_v44 = vmul.f32 1.003656, %v1494_v39  ;;  %v4229_v11 = vmul.f32 1.003656, %v1495_v40 }
 0x2d1   :  { %v1536_v56 = vpack.c.bf16 %v4227_v44, %v4227_v44  ;;  %v1537_v57 = vpack.c.bf16 %v4229_v11, %v4229_v11  ;;  %v1538_v51 = vmul.f32 0.0036559876, %v4227_v44  ;;  %v1539_v55 = vmul.f32 0.0036559876, %v4229_v11 }
 0x2d2   :  { %v1530_v22 = vmul.f32 %v4227_v44, %v4227_v44  ;;  %v1531_v13 = vmul.f32 %v4229_v11, %v4229_v11 }
 0x2d3   :  { %1708 = vmatmul.bf16.vlgmr.msrb.gmra.mxu1 %v1536_v56  ;;  %1721 = vmatmul.bf16.vlgmr.msrb.gmra.mxu2 %v1537_v57 }
 0x2d4   :  { %1734 = vmatmul.bf16.vlgmr.msrb.gmra.mxu3 %v1536_v56  ;;  %1747 = vmatmul.bf16.vlgmr.msra.gmra.mxu0 %v1537_v57  ;;  %v1532_v23 = vadd.f32 %v1531_v13, %v1530_v22 }
 0x2d5   :  { %1928 = vmatpush.bf16.msrb.mxu1 %v4093_v59  ;;  %1941 = vmatpush.bf16.msrb.mxu2 %v4095_v31 }
 0x2d6   :  { %1954 = vmatpush.bf16.msrb.mxu3 %v4097_v32  ;;  %1967 = vmatpush.bf16.msra.mxu0 %v4100_v37 }
 0x2d9   :  { %1929 = vmatpush.bf16.msrb.mxu1 %v4104_v42  ;;  %1942 = vmatpush.bf16.msrb.mxu2 %v4106_v43 }
 0x2da   :  { %1955 = vmatpush.bf16.msrb.mxu3 %v4109_v46  ;;  %1968 = vmatpush.bf16.msra.mxu0 %v4111_v48 }
 0x2dd   :  { %1930 = vmatpush.bf16.msrb.mxu1 %v4125_v2  ;;  %1943 = vmatpush.bf16.msrb.mxu2 %v4127_v6 }
 0x2de   :  { %1956 = vmatpush.bf16.msrb.mxu3 %v4129_v7  ;;  %1969 = vmatpush.bf16.msra.mxu0 %v4132_v12 }
 0x2e1   :  { %1931 = vmatpush.bf16.msrb.mxu1 %v4136_v16  ;;  %1944 = vmatpush.bf16.msrb.mxu2 %v4138_v24 }
 0x2e2   :  { %1957 = vmatpush.bf16.msrb.mxu3 %v4141_v21  ;;  %1970 = vmatpush.bf16.msra.mxu0 %v4143_v25 }
 0x2e5   :  { %1932 = vmatpush.bf16.msrb.mxu1 %v4149_v27  ;;  %1945 = vmatpush.bf16.msrb.mxu2 %v4151_v30 }
 0x2e6   :  { %1958 = vmatpush.bf16.msrb.mxu3 %v4153_v33  ;;  %1971 = vmatpush.bf16.msra.mxu0 %v4156_v36 }
 0x2e9   :  { %1933 = vmatpush.bf16.msrb.mxu1 %v4161_v41  ;;  %1946 = vmatpush.bf16.msrb.mxu2 %v4163_v47 }
 0x2ea   :  { %1959 = vmatpush.bf16.msrb.mxu3 %v4165_v49  ;;  %1972 = vmatpush.bf16.msra.mxu0 %v4168_v52 }
 0x2ed   :  { %1934 = vmatpush.bf16.msrb.mxu1 %v4173_v58  ;;  %1947 = vmatpush.bf16.msrb.mxu2 %v4175_v0 }
 0x2ee   :  { %1960 = vmatpush.bf16.msrb.mxu3 %v4177_v1  ;;  %1973 = vmatpush.bf16.msra.mxu0 %v4180_v5 }
 0x2f1   :  { %1935 = vmatpush.bf16.msrb.mxu1 %v4185_v14  ;;  %1948 = vmatpush.bf16.msrb.mxu2 %v4187_v18 }
 0x2f2   :  { %1961 = vmatpush.bf16.msrb.mxu3 %v4189_v20  ;;  %1974 = vmatpush.bf16.msra.mxu0 %v4192_v26 }
 0x350   :  { %v1709_v45 = vpop.f32.mrf.mxu1 }
 0x351   :  { %v1748_v50 = vpop.f32.mrf.mxu0  ;;  %v1710_v53 = vadd.f32 %v1709_v45, %v1538_v51 }
 0x356   :  { %v1722_v54 = vpop.f32.mrf.mxu2 }
 0x357   :  { %v1735_v60 = vpop.f32.mrf.mxu3  ;;  %v1723_v61 = vadd.f32 %v1722_v54, %v1710_v53 }
 0x358   :  { %v1736_v62 = vadd.f32 %v1735_v60, %v1539_v55  ;;  %v1711_v3 = vpop.f32.mrf.mxu1 }
 0x359   :  { %v1750_v4 = vpop.f32.mrf.mxu0  ;;  %v1752_v9 = vmul.f32 %v1723_v61, %v4227_v44 }
 0x35a   :  { %v1749_v8 = vadd.f32 %v1748_v50, %v1736_v62 }
 0x35c   :  { %v1753_v10 = vmul.f32 %v1749_v8, %v4229_v11 }
 0x35e   :  { %v1724_v63 = vpop.f32.mrf.mxu2  ;;  %v1754_v15 = vadd.f32 %v1753_v10, %v1752_v9 }
 0x35f   :  { %v1737_v17 = vpop.f32.mrf.mxu3 }
 0x360   :  { %1755 = vadd.xlane.f32.xlu2 %v1754_v15 }
 0x368   :  { %1533 = vadd.xlane.f32.xlu2 %v1532_v23 }
 0x3d3   :  { %v1756_v28 = vpop.xlane.xlu2 %1755 }
 0x3d4   :  { %v1757_v19 = vadd.f32 1e-30, %v1756_v28 }
 0x3d6   :  { %3838 = vrcp.f32 %v1757_v19  ;;  %v1769_v38 = vand.u32 2147483648, %v1757_v19  ;;  %v1767_v40 = vand.u32 2147483647, %v1757_v19  ;;  %vm1763_vm2 = vweird.f32 %v1757_v19 }
 0x3d8   :  { %v1770_v57 = vor.u32 1.1754944e-38, %v1769_v38  ;;  %vm1768_vm4 = vcmp.eq.f32.partialorder %v1767_v40, 8.507059e+37 }
 0x3db   :  { %v4279_v50 = vpop.xlane.xlu2 %1533 }
 0x3dc   :  { %v3839_v29 = vpop.eup %3838  ;;  %vm1535_vm5 = vcmp.gt.f32.partialorder %v4279_v50, 1e-10  ;;  %v1787_v63 = vadd.f32 1e-30, %v4279_v50 }
 0x3dd   :  { %v1759_v34 = vmul.f32 %v3839_v29, %v1757_v19  ;;  %vm1764_vm1 = vweird.f32 %v3839_v29 }
 0x3de   :  { %vm1765_vm3 = vmor %vm1763_vm2, %vm1764_vm1  ;;  %3840 = vrcp.f32 %v1787_v63  ;;  %v1799_v13 = vand.u32 2147483648, %v1787_v63  ;;  %vm1793_vm7 = vweird.f32 %v1787_v63  ;;  %v1797_v23 = vand.u32 2147483647, %v1787_v63 }
 0x3df   :  { %v1760_v35 = vsub.f32 1.0, %v1759_v34 }
 0x3e0   :  { %v1800_v19 = vor.u32 1.1754944e-38, %v1799_v13  ;;  %vm1798_vm9 = vcmp.eq.f32.partialorder %v1797_v23, 8.507059e+37 }
 0x3e1   :  { %v1761_v39 = vmul.f32 %v3839_v29, %v1760_v35 }
 0x3e3   :  { %v1762_v56 = vadd.f32 %v3839_v29, %v1761_v39 }
 0x3e5   :  { %v1766_v45 = vsel %vm1765_vm3, %v3839_v29, %v1762_v56 }
 0x3e6   :  { %v1771_v51 = vsel %vm1768_vm4, %v1770_v57, %v1766_v45 }
 0x3e7   :  { %v1772_v53 = vmul.f32 %v1771_v51, %v4279_v50 }
 0x3e9   :  { %v4285_v54 = vsel %vm1535_vm5, %v1772_v53, 0.0 }
 0x3ea   :  { %v1778_v55 = vmul.f32 %v4285_v54, %v1723_v61  ;;  %v1779_v60 = vmul.f32 %v4285_v54, %v1749_v8  ;;  %v3841_v61 = vpop.eup %3840 }
 0x3eb   :  { %v1789_v15 = vmul.f32 %v3841_v61, %v1787_v63  ;;  %vm1794_vm6 = vweird.f32 %v3841_v61 }
 0x3ec   :  { %v4290_v62 = vsub.f32 %v4227_v44, %v1778_v55  ;;  %v4293_v3 = vsub.f32 %v4229_v11, %v1779_v60  ;;  %vm1795_vm8 = vmor %vm1793_vm7, %vm1794_vm6 }
 0x3ed   :  { %v1790_v8 = vsub.f32 1.0, %v1789_v15 }
 0x3ee   :  { %v1782_v4 = vmul.f32 %v4290_v62, %v4290_v62  ;;  %v1783_v9 = vmul.f32 %v4293_v3, %v4293_v3 }
 0x3ef   :  { %v1791_v17 = vmul.f32 %v3841_v61, %v1790_v8 }
 0x3f0   :  { %v1784_v10 = vadd.f32 %v1783_v9, %v1782_v4 }
 0x3f1   :  { %v1792_v22 = vadd.f32 %v3841_v61, %v1791_v17 }
 0x3f2   :  { %1785 = vadd.xlane.f32.xlu0 %v1784_v10 }
 0x3f3   :  { %v1796_v28 = vsel %vm1795_vm8, %v3841_v61, %v1792_v22 }
 0x3f4   :  { %v1801_v29 = vsel %vm1798_vm9, %v1800_v19, %v1796_v28 }
 0x465   :  { %v4300_v34 = vpop.xlane.xlu0 %1785 }
 0x466   :  { %v1802_v35 = vmul.f32 %v1801_v29, %v4300_v34 }
 0x468   :  { %v1803_v38 = vsel %vm1535_vm5, %v1802_v35, 0.0 }
 0x469   :  { %v1804_v39 = vmul.f32 %v1803_v38, %v4227_v44  ;;  %v1805_v40 = vmul.f32 %v1803_v38, %v4229_v11 }
 0x46b   :  { %v4308_v56 = vadd.f32 %v1804_v39, %v4290_v62  ;;  %v4311_v57 = vadd.f32 %v1805_v40, %v4293_v3 }
 0x46d   :  { %v1810_v45 = vpack.c.bf16 %v4308_v56, %v4308_v56  ;;  %v1811_v51 = vpack.c.bf16 %v4311_v57, %v4311_v57  ;;  %v1812_v60 = vmul.f32 0.0036559876, %v4308_v56  ;;  %v1813_v10 = vmul.f32 0.0036559876, %v4311_v57 }
 0x46f   :  { %1822 = vmatmul.bf16.vlgmr.msra.gmra.mxu1 %v1810_v45  ;;  %1835 = vmatmul.bf16.vlgmr.msra.gmra.mxu2 %v1811_v51 }
 0x470   :  { %1848 = vmatmul.bf16.vlgmr.msra.gmra.mxu3 %v1810_v45  ;;  %1861 = vmatmul.bf16.vlgmr.msrb.gmra.mxu0 %v1811_v51 }
 0x471   :  { %2042 = vmatpush.bf16.msra.mxu1 %v4093_v59  ;;  %2055 = vmatpush.bf16.msra.mxu2 %v4095_v31 }
 0x472   :  { %2068 = vmatpush.bf16.msra.mxu3 %v4097_v32  ;;  %2081 = vmatpush.bf16.msrb.mxu0 %v4100_v37 }
 0x475   :  { %2043 = vmatpush.bf16.msra.mxu1 %v4104_v42  ;;  %2056 = vmatpush.bf16.msra.mxu2 %v4106_v43 }
 0x476   :  { %2069 = vmatpush.bf16.msra.mxu3 %v4109_v46  ;;  %2082 = vmatpush.bf16.msrb.mxu0 %v4111_v48 }
 0x479   :  { %2044 = vmatpush.bf16.msra.mxu1 %v4125_v2  ;;  %2057 = vmatpush.bf16.msra.mxu2 %v4127_v6 }
 0x47a   :  { %2070 = vmatpush.bf16.msra.mxu3 %v4129_v7  ;;  %2083 = vmatpush.bf16.msrb.mxu0 %v4132_v12 }
 0x47d   :  { %2045 = vmatpush.bf16.msra.mxu1 %v4136_v16  ;;  %2058 = vmatpush.bf16.msra.mxu2 %v4138_v24 }
 0x47e   :  { %2071 = vmatpush.bf16.msra.mxu3 %v4141_v21  ;;  %2084 = vmatpush.bf16.msrb.mxu0 %v4143_v25 }
 0x481   :  { %2046 = vmatpush.bf16.msra.mxu1 %v4149_v27  ;;  %2059 = vmatpush.bf16.msra.mxu2 %v4151_v30 }
 0x482   :  { %2072 = vmatpush.bf16.msra.mxu3 %v4153_v33  ;;  %2085 = vmatpush.bf16.msrb.mxu0 %v4156_v36 }
 0x485   :  { %2047 = vmatpush.bf16.msra.mxu1 %v4161_v41  ;;  %2060 = vmatpush.bf16.msra.mxu2 %v4163_v47 }
 0x486   :  { %2073 = vmatpush.bf16.msra.mxu3 %v4165_v49  ;;  %2086 = vmatpush.bf16.msrb.mxu0 %v4168_v52 }
 0x489   :  { %2048 = vmatpush.bf16.msra.mxu1 %v4173_v58  ;;  %2061 = vmatpush.bf16.msra.mxu2 %v4175_v0 }
 0x48a   :  { %2074 = vmatpush.bf16.msra.mxu3 %v4177_v1  ;;  %2087 = vmatpush.bf16.msrb.mxu0 %v4180_v5 }
 0x48d   :  { %2049 = vmatpush.bf16.msra.mxu1 %v4185_v14  ;;  %2062 = vmatpush.bf16.msra.mxu2 %v4187_v18 }
 0x48e   :  { %2075 = vmatpush.bf16.msra.mxu3 %v4189_v20  ;;  %2088 = vmatpush.bf16.msrb.mxu0 %v4192_v26 }
 0x4ec   :  { %v1823_v53 = vpop.f32.mrf.mxu1 }
 0x4ed   :  { %v1862_v55 = vpop.f32.mrf.mxu0  ;;  %v1824_v4 = vadd.f32 %v1823_v53, %v1812_v60 }
 0x4f2   :  { %v1836_v9 = vpop.f32.mrf.mxu2 }
 0x4f3   :  { %v1849_v63 = vpop.f32.mrf.mxu3  ;;  %v1837_v61 = vadd.f32 %v1836_v9, %v1824_v4  ;;  %v4357_v9 = vsel %vm1535_vm5, %v4300_v34, %v4279_v50 }
 0x4f4   :  { %v1850_v15 = vadd.f32 %v1849_v63, %v1813_v10  ;;  %v1825_v8 = vpop.f32.mrf.mxu1  ;;  %vm1809_vm14 = vcmp.gt.f32.partialorder %v4357_v9, 1e-10 }
 0x4f5   :  { %v1864_v17 = vpop.f32.mrf.mxu0  ;;  %v1866_v13 = vmul.f32 %v1837_v61, %v4308_v56  ;;  %v1774_v8 = vmul.f32 %v4285_v54, %v4227_v44 }
 0x4f6   :  { %v1863_v22 = vadd.f32 %v1862_v55, %v1850_v15  ;;  %v1775_v17 = vmul.f32 %v4285_v54, %v4229_v11 }
 0x4f8   :  { %v1867_v23 = vmul.f32 %v1863_v22, %v4311_v57 }
 0x4fa   :  { %v1838_v28 = vpop.f32.mrf.mxu2  ;;  %v1868_v19 = vadd.f32 %v1867_v23, %v1866_v13 }
 0x4fb   :  { %v1851_v29 = vpop.f32.mrf.mxu3 }
 0x4fc   :  { %1869 = vadd.xlane.f32.xlu1 %v1868_v19 }
 0x56f   :  { %v1870_v35 = vpop.xlane.xlu1 %1869 }
 0x570   :  { %v1871_v38 = vadd.f32 1e-30, %v1870_v35 }
 0x572   :  { %3842 = vrcp.f32 %v1871_v38  ;;  %v1883_v51 = vand.u32 2147483648, %v1871_v38  ;;  %v1881_v60 = vand.u32 2147483647, %v1871_v38  ;;  %vm1877_vm11 = vweird.f32 %v1871_v38 }
 0x574   :  { %v1884_v55 = vor.u32 1.1754944e-38, %v1883_v51  ;;  %vm1882_vm13 = vcmp.eq.f32.partialorder %v1881_v60, 8.507059e+37 }
 0x578   :  { %v3843_v39 = vpop.eup %3842 }
 0x579   :  { %v1873_v40 = vmul.f32 %v3843_v39, %v1871_v38  ;;  %vm1878_vm10 = vweird.f32 %v3843_v39 }
 0x57a   :  { %vm1879_vm12 = vmor %vm1877_vm11, %vm1878_vm10 }
 0x57b   :  { %v1874_v45 = vsub.f32 1.0, %v1873_v40 }
 0x57d   :  { %v1875_v53 = vmul.f32 %v3843_v39, %v1874_v45 }
 0x57f   :  { %v1876_v4 = vadd.f32 %v3843_v39, %v1875_v53 }
 0x581   :  { %v1880_v10 = vsel %vm1879_vm12, %v3843_v39, %v1876_v4 }
 0x582   :  { %v1885_v63 = vsel %vm1882_vm13, %v1884_v55, %v1880_v10 }
 0x583   :  { %v1886_v15 = vmul.f32 %v1885_v63, %v4357_v9 }
 0x585   :  { %v1887_v13 = vsel %vm1809_vm14, %v1886_v15, 0.0 }
 0x586   :  { %v1892_v23 = vmul.f32 %v1887_v13, %v1837_v61  ;;  %v1893_v28 = vmul.f32 %v1887_v13, %v1863_v22  ;;  %v1888_v50 = vmul.f32 %v1887_v13, %v4308_v56  ;;  %v1889_v34 = vmul.f32 %v1887_v13, %v4311_v57 }
 0x587   :  { %v1901_v22 = vadd.f32 1e-30, %v4357_v9 }
 0x588   :  { %v4370_v19 = vsub.f32 %v4290_v62, %v1892_v23  ;;  %v4373_v29 = vsub.f32 %v4293_v3, %v1893_v28  ;;  %v4375_v35 = vadd.f32 %v1888_v50, %v1774_v8  ;;  %v4377_v44 = vadd.f32 %v1889_v34, %v1775_v17 }
 0x589   :  { %3844 = vrcp.f32 %v1901_v22  ;;  %v1913_v45 = vand.u32 2147483648, %v1901_v22  ;;  %vm1907_vm0 = vweird.f32 %v1901_v22  ;;  %v1911_v51 = vand.u32 2147483647, %v1901_v22 }
 0x58a   :  { %v1896_v11 = vmul.f32 %v4370_v19, %v4370_v19  ;;  %v1897_v54 = vmul.f32 %v4373_v29, %v4373_v29 }
 0x58b   :  { %v1914_v60 = vor.u32 1.1754944e-38, %v1913_v45  ;;  %vm1912_vm2 = vcmp.eq.f32.partialorder %v1911_v51, 8.507059e+37 }
 0x58c   :  { %v1898_v61 = vadd.f32 %v1897_v54, %v1896_v11 }
 0x58e   :  { %1899 = vadd.xlane.f32.xlu2 %v1898_v61 }
 0x58f   :  { %v3845_v62 = vpop.eup %3844 }
 0x590   :  { %v1903_v38 = vmul.f32 %v3845_v62, %v1901_v22  ;;  %vm1908_vm15 = vweird.f32 %v3845_v62 }
 0x591   :  { %vm1909_vm1 = vmor %vm1907_vm0, %vm1908_vm15 }
 0x592   :  { %v1904_v39 = vsub.f32 1.0, %v1903_v38 }
 0x594   :  { %v1905_v3 = vmul.f32 %v3845_v62, %v1904_v39 }
 0x596   :  { %v1906_v40 = vadd.f32 %v3845_v62, %v1905_v3 }
 0x598   :  { %v1910_v53 = vsel %vm1909_vm1, %v3845_v62, %v1906_v40 }
 0x599   :  { %v1915_v4 = vsel %vm1912_vm2, %v1914_v60, %v1910_v53 }
 0x601   :  { %v4384_v55 = vpop.xlane.xlu2 %1899 }
 0x602   :  { %v1916_v10 = vmul.f32 %v1915_v4, %v4384_v55 }
 0x604   :  { %v1917_v63 = vsel %vm1809_vm14, %v1916_v10, 0.0 }
 0x605   :  { %v1918_v15 = vmul.f32 %v1917_v63, %v4308_v56  ;;  %v1919_v8 = vmul.f32 %v1917_v63, %v4311_v57 }
 0x607   :  { %v4392_v17 = vadd.f32 %v1918_v15, %v4370_v19  ;;  %v4395_v13 = vadd.f32 %v1919_v8, %v4373_v29 }
 0x609   :  { %v1924_v23 = vpack.c.bf16 %v4392_v17, %v4392_v17  ;;  %v1925_v28 = vpack.c.bf16 %v4395_v13, %v4395_v13  ;;  %v1926_v50 = vmul.f32 0.0036559876, %v4392_v17  ;;  %v1927_v54 = vmul.f32 0.0036559876, %v4395_v13 }
 0x60b   :  { %1936 = vmatmul.bf16.vlgmr.msrb.gmra.mxu1 %v1924_v23  ;;  %1949 = vmatmul.bf16.vlgmr.msrb.gmra.mxu2 %v1925_v28 }
 0x60c   :  { %1962 = vmatmul.bf16.vlgmr.msrb.gmra.mxu3 %v1924_v23  ;;  %1975 = vmatmul.bf16.vlgmr.msra.gmra.mxu0 %v1925_v28 }
 0x60d   :  { %2156 = vmatpush.bf16.msrb.mxu1 %v4093_v59  ;;  %2169 = vmatpush.bf16.msrb.mxu2 %v4095_v31 }
 0x60e   :  { %2182 = vmatpush.bf16.msrb.mxu3 %v4097_v32  ;;  %2195 = vmatpush.bf16.msra.mxu0 %v4100_v37 }
 0x611   :  { %2157 = vmatpush.bf16.msrb.mxu1 %v4104_v42  ;;  %2170 = vmatpush.bf16.msrb.mxu2 %v4106_v43 }
 0x612   :  { %2183 = vmatpush.bf16.msrb.mxu3 %v4109_v46  ;;  %2196 = vmatpush.bf16.msra.mxu0 %v4111_v48 }
 0x615   :  { %2158 = vmatpush.bf16.msrb.mxu1 %v4125_v2  ;;  %2171 = vmatpush.bf16.msrb.mxu2 %v4127_v6 }
 0x616   :  { %2184 = vmatpush.bf16.msrb.mxu3 %v4129_v7  ;;  %2197 = vmatpush.bf16.msra.mxu0 %v4132_v12 }
 0x619   :  { %2159 = vmatpush.bf16.msrb.mxu1 %v4136_v16  ;;  %2172 = vmatpush.bf16.msrb.mxu2 %v4138_v24 }
 0x61a   :  { %2185 = vmatpush.bf16.msrb.mxu3 %v4141_v21  ;;  %2198 = vmatpush.bf16.msra.mxu0 %v4143_v25 }
 0x61d   :  { %2160 = vmatpush.bf16.msrb.mxu1 %v4149_v27  ;;  %2173 = vmatpush.bf16.msrb.mxu2 %v4151_v30 }
 0x61e   :  { %2186 = vmatpush.bf16.msrb.mxu3 %v4153_v33  ;;  %2199 = vmatpush.bf16.msra.mxu0 %v4156_v36 }
 0x621   :  { %2161 = vmatpush.bf16.msrb.mxu1 %v4161_v41  ;;  %2174 = vmatpush.bf16.msrb.mxu2 %v4163_v47 }
 0x622   :  { %2187 = vmatpush.bf16.msrb.mxu3 %v4165_v49  ;;  %2200 = vmatpush.bf16.msra.mxu0 %v4168_v52 }
 0x625   :  { %2162 = vmatpush.bf16.msrb.mxu1 %v4173_v58  ;;  %2175 = vmatpush.bf16.msrb.mxu2 %v4175_v0 }
 0x626   :  { %2188 = vmatpush.bf16.msrb.mxu3 %v4177_v1  ;;  %2201 = vmatpush.bf16.msra.mxu0 %v4180_v5 }
 0x629   :  { %2163 = vmatpush.bf16.msrb.mxu1 %v4185_v14  ;;  %2176 = vmatpush.bf16.msrb.mxu2 %v4187_v18 }
 0x62a   :  { %2189 = vmatpush.bf16.msrb.mxu3 %v4189_v20  ;;  %2202 = vmatpush.bf16.msra.mxu0 %v4192_v26 }
 0x688   :  { %v1937_v56 = vpop.f32.mrf.mxu1 }
 0x689   :  { %v1976_v57 = vpop.f32.mrf.mxu0  ;;  %v1938_v34 = vadd.f32 %v1937_v56, %v1926_v50 }
 0x68e   :  { %v1950_v11 = vpop.f32.mrf.mxu2 }
 0x68f   :  { %v1963_v61 = vpop.f32.mrf.mxu3  ;;  %v1951_v22 = vadd.f32 %v1950_v11, %v1938_v34  ;;  %v4441_v34 = vsel %vm1809_vm14, %v4384_v55, %v4357_v9 }
 0x690   :  { %v1964_v62 = vadd.f32 %v1963_v61, %v1927_v54  ;;  %v1939_v38 = vpop.f32.mrf.mxu1  ;;  %vm1923_vm7 = vcmp.gt.f32.partialorder %v4441_v34, 1e-10 }
 0x691   :  { %v1978_v39 = vpop.f32.mrf.mxu0  ;;  %v1980_v40 = vmul.f32 %v1951_v22, %v4392_v17 }
 0x692   :  { %v1977_v3 = vadd.f32 %v1976_v57, %v1964_v62 }
 0x694   :  { %v1981_v45 = vmul.f32 %v1977_v3, %v4395_v13 }
 0x696   :  { %v1952_v51 = vpop.f32.mrf.mxu2  ;;  %v1982_v53 = vadd.f32 %v1981_v45, %v1980_v40 }
 0x697   :  { %v1965_v60 = vpop.f32.mrf.mxu3 }
 0x698   :  { %1983 = vadd.xlane.f32.xlu0 %v1982_v53 }
 0x70b   :  { %v1984_v4 = vpop.xlane.xlu0 %1983 }
 0x70c   :  { %v1985_v10 = vadd.f32 1e-30, %v1984_v4 }
 0x70e   :  { %3846 = vrcp.f32 %v1985_v10  ;;  %v1997_v23 = vand.u32 2147483648, %v1985_v10  ;;  %v1995_v56 = vand.u32 2147483647, %v1985_v10  ;;  %vm1991_vm4 = vweird.f32 %v1985_v10 }
 0x710   :  { %v1998_v57 = vor.u32 1.1754944e-38, %v1997_v23  ;;  %vm1996_vm6 = vcmp.eq.f32.partialorder %v1995_v56, 8.507059e+37 }
 0x714   :  { %v3847_v63 = vpop.eup %3846 }
 0x715   :  { %v1987_v15 = vmul.f32 %v3847_v63, %v1985_v10  ;;  %vm1992_vm3 = vweird.f32 %v3847_v63 }
 0x716   :  { %vm1993_vm5 = vmor %vm1991_vm4, %vm1992_vm3 }
 0x717   :  { %v1988_v8 = vsub.f32 1.0, %v1987_v15 }
 0x719   :  { %v1989_v28 = vmul.f32 %v3847_v63, %v1988_v8 }
 0x71b   :  { %v1990_v50 = vadd.f32 %v3847_v63, %v1989_v28 }
 0x71d   :  { %v1994_v11 = vsel %vm1993_vm5, %v3847_v63, %v1990_v50 }
 0x71e   :  { %v1999_v54 = vsel %vm1996_vm6, %v1998_v57, %v1994_v11 }
 0x71f   :  { %v2000_v61 = vmul.f32 %v1999_v54, %v4441_v34 }
 0x721   :  { %v2001_v62 = vsel %vm1923_vm7, %v2000_v61, 0.0 }
 0x722   :  { %v2006_v38 = vmul.f32 %v2001_v62, %v1951_v22  ;;  %v2007_v39 = vmul.f32 %v2001_v62, %v1977_v3  ;;  %v2002_v40 = vmul.f32 %v2001_v62, %v4392_v17  ;;  %v2003_v45 = vmul.f32 %v2001_v62, %v4395_v13 }
 0x724   :  { %v4450_v51 = vsub.f32 %v4370_v19, %v2006_v38  ;;  %v4453_v9 = vsub.f32 %v4373_v29, %v2007_v39  ;;  %v4456_v55 = vadd.f32 %v2002_v40, %v4375_v35  ;;  %v4459_v53 = vadd.f32 %v2003_v45, %v4377_v44 }
 0x725   :  { %v2015_v19 = vadd.f32 1e-30, %v4441_v34 }
 0x726   :  { %v2010_v22 = vmul.f32 %v4450_v51, %v4450_v51  ;;  %v2011_v3 = vmul.f32 %v4453_v9, %v4453_v9 }
 0x727   :  { %3848 = vrcp.f32 %v2015_v19  ;;  %v2027_v15 = vand.u32 2147483648, %v2015_v19  ;;  %vm2021_vm9 = vweird.f32 %v2015_v19  ;;  %v2025_v44 = vand.u32 2147483647, %v2015_v19 }
 0x728   :  { %v2012_v60 = vadd.f32 %v2011_v3, %v2010_v22 }
 0x729   :  { %v2028_v23 = vor.u32 1.1754944e-38, %v2027_v15  ;;  %vm2026_vm11 = vcmp.eq.f32.partialorder %v2025_v44, 8.507059e+37 }
 0x72a   :  { %2013 = vadd.xlane.f32.xlu1 %v2012_v60 }
 0x72d   :  { %v3849_v4 = vpop.eup %3848 }
 0x72e   :  { %v2017_v29 = vmul.f32 %v3849_v4, %v2015_v19  ;;  %vm2022_vm8 = vweird.f32 %v3849_v4 }
 0x72f   :  { %vm2023_vm10 = vmor %vm2021_vm9, %vm2022_vm8 }
 0x730   :  { %v2018_v10 = vsub.f32 1.0, %v2017_v29 }
 0x732   :  { %v2019_v63 = vmul.f32 %v3849_v4, %v2018_v10 }
 0x734   :  { %v2020_v35 = vadd.f32 %v3849_v4, %v2019_v63 }
 0x736   :  { %v2024_v8 = vsel %vm2023_vm10, %v3849_v4, %v2020_v35 }
 0x737   :  { %v2029_v28 = vsel %vm2026_vm11, %v2028_v23, %v2024_v8 }
 0x79d   :  { %v4466_v56 = vpop.xlane.xlu1 %2013 }
 0x79e   :  { %v2030_v50 = vmul.f32 %v2029_v28, %v4466_v56 }
 0x7a0   :  { %v2031_v57 = vsel %vm1923_vm7, %v2030_v50, 0.0 }
 0x7a1   :  { %v2032_v11 = vmul.f32 %v2031_v57, %v4392_v17  ;;  %v2033_v54 = vmul.f32 %v2031_v57, %v4395_v13 }
 0x7a3   :  { %v4474_v61 = vadd.f32 %v2032_v11, %v4450_v51  ;;  %v4477_v62 = vadd.f32 %v2033_v54, %v4453_v9 }
 0x7a5   :  { %v2038_v38 = vpack.c.bf16 %v4474_v61, %v4474_v61  ;;  %v2039_v39 = vpack.c.bf16 %v4477_v62, %v4477_v62  ;;  %v2040_v40 = vmul.f32 0.0036559876, %v4474_v61  ;;  %v2041_v3 = vmul.f32 0.0036559876, %v4477_v62 }
 0x7a7   :  { %2050 = vmatmul.bf16.vlgmr.msra.gmra.mxu1 %v2038_v38  ;;  %2063 = vmatmul.bf16.vlgmr.msra.gmra.mxu2 %v2039_v39 }
 0x7a8   :  { %2076 = vmatmul.bf16.vlgmr.msra.gmra.mxu3 %v2038_v38  ;;  %2089 = vmatmul.bf16.vlgmr.msrb.gmra.mxu0 %v2039_v39 }
 0x7a9   :  { %2270 = vmatpush.bf16.msra.mxu1 %v4093_v59  ;;  %2283 = vmatpush.bf16.msra.mxu2 %v4095_v31 }
 0x7aa   :  { %2296 = vmatpush.bf16.msra.mxu3 %v4097_v32  ;;  %2309 = vmatpush.bf16.msrb.mxu0 %v4100_v37 }
 0x7ad   :  { %2271 = vmatpush.bf16.msra.mxu1 %v4104_v42  ;;  %2284 = vmatpush.bf16.msra.mxu2 %v4106_v43 }
 0x7ae   :  { %2297 = vmatpush.bf16.msra.mxu3 %v4109_v46  ;;  %2310 = vmatpush.bf16.msrb.mxu0 %v4111_v48 }
 0x7b1   :  { %2272 = vmatpush.bf16.msra.mxu1 %v4125_v2  ;;  %2285 = vmatpush.bf16.msra.mxu2 %v4127_v6 }
 0x7b2   :  { %2298 = vmatpush.bf16.msra.mxu3 %v4129_v7  ;;  %2311 = vmatpush.bf16.msrb.mxu0 %v4132_v12 }
 0x7b5   :  { %2273 = vmatpush.bf16.msra.mxu1 %v4136_v16  ;;  %2286 = vmatpush.bf16.msra.mxu2 %v4138_v24 }
 0x7b6   :  { %2299 = vmatpush.bf16.msra.mxu3 %v4141_v21  ;;  %2312 = vmatpush.bf16.msrb.mxu0 %v4143_v25 }
 0x7b9   :  { %2274 = vmatpush.bf16.msra.mxu1 %v4149_v27  ;;  %2287 = vmatpush.bf16.msra.mxu2 %v4151_v30 }
 0x7ba   :  { %2300 = vmatpush.bf16.msra.mxu3 %v4153_v33  ;;  %2313 = vmatpush.bf16.msrb.mxu0 %v4156_v36 }
 0x7bd   :  { %2275 = vmatpush.bf16.msra.mxu1 %v4161_v41  ;;  %2288 = vmatpush.bf16.msra.mxu2 %v4163_v47 }
 0x7be   :  { %2301 = vmatpush.bf16.msra.mxu3 %v4165_v49  ;;  %2314 = vmatpush.bf16.msrb.mxu0 %v4168_v52 }
 0x7c1   :  { %2276 = vmatpush.bf16.msra.mxu1 %v4173_v58  ;;  %2289 = vmatpush.bf16.msra.mxu2 %v4175_v0 }
 0x7c2   :  { %2302 = vmatpush.bf16.msra.mxu3 %v4177_v1  ;;  %2315 = vmatpush.bf16.msrb.mxu0 %v4180_v5 }
 0x7c5   :  { %2277 = vmatpush.bf16.msra.mxu1 %v4185_v14  ;;  %2290 = vmatpush.bf16.msra.mxu2 %v4187_v18 }
 0x7c6   :  { %2303 = vmatpush.bf16.msra.mxu3 %v4189_v20  ;;  %2316 = vmatpush.bf16.msrb.mxu0 %v4192_v26 }
 0x824   :  { %v2051_v17 = vpop.f32.mrf.mxu1 }
 0x825   :  { %v2090_v13 = vpop.f32.mrf.mxu0  ;;  %v2052_v45 = vadd.f32 %v2051_v17, %v2040_v40 }
 0x82a   :  { %v2064_v22 = vpop.f32.mrf.mxu2 }
 0x82b   :  { %v2077_v60 = vpop.f32.mrf.mxu3  ;;  %v2065_v19 = vadd.f32 %v2064_v22, %v2052_v45  ;;  %v4523_v45 = vsel %vm1923_vm7, %v4466_v56, %v4441_v34 }
 0x82c   :  { %v2078_v4 = vadd.f32 %v2077_v60, %v2041_v3  ;;  %v2053_v29 = vpop.f32.mrf.mxu1  ;;  %vm2037_vm0 = vcmp.gt.f32.partialorder %v4523_v45, 1e-10 }
 0x82d   :  { %v2092_v10 = vpop.f32.mrf.mxu0  ;;  %v2094_v35 = vmul.f32 %v2065_v19, %v4474_v61 }
 0x82e   :  { %v2091_v63 = vadd.f32 %v2090_v13, %v2078_v4 }
 0x830   :  { %v2095_v15 = vmul.f32 %v2091_v63, %v4477_v62 }
 0x832   :  { %v2066_v44 = vpop.f32.mrf.mxu2  ;;  %v2096_v8 = vadd.f32 %v2095_v15, %v2094_v35 }
 0x833   :  { %v2079_v23 = vpop.f32.mrf.mxu3 }
 0x834   :  { %2097 = vadd.xlane.f32.xlu2 %v2096_v8 }
 0x8a7   :  { %v2098_v28 = vpop.xlane.xlu2 %2097 }
 0x8a8   :  { %v2099_v50 = vadd.f32 1e-30, %v2098_v28 }
 0x8aa   :  { %3850 = vrcp.f32 %v2099_v50  ;;  %v2111_v38 = vand.u32 2147483648, %v2099_v50  ;;  %v2109_v17 = vand.u32 2147483647, %v2099_v50  ;;  %vm2105_vm13 = vweird.f32 %v2099_v50 }
 0x8ac   :  { %v2112_v13 = vor.u32 1.1754944e-38, %v2111_v38  ;;  %vm2110_vm15 = vcmp.eq.f32.partialorder %v2109_v17, 8.507059e+37 }
 0x8b0   :  { %v3851_v57 = vpop.eup %3850 }
 0x8b1   :  { %v2101_v11 = vmul.f32 %v3851_v57, %v2099_v50  ;;  %vm2106_vm12 = vweird.f32 %v3851_v57 }
 0x8b2   :  { %vm2107_vm14 = vmor %vm2105_vm13, %vm2106_vm12 }
 0x8b3   :  { %v2102_v54 = vsub.f32 1.0, %v2101_v11 }
 0x8b5   :  { %v2103_v39 = vmul.f32 %v3851_v57, %v2102_v54 }
 0x8b7   :  { %v2104_v40 = vadd.f32 %v3851_v57, %v2103_v39 }
 0x8b9   :  { %v2108_v22 = vsel %vm2107_vm14, %v3851_v57, %v2104_v40 }
 0x8ba   :  { %v2113_v3 = vsel %vm2110_vm15, %v2112_v13, %v2108_v22 }
 0x8bb   :  { %v2114_v60 = vmul.f32 %v2113_v3, %v4523_v45 }
 0x8bd   :  { %v2115_v4 = vsel %vm2037_vm0, %v2114_v60, 0.0 }
 0x8be   :  { %v2120_v29 = vmul.f32 %v2115_v4, %v2065_v19  ;;  %v2121_v10 = vmul.f32 %v2115_v4, %v2091_v63  ;;  %v2116_v35 = vmul.f32 %v2115_v4, %v4474_v61  ;;  %v2117_v15 = vmul.f32 %v2115_v4, %v4477_v62 }
 0x8c0   :  { %v4532_v44 = vsub.f32 %v4450_v51, %v2120_v29  ;;  %v4535_v34 = vsub.f32 %v4453_v9, %v2121_v10  ;;  %v4538_v56 = vadd.f32 %v2116_v35, %v4456_v55  ;;  %v4541_v8 = vadd.f32 %v2117_v15, %v4459_v53 }
 0x8c1   :  { %v2129_v51 = vadd.f32 1e-30, %v4523_v45 }
 0x8c2   :  { %v2124_v19 = vmul.f32 %v4532_v44, %v4532_v44  ;;  %v2125_v63 = vmul.f32 %v4535_v34, %v4535_v34 }
 0x8c3   :  { %3852 = vrcp.f32 %v2129_v51  ;;  %v2141_v11 = vand.u32 2147483648, %v2129_v51  ;;  %vm2135_vm2 = vweird.f32 %v2129_v51  ;;  %v2139_v53 = vand.u32 2147483647, %v2129_v51 }
 0x8c4   :  { %v2126_v23 = vadd.f32 %v2125_v63, %v2124_v19 }
 0x8c5   :  { %v2142_v38 = vor.u32 1.1754944e-38, %v2141_v11  ;;  %vm2140_vm4 = vcmp.eq.f32.partialorder %v2139_v53, 8.507059e+37 }
 0x8c6   :  { %2127 = vadd.xlane.f32.xlu0 %v2126_v23 }
 0x8c9   :  { %v3853_v28 = vpop.eup %3852 }
 0x8ca   :  { %v2131_v9 = vmul.f32 %v3853_v28, %v2129_v51  ;;  %vm2136_vm1 = vweird.f32 %v3853_v28 }
 0x8cb   :  { %vm2137_vm3 = vmor %vm2135_vm2, %vm2136_vm1 }
 0x8cc   :  { %v2132_v50 = vsub.f32 1.0, %v2131_v9 }
 0x8ce   :  { %v2133_v57 = vmul.f32 %v3853_v28, %v2132_v50 }
 0x8d0   :  { %v2134_v55 = vadd.f32 %v3853_v28, %v2133_v57 }
 0x8d2   :  { %v2138_v54 = vsel %vm2137_vm3, %v3853_v28, %v2134_v55 }
 0x8d3   :  { %v2143_v39 = vsel %vm2140_vm4, %v2142_v38, %v2138_v54 }
 0x939   :  { %v4548_v17 = vpop.xlane.xlu0 %2127 }
 0x93a   :  { %v2144_v40 = vmul.f32 %v2143_v39, %v4548_v17 }
 0x93c   :  { %v2145_v13 = vsel %vm2037_vm0, %v2144_v40, 0.0 }
 0x93d   :  { %v2146_v22 = vmul.f32 %v2145_v13, %v4474_v61  ;;  %v2147_v3 = vmul.f32 %v2145_v13, %v4477_v62 }
 0x93f   :  { %v4556_v60 = vadd.f32 %v2146_v22, %v4532_v44  ;;  %v4559_v4 = vadd.f32 %v2147_v3, %v4535_v34 }
 0x941   :  { %v2152_v29 = vpack.c.bf16 %v4556_v60, %v4556_v60  ;;  %v2153_v10 = vpack.c.bf16 %v4559_v4, %v4559_v4  ;;  %v2154_v35 = vmul.f32 0.0036559876, %v4556_v60  ;;  %v2155_v63 = vmul.f32 0.0036559876, %v4559_v4 }
 0x943   :  { %2164 = vmatmul.bf16.vlgmr.msrb.gmra.mxu1 %v2152_v29  ;;  %2177 = vmatmul.bf16.vlgmr.msrb.gmra.mxu2 %v2153_v10 }
 0x944   :  { %2190 = vmatmul.bf16.vlgmr.msrb.gmra.mxu3 %v2152_v29  ;;  %2203 = vmatmul.bf16.vlgmr.msra.gmra.mxu0 %v2153_v10 }
 0x945   :  { %2384 = vmatpush.bf16.msrb.mxu1 %v4093_v59  ;;  %2397 = vmatpush.bf16.msrb.mxu2 %v4095_v31 }
 0x946   :  { %2410 = vmatpush.bf16.msrb.mxu3 %v4097_v32  ;;  %2423 = vmatpush.bf16.msra.mxu0 %v4100_v37 }
 0x949   :  { %2385 = vmatpush.bf16.msrb.mxu1 %v4104_v42  ;;  %2398 = vmatpush.bf16.msrb.mxu2 %v4106_v43 }
 0x94a   :  { %2411 = vmatpush.bf16.msrb.mxu3 %v4109_v46  ;;  %2424 = vmatpush.bf16.msra.mxu0 %v4111_v48 }
 0x94d   :  { %2386 = vmatpush.bf16.msrb.mxu1 %v4125_v2  ;;  %2399 = vmatpush.bf16.msrb.mxu2 %v4127_v6 }
 0x94e   :  { %2412 = vmatpush.bf16.msrb.mxu3 %v4129_v7  ;;  %2425 = vmatpush.bf16.msra.mxu0 %v4132_v12 }
 0x951   :  { %2387 = vmatpush.bf16.msrb.mxu1 %v4136_v16  ;;  %2400 = vmatpush.bf16.msrb.mxu2 %v4138_v24 }
 0x952   :  { %2413 = vmatpush.bf16.msrb.mxu3 %v4141_v21  ;;  %2426 = vmatpush.bf16.msra.mxu0 %v4143_v25 }
 0x955   :  { %2388 = vmatpush.bf16.msrb.mxu1 %v4149_v27  ;;  %2401 = vmatpush.bf16.msrb.mxu2 %v4151_v30 }
 0x956   :  { %2414 = vmatpush.bf16.msrb.mxu3 %v4153_v33  ;;  %2427 = vmatpush.bf16.msra.mxu0 %v4156_v36 }
 0x959   :  { %2389 = vmatpush.bf16.msrb.mxu1 %v4161_v41  ;;  %2402 = vmatpush.bf16.msrb.mxu2 %v4163_v47 }
 0x95a   :  { %2415 = vmatpush.bf16.msrb.mxu3 %v4165_v49  ;;  %2428 = vmatpush.bf16.msra.mxu0 %v4168_v52 }
 0x95d   :  { %2390 = vmatpush.bf16.msrb.mxu1 %v4173_v58  ;;  %2403 = vmatpush.bf16.msrb.mxu2 %v4175_v0 }
 0x95e   :  { %2416 = vmatpush.bf16.msrb.mxu3 %v4177_v1  ;;  %2429 = vmatpush.bf16.msra.mxu0 %v4180_v5 }
 0x961   :  { %2391 = vmatpush.bf16.msrb.mxu1 %v4185_v14  ;;  %2404 = vmatpush.bf16.msrb.mxu2 %v4187_v18 }
 0x962   :  { %2417 = vmatpush.bf16.msrb.mxu3 %v4189_v20  ;;  %2430 = vmatpush.bf16.msra.mxu0 %v4192_v26 }
 0x9c0   :  { %v2165_v61 = vpop.f32.mrf.mxu1 }
 0x9c1   :  { %v2204_v62 = vpop.f32.mrf.mxu0  ;;  %v2166_v15 = vadd.f32 %v2165_v61, %v2154_v35 }
 0x9c6   :  { %v2178_v19 = vpop.f32.mrf.mxu2 }
 0x9c7   :  { %v2191_v23 = vpop.f32.mrf.mxu3  ;;  %v2179_v51 = vadd.f32 %v2178_v19, %v2166_v15  ;;  %v4605_v15 = vsel %vm2037_vm0, %v4548_v17, %v4523_v45 }
 0x9c8   :  { %v2192_v28 = vadd.f32 %v2191_v23, %v2155_v63  ;;  %v2167_v9 = vpop.f32.mrf.mxu1  ;;  %vm2151_vm9 = vcmp.gt.f32.partialorder %v4605_v15, 1e-10 }
 0x9c9   :  { %v2206_v50 = vpop.f32.mrf.mxu0  ;;  %v2208_v55 = vmul.f32 %v2179_v51, %v4556_v60 }
 0x9ca   :  { %v2205_v57 = vadd.f32 %v2204_v62, %v2192_v28 }
 0x9cc   :  { %v2209_v11 = vmul.f32 %v2205_v57, %v4559_v4 }
 0x9ce   :  { %v2180_v53 = vpop.f32.mrf.mxu2  ;;  %v2210_v54 = vadd.f32 %v2209_v11, %v2208_v55 }
 0x9cf   :  { %v2193_v38 = vpop.f32.mrf.mxu3 }
 0x9d0   :  { %2211 = vadd.xlane.f32.xlu1 %v2210_v54 }
 0xa43   :  { %v2212_v39 = vpop.xlane.xlu1 %2211 }
 0xa44   :  { %v2213_v40 = vadd.f32 1e-30, %v2212_v39 }
 0xa46   :  { %3854 = vrcp.f32 %v2213_v40  ;;  %v2225_v29 = vand.u32 2147483648, %v2213_v40  ;;  %v2223_v61 = vand.u32 2147483647, %v2213_v40  ;;  %vm2219_vm6 = vweird.f32 %v2213_v40 }
 0xa48   :  { %v2226_v62 = vor.u32 1.1754944e-38, %v2225_v29  ;;  %vm2224_vm8 = vcmp.eq.f32.partialorder %v2223_v61, 8.507059e+37 }
 0xa4c   :  { %v3855_v13 = vpop.eup %3854 }
 0xa4d   :  { %v2215_v22 = vmul.f32 %v3855_v13, %v2213_v40  ;;  %vm2220_vm5 = vweird.f32 %v3855_v13 }
 0xa4e   :  { %vm2221_vm7 = vmor %vm2219_vm6, %vm2220_vm5 }
 0xa4f   :  { %v2216_v3 = vsub.f32 1.0, %v2215_v22 }
 0xa51   :  { %v2217_v10 = vmul.f32 %v3855_v13, %v2216_v3 }
 0xa53   :  { %v2218_v35 = vadd.f32 %v3855_v13, %v2217_v10 }
 0xa55   :  { %v2222_v19 = vsel %vm2221_vm7, %v3855_v13, %v2218_v35 }
 0xa56   :  { %v2227_v63 = vsel %vm2224_vm8, %v2226_v62, %v2222_v19 }
 0xa57   :  { %v2228_v23 = vmul.f32 %v2227_v63, %v4605_v15 }
 0xa59   :  { %v2229_v28 = vsel %vm2151_vm9, %v2228_v23, 0.0 }
 0xa5a   :  { %v2234_v9 = vmul.f32 %v2229_v28, %v2179_v51  ;;  %v2235_v50 = vmul.f32 %v2229_v28, %v2205_v57  ;;  %v2230_v55 = vmul.f32 %v2229_v28, %v4556_v60  ;;  %v2231_v11 = vmul.f32 %v2229_v28, %v4559_v4 }
 0xa5c   :  { %v4614_v53 = vsub.f32 %v4532_v44, %v2234_v9  ;;  %v4617_v45 = vsub.f32 %v4535_v34, %v2235_v50  ;;  %v4620_v17 = vadd.f32 %v2230_v55, %v4538_v56  ;;  %v4623_v54 = vadd.f32 %v2231_v11, %v4541_v8 }
 0xa5d   :  { %v2243_v44 = vadd.f32 1e-30, %v4605_v15 }
 0xa5e   :  { %v2238_v51 = vmul.f32 %v4614_v53, %v4614_v53  ;;  %v2239_v57 = vmul.f32 %v4617_v45, %v4617_v45 }
 0xa5f   :  { %3856 = vrcp.f32 %v2243_v44  ;;  %v2255_v22 = vand.u32 2147483648, %v2243_v44  ;;  %vm2249_vm11 = vweird.f32 %v2243_v44  ;;  %v2253_v8 = vand.u32 2147483647, %v2243_v44 }
 0xa60   :  { %v2240_v38 = vadd.f32 %v2239_v57, %v2238_v51 }
 0xa61   :  { %v2256_v29 = vor.u32 1.1754944e-38, %v2255_v22  ;;  %vm2254_vm13 = vcmp.eq.f32.partialorder %v2253_v8, 8.507059e+37 }
 0xa62   :  { %2241 = vadd.xlane.f32.xlu2 %v2240_v38 }
 0xa65   :  { %v3857_v39 = vpop.eup %3856 }
 0xa66   :  { %v2245_v34 = vmul.f32 %v3857_v39, %v2243_v44  ;;  %vm2250_vm10 = vweird.f32 %v3857_v39 }
 0xa67   :  { %vm2251_vm12 = vmor %vm2249_vm11, %vm2250_vm10 }
 0xa68   :  { %v2246_v40 = vsub.f32 1.0, %v2245_v34 }
 0xa6a   :  { %v2247_v13 = vmul.f32 %v3857_v39, %v2246_v40 }
 0xa6c   :  { %v2248_v56 = vadd.f32 %v3857_v39, %v2247_v13 }
 0xa6e   :  { %v2252_v3 = vsel %vm2251_vm12, %v3857_v39, %v2248_v56 }
 0xa6f   :  { %v2257_v10 = vsel %vm2254_vm13, %v2256_v29, %v2252_v3 }
 0xad5   :  { %v4630_v61 = vpop.xlane.xlu2 %2241 }
 0xad6   :  { %v2258_v35 = vmul.f32 %v2257_v10, %v4630_v61 }
 0xad8   :  { %v2259_v62 = vsel %vm2151_vm9, %v2258_v35, 0.0 }
 0xad9   :  { %v2260_v19 = vmul.f32 %v2259_v62, %v4556_v60  ;;  %v2261_v63 = vmul.f32 %v2259_v62, %v4559_v4 }
 0xadb   :  { %v4638_v23 = vadd.f32 %v2260_v19, %v4614_v53  ;;  %v4641_v28 = vadd.f32 %v2261_v63, %v4617_v45 }
 0xadd   :  { %v2266_v9 = vpack.c.bf16 %v4638_v23, %v4638_v23  ;;  %v2267_v50 = vpack.c.bf16 %v4641_v28, %v4641_v28  ;;  %v2268_v55 = vmul.f32 0.0036559876, %v4638_v23  ;;  %v2269_v57 = vmul.f32 0.0036559876, %v4641_v28 }
 0xadf   :  { %2278 = vmatmul.bf16.vlgmr.msra.gmra.mxu1 %v2266_v9  ;;  %2291 = vmatmul.bf16.vlgmr.msra.gmra.mxu2 %v2267_v50 }
 0xae0   :  { %2304 = vmatmul.bf16.vlgmr.msra.gmra.mxu3 %v2266_v9  ;;  %2317 = vmatmul.bf16.vlgmr.msrb.gmra.mxu0 %v2267_v50 }
 0xae1   :  { %2498 = vmatpush.bf16.msra.mxu1 %v4093_v59  ;;  %2511 = vmatpush.bf16.msra.mxu2 %v4095_v31 }
 0xae2   :  { %2524 = vmatpush.bf16.msra.mxu3 %v4097_v32  ;;  %2537 = vmatpush.bf16.msrb.mxu0 %v4100_v37 }
 0xae5   :  { %2499 = vmatpush.bf16.msra.mxu1 %v4104_v42  ;;  %2512 = vmatpush.bf16.msra.mxu2 %v4106_v43 }
 0xae6   :  { %2525 = vmatpush.bf16.msra.mxu3 %v4109_v46  ;;  %2538 = vmatpush.bf16.msrb.mxu0 %v4111_v48 }
 0xae9   :  { %2500 = vmatpush.bf16.msra.mxu1 %v4125_v2  ;;  %2513 = vmatpush.bf16.msra.mxu2 %v4127_v6 }
 0xaea   :  { %2526 = vmatpush.bf16.msra.mxu3 %v4129_v7  ;;  %2539 = vmatpush.bf16.msrb.mxu0 %v4132_v12 }
 0xaed   :  { %2501 = vmatpush.bf16.msra.mxu1 %v4136_v16  ;;  %2514 = vmatpush.bf16.msra.mxu2 %v4138_v24 }
 0xaee   :  { %2527 = vmatpush.bf16.msra.mxu3 %v4141_v21  ;;  %2540 = vmatpush.bf16.msrb.mxu0 %v4143_v25 }
 0xaf1   :  { %2502 = vmatpush.bf16.msra.mxu1 %v4149_v27  ;;  %2515 = vmatpush.bf16.msra.mxu2 %v4151_v30 }
 0xaf2   :  { %2528 = vmatpush.bf16.msra.mxu3 %v4153_v33  ;;  %2541 = vmatpush.bf16.msrb.mxu0 %v4156_v36 }
 0xaf5   :  { %2503 = vmatpush.bf16.msra.mxu1 %v4161_v41  ;;  %2516 = vmatpush.bf16.msra.mxu2 %v4163_v47 }
 0xaf6   :  { %2529 = vmatpush.bf16.msra.mxu3 %v4165_v49  ;;  %2542 = vmatpush.bf16.msrb.mxu0 %v4168_v52 }
 0xaf9   :  { %2504 = vmatpush.bf16.msra.mxu1 %v4173_v58  ;;  %2517 = vmatpush.bf16.msra.mxu2 %v4175_v0 }
 0xafa   :  { %2530 = vmatpush.bf16.msra.mxu3 %v4177_v1  ;;  %2543 = vmatpush.bf16.msrb.mxu0 %v4180_v5 }
 0xafd   :  { %2505 = vmatpush.bf16.msra.mxu1 %v4185_v14  ;;  %2518 = vmatpush.bf16.msra.mxu2 %v4187_v18 }
 0xafe   :  { %2531 = vmatpush.bf16.msra.mxu3 %v4189_v20  ;;  %2544 = vmatpush.bf16.msrb.mxu0 %v4192_v26 }
 0xb5c   :  { %v2279_v60 = vpop.f32.mrf.mxu1 }
 0xb5d   :  { %v2318_v4 = vpop.f32.mrf.mxu0  ;;  %v2280_v11 = vadd.f32 %v2279_v60, %v2268_v55 }
 0xb62   :  { %v2292_v51 = vpop.f32.mrf.mxu2 }
 0xb63   :  { %v2305_v38 = vpop.f32.mrf.mxu3  ;;  %v2293_v44 = vadd.f32 %v2292_v51, %v2280_v11  ;;  %v4687_v11 = vsel %vm2151_vm9, %v4630_v61, %v4605_v15 }
 0xb64   :  { %v2306_v39 = vadd.f32 %v2305_v38, %v2269_v57  ;;  %v2281_v34 = vpop.f32.mrf.mxu1  ;;  %vm2265_vm2 = vcmp.gt.f32.partialorder %v4687_v11, 1e-10 }
 0xb65   :  { %v2320_v40 = vpop.f32.mrf.mxu0  ;;  %v2322_v56 = vmul.f32 %v2293_v44, %v4638_v23 }
 0xb66   :  { %v2319_v13 = vadd.f32 %v2318_v4, %v2306_v39 }
 0xb68   :  { %v2323_v22 = vmul.f32 %v2319_v13, %v4641_v28 }
 0xb6a   :  { %v2294_v8 = vpop.f32.mrf.mxu2  ;;  %v2324_v3 = vadd.f32 %v2323_v22, %v2322_v56 }
 0xb6b   :  { %v2307_v29 = vpop.f32.mrf.mxu3 }
 0xb6c   :  { %2325 = vadd.xlane.f32.xlu0 %v2324_v3 }
 0xbdf   :  { %v2326_v10 = vpop.xlane.xlu0 %2325 }
 0xbe0   :  { %v2327_v35 = vadd.f32 1e-30, %v2326_v10 }
 0xbe2   :  { %3858 = vrcp.f32 %v2327_v35  ;;  %v2339_v9 = vand.u32 2147483648, %v2327_v35  ;;  %v2337_v60 = vand.u32 2147483647, %v2327_v35  ;;  %vm2333_vm15 = vweird.f32 %v2327_v35 }
 0xbe4   :  { %v2340_v4 = vor.u32 1.1754944e-38, %v2339_v9  ;;  %vm2338_vm1 = vcmp.eq.f32.partialorder %v2337_v60, 8.507059e+37 }
 0xbe8   :  { %v3859_v62 = vpop.eup %3858 }
 0xbe9   :  { %v2329_v19 = vmul.f32 %v3859_v62, %v2327_v35  ;;  %vm2334_vm14 = vweird.f32 %v3859_v62 }
 0xbea   :  { %vm2335_vm0 = vmor %vm2333_vm15, %vm2334_vm14 }
 0xbeb   :  { %v2330_v63 = vsub.f32 1.0, %v2329_v19 }
 0xbed   :  { %v2331_v50 = vmul.f32 %v3859_v62, %v2330_v63 }
 0xbef   :  { %v2332_v55 = vadd.f32 %v3859_v62, %v2331_v50 }
 0xbf1   :  { %v2336_v51 = vsel %vm2335_vm0, %v3859_v62, %v2332_v55 }
 0xbf2   :  { %v2341_v57 = vsel %vm2338_vm1, %v2340_v4, %v2336_v51 }
 0xbf3   :  { %v2342_v38 = vmul.f32 %v2341_v57, %v4687_v11 }
 0xbf5   :  { %v2343_v39 = vsel %vm2265_vm2, %v2342_v38, 0.0 }
 0xbf6   :  { %v2348_v34 = vmul.f32 %v2343_v39, %v2293_v44  ;;  %v2349_v40 = vmul.f32 %v2343_v39, %v2319_v13  ;;  %v2344_v56 = vmul.f32 %v2343_v39, %v4638_v23  ;;  %v2345_v22 = vmul.f32 %v2343_v39, %v4641_v28 }
 0xbf8   :  { %v4696_v8 = vsub.f32 %v4614_v53, %v2348_v34  ;;  %v4699_v15 = vsub.f32 %v4617_v45, %v2349_v40  ;;  %v4702_v61 = vadd.f32 %v2344_v56, %v4620_v17  ;;  %v4705_v3 = vadd.f32 %v2345_v22, %v4623_v54 }
 0xbf9   :  { %v2357_v53 = vadd.f32 1e-30, %v4687_v11 }
 0xbfa   :  { %v2352_v44 = vmul.f32 %v4696_v8, %v4696_v8  ;;  %v2353_v13 = vmul.f32 %v4699_v15, %v4699_v15 }
 0xbfb   :  { %3860 = vrcp.f32 %v2357_v53  ;;  %v2369_v19 = vand.u32 2147483648, %v2357_v53  ;;  %vm2363_vm4 = vweird.f32 %v2357_v53  ;;  %v2367_v54 = vand.u32 2147483647, %v2357_v53 }
 0xbfc   :  { %v2354_v29 = vadd.f32 %v2353_v13, %v2352_v44 }
 0xbfd   :  { %v2370_v9 = vor.u32 1.1754944e-38, %v2369_v19  ;;  %vm2368_vm6 = vcmp.eq.f32.partialorder %v2367_v54, 8.507059e+37 }
 0xbfe   :  { %2355 = vadd.xlane.f32.xlu1 %v2354_v29 }
 0xc01   :  { %v3861_v10 = vpop.eup %3860 }
 0xc02   :  { %v2359_v45 = vmul.f32 %v3861_v10, %v2357_v53  ;;  %vm2364_vm3 = vweird.f32 %v3861_v10 }
 0xc03   :  { %vm2365_vm5 = vmor %vm2363_vm4, %vm2364_vm3 }
 0xc04   :  { %v2360_v35 = vsub.f32 1.0, %v2359_v45 }
 0xc06   :  { %v2361_v62 = vmul.f32 %v3861_v10, %v2360_v35 }
 0xc08   :  { %v2362_v17 = vadd.f32 %v3861_v10, %v2361_v62 }
 0xc0a   :  { %v2366_v63 = vsel %vm2365_vm5, %v3861_v10, %v2362_v17 }
 0xc0b   :  { %v2371_v50 = vsel %vm2368_vm6, %v2370_v9, %v2366_v63 }
 0xc71   :  { %v4712_v60 = vpop.xlane.xlu1 %2355 }
 0xc72   :  { %v2372_v55 = vmul.f32 %v2371_v50, %v4712_v60 }
 0xc74   :  { %v2373_v4 = vsel %vm2265_vm2, %v2372_v55, 0.0 }
 0xc75   :  { %v2374_v51 = vmul.f32 %v2373_v4, %v4638_v23  ;;  %v2375_v57 = vmul.f32 %v2373_v4, %v4641_v28 }
 0xc77   :  { %v4720_v38 = vadd.f32 %v2374_v51, %v4696_v8  ;;  %v4723_v39 = vadd.f32 %v2375_v57, %v4699_v15 }
 0xc79   :  { %v2380_v34 = vpack.c.bf16 %v4720_v38, %v4720_v38  ;;  %v2381_v40 = vpack.c.bf16 %v4723_v39, %v4723_v39  ;;  %v2382_v56 = vmul.f32 0.0036559876, %v4720_v38  ;;  %v2383_v13 = vmul.f32 0.0036559876, %v4723_v39 }
 0xc7b   :  { %2392 = vmatmul.bf16.vlgmr.msrb.gmra.mxu1 %v2380_v34  ;;  %2405 = vmatmul.bf16.vlgmr.msrb.gmra.mxu2 %v2381_v40 }
 0xc7c   :  { %2418 = vmatmul.bf16.vlgmr.msrb.gmra.mxu3 %v2380_v34  ;;  %2431 = vmatmul.bf16.vlgmr.msra.gmra.mxu0 %v2381_v40 }
 0xc7d   :  { %2612 = vmatpush.bf16.msrb.mxu1 %v4093_v59  ;;  %2625 = vmatpush.bf16.msrb.mxu2 %v4095_v31 }
 0xc7e   :  { %2638 = vmatpush.bf16.msrb.mxu3 %v4097_v32  ;;  %2651 = vmatpush.bf16.msra.mxu0 %v4100_v37 }
 0xc81   :  { %2613 = vmatpush.bf16.msrb.mxu1 %v4104_v42  ;;  %2626 = vmatpush.bf16.msrb.mxu2 %v4106_v43 }
 0xc82   :  { %2639 = vmatpush.bf16.msrb.mxu3 %v4109_v46  ;;  %2652 = vmatpush.bf16.msra.mxu0 %v4111_v48 }
 0xc85   :  { %2614 = vmatpush.bf16.msrb.mxu1 %v4125_v2  ;;  %2627 = vmatpush.bf16.msrb.mxu2 %v4127_v6 }
 0xc86   :  { %2640 = vmatpush.bf16.msrb.mxu3 %v4129_v7  ;;  %2653 = vmatpush.bf16.msra.mxu0 %v4132_v12 }
 0xc89   :  { %2615 = vmatpush.bf16.msrb.mxu1 %v4136_v16  ;;  %2628 = vmatpush.bf16.msrb.mxu2 %v4138_v24 }
 0xc8a   :  { %2641 = vmatpush.bf16.msrb.mxu3 %v4141_v21  ;;  %2654 = vmatpush.bf16.msra.mxu0 %v4143_v25 }
 0xc8d   :  { %2616 = vmatpush.bf16.msrb.mxu1 %v4149_v27  ;;  %2629 = vmatpush.bf16.msrb.mxu2 %v4151_v30 }
 0xc8e   :  { %2642 = vmatpush.bf16.msrb.mxu3 %v4153_v33  ;;  %2655 = vmatpush.bf16.msra.mxu0 %v4156_v36 }
 0xc91   :  { %2617 = vmatpush.bf16.msrb.mxu1 %v4161_v41  ;;  %2630 = vmatpush.bf16.msrb.mxu2 %v4163_v47 }
 0xc92   :  { %2643 = vmatpush.bf16.msrb.mxu3 %v4165_v49  ;;  %2656 = vmatpush.bf16.msra.mxu0 %v4168_v52 }
 0xc95   :  { %2618 = vmatpush.bf16.msrb.mxu1 %v4173_v58  ;;  %2631 = vmatpush.bf16.msrb.mxu2 %v4175_v0 }
 0xc96   :  { %2644 = vmatpush.bf16.msrb.mxu3 %v4177_v1  ;;  %2657 = vmatpush.bf16.msra.mxu0 %v4180_v5 }
 0xc99   :  { %2619 = vmatpush.bf16.msrb.mxu1 %v4185_v14  ;;  %2632 = vmatpush.bf16.msrb.mxu2 %v4187_v18 }
 0xc9a   :  { %2645 = vmatpush.bf16.msrb.mxu3 %v4189_v20  ;;  %2658 = vmatpush.bf16.msra.mxu0 %v4192_v26 }
 0xcf8   :  { %v2393_v23 = vpop.f32.mrf.mxu1 }
 0xcf9   :  { %v2432_v28 = vpop.f32.mrf.mxu0  ;;  %v2394_v22 = vadd.f32 %v2393_v23, %v2382_v56 }
 0xcfe   :  { %v2406_v44 = vpop.f32.mrf.mxu2 }
 0xcff   :  { %v2419_v29 = vpop.f32.mrf.mxu3  ;;  %v2407_v53 = vadd.f32 %v2406_v44, %v2394_v22  ;;  %v4769_v22 = vsel %vm2265_vm2, %v4712_v60, %v4687_v11 }
 0xd00   :  { %v2420_v10 = vadd.f32 %v2419_v29, %v2383_v13  ;;  %v2395_v45 = vpop.f32.mrf.mxu1  ;;  %vm2379_vm11 = vcmp.gt.f32.partialorder %v4769_v22, 1e-10 }
 0xd01   :  { %v2434_v35 = vpop.f32.mrf.mxu0  ;;  %v2436_v17 = vmul.f32 %v2407_v53, %v4720_v38 }
 0xd02   :  { %v2433_v62 = vadd.f32 %v2432_v28, %v2420_v10 }
 0xd04   :  { %v2437_v19 = vmul.f32 %v2433_v62, %v4723_v39 }
 0xd06   :  { %v2408_v54 = vpop.f32.mrf.mxu2  ;;  %v2438_v63 = vadd.f32 %v2437_v19, %v2436_v17 }
 0xd07   :  { %v2421_v9 = vpop.f32.mrf.mxu3 }
 0xd08   :  { %2439 = vadd.xlane.f32.xlu2 %v2438_v63 }
 0xd7b   :  { %v2440_v50 = vpop.xlane.xlu2 %2439 }
 0xd7c   :  { %v2441_v55 = vadd.f32 1e-30, %v2440_v50 }
 0xd7e   :  { %3862 = vrcp.f32 %v2441_v55  ;;  %v2453_v34 = vand.u32 2147483648, %v2441_v55  ;;  %v2451_v23 = vand.u32 2147483647, %v2441_v55  ;;  %vm2447_vm8 = vweird.f32 %v2441_v55 }
 0xd80   :  { %v2454_v28 = vor.u32 1.1754944e-38, %v2453_v34  ;;  %vm2452_vm10 = vcmp.eq.f32.partialorder %v2451_v23, 8.507059e+37 }
 0xd84   :  { %v3863_v4 = vpop.eup %3862 }
 0xd85   :  { %v2443_v51 = vmul.f32 %v3863_v4, %v2441_v55  ;;  %vm2448_vm7 = vweird.f32 %v3863_v4 }
 0xd86   :  { %vm2449_vm9 = vmor %vm2447_vm8, %vm2448_vm7 }
 0xd87   :  { %v2444_v57 = vsub.f32 1.0, %v2443_v51 }
 0xd89   :  { %v2445_v40 = vmul.f32 %v3863_v4, %v2444_v57 }
 0xd8b   :  { %v2446_v56 = vadd.f32 %v3863_v4, %v2445_v40 }
 0xd8d   :  { %v2450_v44 = vsel %vm2449_vm9, %v3863_v4, %v2446_v56 }
 0xd8e   :  { %v2455_v13 = vsel %vm2452_vm10, %v2454_v28, %v2450_v44 }
 0xd8f   :  { %v2456_v29 = vmul.f32 %v2455_v13, %v4769_v22 }
 0xd91   :  { %v2457_v10 = vsel %vm2379_vm11, %v2456_v29, 0.0 }
 0xd92   :  { %v2462_v45 = vmul.f32 %v2457_v10, %v2407_v53  ;;  %v2463_v35 = vmul.f32 %v2457_v10, %v2433_v62  ;;  %v2458_v17 = vmul.f32 %v2457_v10, %v4720_v38  ;;  %v2459_v19 = vmul.f32 %v2457_v10, %v4723_v39 }
 0xd94   :  { %v4778_v54 = vsub.f32 %v4696_v8, %v2462_v45  ;;  %v4781_v11 = vsub.f32 %v4699_v15, %v2463_v35  ;;  %v4784_v60 = vadd.f32 %v2458_v17, %v4702_v61  ;;  %v4787_v63 = vadd.f32 %v2459_v19, %v4705_v3 }
 0xd95   :  { %v2471_v8 = vadd.f32 1e-30, %v4769_v22 }
 0xd96   :  { %v2466_v53 = vmul.f32 %v4778_v54, %v4778_v54  ;;  %v2467_v62 = vmul.f32 %v4781_v11, %v4781_v11 }
 0xd97   :  { %3864 = vrcp.f32 %v2471_v8  ;;  %v2483_v51 = vand.u32 2147483648, %v2471_v8  ;;  %vm2477_vm13 = vweird.f32 %v2471_v8  ;;  %v2481_v3 = vand.u32 2147483647, %v2471_v8 }
 0xd98   :  { %v2468_v9 = vadd.f32 %v2467_v62, %v2466_v53 }
 0xd99   :  { %v2484_v34 = vor.u32 1.1754944e-38, %v2483_v51  ;;  %vm2482_vm15 = vcmp.eq.f32.partialorder %v2481_v3, 8.507059e+37 }
 0xd9a   :  { %2469 = vadd.xlane.f32.xlu0 %v2468_v9 }
 0xd9d   :  { %v3865_v50 = vpop.eup %3864 }
 0xd9e   :  { %v2473_v15 = vmul.f32 %v3865_v50, %v2471_v8  ;;  %vm2478_vm12 = vweird.f32 %v3865_v50 }
 0xd9f   :  { %vm2479_vm14 = vmor %vm2477_vm13, %vm2478_vm12 }
 0xda0   :  { %v2474_v55 = vsub.f32 1.0, %v2473_v15 }
 0xda2   :  { %v2475_v4 = vmul.f32 %v3865_v50, %v2474_v55 }
 0xda4   :  { %v2476_v61 = vadd.f32 %v3865_v50, %v2475_v4 }
 0xda6   :  { %v2480_v57 = vsel %vm2479_vm14, %v3865_v50, %v2476_v61 }
 0xda7   :  { %v2485_v40 = vsel %vm2482_vm15, %v2484_v34, %v2480_v57 }
 0xe0d   :  { %v4794_v23 = vpop.xlane.xlu0 %2469 }
 0xe0e   :  { %v2486_v56 = vmul.f32 %v2485_v40, %v4794_v23 }
 0xe10   :  { %v2487_v28 = vsel %vm2379_vm11, %v2486_v56, 0.0 }
 0xe11   :  { %v2488_v44 = vmul.f32 %v2487_v28, %v4720_v38  ;;  %v2489_v13 = vmul.f32 %v2487_v28, %v4723_v39 }
 0xe13   :  { %v4802_v29 = vadd.f32 %v2488_v44, %v4778_v54  ;;  %v4805_v10 = vadd.f32 %v2489_v13, %v4781_v11 }
 0xe15   :  { %v2494_v45 = vpack.c.bf16 %v4802_v29, %v4802_v29  ;;  %v2495_v35 = vpack.c.bf16 %v4805_v10, %v4805_v10 }
 0xe17   :  { %2506 = vmatmul.bf16.vlgmr.msra.gmra.mxu1 %v2494_v45  ;;  %2519 = vmatmul.bf16.vlgmr.msra.gmra.mxu2 %v2495_v35 }
 0xe18   :  { %2532 = vmatmul.bf16.vlgmr.msra.gmra.mxu3 %v2494_v45  ;;  %2545 = vmatmul.bf16.vlgmr.msrb.gmra.mxu0 %v2495_v35 }
 0xe19   :  { %2726 = vmatpush.bf16.msra.mxu1 %v4093_v59  ;;  %2739 = vmatpush.bf16.msra.mxu2 %v4095_v31 }
 0xe1a   :  { %2752 = vmatpush.bf16.msra.mxu3 %v4097_v32  ;;  %2765 = vmatpush.bf16.msrb.mxu0 %v4100_v37  ;;  %v2496_v32 = vmul.f32 0.0036559876, %v4802_v29 }
 0xe1d   :  { %2727 = vmatpush.bf16.msra.mxu1 %v4104_v42  ;;  %2740 = vmatpush.bf16.msra.mxu2 %v4106_v43  ;;  %v2497_v43 = vmul.f32 0.0036559876, %v4805_v10 }
 0xe1e   :  { %2753 = vmatpush.bf16.msra.mxu3 %v4109_v46  ;;  %2766 = vmatpush.bf16.msrb.mxu0 %v4111_v48 }
 0xe21   :  { %2728 = vmatpush.bf16.msra.mxu1 %v4125_v2  ;;  %2741 = vmatpush.bf16.msra.mxu2 %v4127_v6 }
 0xe22   :  { %2754 = vmatpush.bf16.msra.mxu3 %v4129_v7  ;;  %2767 = vmatpush.bf16.msrb.mxu0 %v4132_v12 }
 0xe25   :  { %2729 = vmatpush.bf16.msra.mxu1 %v4136_v16  ;;  %2742 = vmatpush.bf16.msra.mxu2 %v4138_v24 }
 0xe26   :  { %2755 = vmatpush.bf16.msra.mxu3 %v4141_v21  ;;  %2768 = vmatpush.bf16.msrb.mxu0 %v4143_v25 }
 0xe29   :  { %2730 = vmatpush.bf16.msra.mxu1 %v4149_v27  ;;  %2743 = vmatpush.bf16.msra.mxu2 %v4151_v30 }
 0xe2a   :  { %2756 = vmatpush.bf16.msra.mxu3 %v4153_v33  ;;  %2769 = vmatpush.bf16.msrb.mxu0 %v4156_v36 }
 0xe2d   :  { %2731 = vmatpush.bf16.msra.mxu1 %v4161_v41  ;;  %2744 = vmatpush.bf16.msra.mxu2 %v4163_v47 }
 0xe2e   :  { %2757 = vmatpush.bf16.msra.mxu3 %v4165_v49  ;;  %2770 = vmatpush.bf16.msrb.mxu0 %v4168_v52 }
 0xe31   :  { %2732 = vmatpush.bf16.msra.mxu1 %v4173_v58  ;;  %2745 = vmatpush.bf16.msra.mxu2 %v4175_v0 }
 0xe32   :  { %2758 = vmatpush.bf16.msra.mxu3 %v4177_v1  ;;  %2771 = vmatpush.bf16.msrb.mxu0 %v4180_v5  ;;  %v4851_v5 = vsel %vm2379_vm11, %v4794_v23, %v4769_v22 }
 0xe33   :  { %vm2493_vm4 = vcmp.gt.f32.partialorder %v4851_v5, 1e-10 }
 0xe35   :  { %2733 = vmatpush.bf16.msra.mxu1 %v4185_v14  ;;  %2746 = vmatpush.bf16.msra.mxu2 %v4187_v18 }
 0xe36   :  { %2759 = vmatpush.bf16.msra.mxu3 %v4189_v20  ;;  %2772 = vmatpush.bf16.msrb.mxu0 %v4192_v26 }
 0xe94   :  { %v2507_v59 = vpop.f32.mrf.mxu1 }
 0xe95   :  { %v2546_v31 = vpop.f32.mrf.mxu0  ;;  %v2508_v37 = vadd.f32 %v2507_v59, %v2496_v32 }
 0xe9a   :  { %v2520_v42 = vpop.f32.mrf.mxu2 }
 0xe9b   :  { %v2533_v46 = vpop.f32.mrf.mxu3  ;;  %v2521_v48 = vadd.f32 %v2520_v42, %v2508_v37 }
 0xe9c   :  { %v2534_v2 = vadd.f32 %v2533_v46, %v2497_v43  ;;  %v2509_v6 = vpop.f32.mrf.mxu1 }
 0xe9d   :  { %v2548_v7 = vpop.f32.mrf.mxu0  ;;  %v2550_v16 = vmul.f32 %v2521_v48, %v4802_v29 }
 0xe9e   :  { %v2547_v12 = vadd.f32 %v2546_v31, %v2534_v2 }
 0xea0   :  { %v2551_v24 = vmul.f32 %v2547_v12, %v4805_v10 }
 0xea2   :  { %v2522_v21 = vpop.f32.mrf.mxu2  ;;  %v2552_v25 = vadd.f32 %v2551_v24, %v2550_v16 }
 0xea3   :  { %v2535_v27 = vpop.f32.mrf.mxu3 }
 0xea4   :  { %2553 = vadd.xlane.f32.xlu1 %v2552_v25 }
 0xf17   :  { %v2554_v30 = vpop.xlane.xlu1 %2553 }
 0xf18   :  { %v2555_v33 = vadd.f32 1e-30, %v2554_v30 }
 0xf1a   :  { %3866 = vrcp.f32 %v2555_v33  ;;  %v2567_v49 = vand.u32 2147483648, %v2555_v33  ;;  %v2565_v58 = vand.u32 2147483647, %v2555_v33  ;;  %vm2561_vm1 = vweird.f32 %v2555_v33 }
 0xf1c   :  { %v2568_v1 = vor.u32 1.1754944e-38, %v2567_v49  ;;  %vm2566_vm3 = vcmp.eq.f32.partialorder %v2565_v58, 8.507059e+37 }
 0xf20   :  { %v3867_v36 = vpop.eup %3866 }
 0xf21   :  { %v2557_v41 = vmul.f32 %v3867_v36, %v2555_v33  ;;  %vm2562_vm0 = vweird.f32 %v3867_v36 }
 0xf22   :  { %vm2563_vm2 = vmor %vm2561_vm1, %vm2562_vm0 }
 0xf23   :  { %v2558_v47 = vsub.f32 1.0, %v2557_v41 }
 0xf25   :  { %v2559_v52 = vmul.f32 %v3867_v36, %v2558_v47 }
 0xf27   :  { %v2560_v0 = vadd.f32 %v3867_v36, %v2559_v52 }
 0xf29   :  { %v2564_v14 = vsel %vm2563_vm2, %v3867_v36, %v2560_v0 }
 0xf2a   :  { %v2569_v18 = vsel %vm2566_vm3, %v2568_v1, %v2564_v14 }
 0xf2b   :  { %v2570_v20 = vmul.f32 %v2569_v18, %v4851_v5 }
 0xf2d   :  { %v2571_v26 = vsel %vm2493_vm4, %v2570_v20, 0.0 }
 0xf2e   :  { %v2576_v38 = vmul.f32 %v2571_v26, %v2521_v48  ;;  %v2577_v39 = vmul.f32 %v2571_v26, %v2547_v12  ;;  %v2572_v17 = vmul.f32 %v2571_v26, %v4802_v29  ;;  %v2573_v19 = vmul.f32 %v2571_v26, %v4805_v10 }
 0xf30   :  { %v4860_v53 = vsub.f32 %v4778_v54, %v2576_v38  ;;  %v4863_v22 = vsub.f32 %v4781_v11, %v2577_v39  ;;  %v4866_v62 = vadd.f32 %v2572_v17, %v4784_v60  ;;  %v4869_v9 = vadd.f32 %v2573_v19, %v4787_v63 }
 0xf31   :  { %v2585_v54 = vadd.f32 1e-30, %v4851_v5 }
 0xf32   :  { %v2580_v8 = vmul.f32 %v4860_v53, %v4860_v53  ;;  %v2581_v50 = vmul.f32 %v4863_v22, %v4863_v22 }
 0xf33   :  { %3868 = vrcp.f32 %v2585_v54  ;;  %v2597_v51 = vand.u32 2147483648, %v2585_v54  ;;  %vm2591_vm6 = vweird.f32 %v2585_v54  ;;  %v2595_v63 = vand.u32 2147483647, %v2585_v54 }
 0xf34   :  { %v2582_v15 = vadd.f32 %v2581_v50, %v2580_v8 }
 0xf35   :  { %v2598_v57 = vor.u32 1.1754944e-38, %v2597_v51  ;;  %vm2596_vm8 = vcmp.eq.f32.partialorder %v2595_v63, 8.507059e+37 }
 0xf36   :  { %2583 = vadd.xlane.f32.xlu2 %v2582_v15 }
 0xf39   :  { %v3869_v55 = vpop.eup %3868 }
 0xf3a   :  { %v2587_v11 = vmul.f32 %v3869_v55, %v2585_v54  ;;  %vm2592_vm5 = vweird.f32 %v3869_v55 }
 0xf3b   :  { %vm2593_vm7 = vmor %vm2591_vm6, %vm2592_vm5 }
 0xf3c   :  { %v2588_v4 = vsub.f32 1.0, %v2587_v11 }
 0xf3e   :  { %v2589_v61 = vmul.f32 %v3869_v55, %v2588_v4 }
 0xf40   :  { %v2590_v60 = vadd.f32 %v3869_v55, %v2589_v61 }
 0xf42   :  { %v2594_v3 = vsel %vm2593_vm7, %v3869_v55, %v2590_v60 }
 0xf43   :  { %v2599_v34 = vsel %vm2596_vm8, %v2598_v57, %v2594_v3 }
 0xfa9   :  { %v2584_v40 = vpop.xlane.xlu2 %2583 }
 0xfaa   :  { %v2600_v23 = vmul.f32 %v2599_v34, %v2584_v40  ;;  %v4897_v1 = vsel %vm2493_vm4, %v2584_v40, %v4851_v5 }
 0xfab   :  { %vm2607_vm13 = vcmp.gt.f32.partialorder %v4897_v1, 1e-10  ;;  %v2699_v4 = vadd.f32 1e-30, %v4897_v1 }
 0xfac   :  { %v2601_v56 = vsel %vm2493_vm4, %v2600_v23, 0.0 }
 0xfad   :  { %v2602_v28 = vmul.f32 %v2601_v56, %v4802_v29  ;;  %v2603_v44 = vmul.f32 %v2601_v56, %v4805_v10  ;;  %vm2705_vm15 = vweird.f32 %v2699_v4 }
 0xfaf   :  { %v4881_v13 = vadd.f32 %v2602_v28, %v4860_v53  ;;  %v4884_v45 = vadd.f32 %v2603_v44, %v4863_v22 }
 0xfb1   :  { %v2608_v35 = vpack.c.bf16 %v4881_v13, %v4881_v13  ;;  %v2609_v59 = vpack.c.bf16 %v4884_v45, %v4884_v45  ;;  %v2610_v10 = vmul.f32 0.0036559876, %v4881_v13  ;;  %v2611_v42 = vmul.f32 0.0036559876, %v4884_v45 }
 0xfb3   :  { %2620 = vmatmul.bf16.vlgmr.msrb.gmra.mxu1 %v2608_v35  ;;  %2633 = vmatmul.bf16.vlgmr.msrb.gmra.mxu2 %v2609_v59 }
 0xfb4   :  { %2646 = vmatmul.bf16.vlgmr.msrb.gmra.mxu3 %v2608_v35  ;;  %2659 = vmatmul.bf16.vlgmr.msra.gmra.mxu0 %v2609_v59 }
0x1030   :  { %v2621_v31 = vpop.f32.mrf.mxu1 }
0x1031   :  { %v2660_v29 = vpop.f32.mrf.mxu0  ;;  %v2622_v32 = vadd.f32 %v2621_v31, %v2610_v10 }
0x1036   :  { %v2634_v37 = vpop.f32.mrf.mxu2 }
0x1037   :  { %v2647_v43 = vpop.f32.mrf.mxu3  ;;  %v2635_v46 = vadd.f32 %v2634_v37, %v2622_v32 }
0x1038   :  { %v2648_v48 = vadd.f32 %v2647_v43, %v2611_v42  ;;  %v2623_v2 = vpop.f32.mrf.mxu1 }
0x1039   :  { %v2662_v6 = vpop.f32.mrf.mxu0  ;;  %v2664_v12 = vmul.f32 %v2635_v46, %v4881_v13 }
0x103a   :  { %v2661_v7 = vadd.f32 %v2660_v29, %v2648_v48 }
0x103c   :  { %v2665_v16 = vmul.f32 %v2661_v7, %v4884_v45 }
0x103e   :  { %v2636_v24 = vpop.f32.mrf.mxu2  ;;  %v2666_v21 = vadd.f32 %v2665_v16, %v2664_v12 }
0x103f   :  { %v2649_v25 = vpop.f32.mrf.mxu3 }
0x1040   :  { %2667 = vadd.xlane.f32.xlu0 %v2666_v21 }
0x10b3   :  { %v2668_v27 = vpop.xlane.xlu0 %2667 }
0x10b4   :  { %v2669_v30 = vadd.f32 1e-30, %v2668_v27 }
0x10b6   :  { %3870 = vrcp.f32 %v2669_v30  ;;  %v2681_v47 = vand.u32 2147483648, %v2669_v30  ;;  %v2679_v52 = vand.u32 2147483647, %v2669_v30  ;;  %vm2675_vm10 = vweird.f32 %v2669_v30 }
0x10b7   :  { %3872 = vrcp.f32 %v2699_v4 }
0x10b8   :  { %v2682_v0 = vor.u32 1.1754944e-38, %v2681_v47  ;;  %vm2680_vm12 = vcmp.eq.f32.partialorder %v2679_v52, 8.507059e+37 }
0x10bc   :  { %v3871_v33 = vpop.eup %3870 }
0x10bd   :  { %v2671_v36 = vmul.f32 %v3871_v33, %v2669_v30  ;;  %vm2676_vm9 = vweird.f32 %v3871_v33  ;;  %v3873_v61 = vpop.eup %3872 }
0x10be   :  { %vm2677_vm11 = vmor %vm2675_vm10, %vm2676_vm9  ;;  %v2701_v60 = vmul.f32 %v3873_v61, %v2699_v4  ;;  %vm2706_vm14 = vweird.f32 %v3873_v61 }
0x10bf   :  { %v2672_v41 = vsub.f32 1.0, %v2671_v36  ;;  %vm2707_vm0 = vmor %vm2705_vm15, %vm2706_vm14 }
0x10c0   :  { %v2702_v51 = vsub.f32 1.0, %v2701_v60 }
0x10c1   :  { %v2673_v49 = vmul.f32 %v3871_v33, %v2672_v41 }
0x10c2   :  { %v2703_v63 = vmul.f32 %v3873_v61, %v2702_v51 }
0x10c3   :  { %v2674_v58 = vadd.f32 %v3871_v33, %v2673_v49 }
0x10c5   :  { %v2678_v14 = vsel %vm2677_vm11, %v3871_v33, %v2674_v58 }
0x10c6   :  { %v2683_v18 = vsel %vm2680_vm12, %v2682_v0, %v2678_v14 }
0x10c7   :  { %v2684_v20 = vmul.f32 %v2683_v18, %v4897_v1 }
0x10c9   :  { %v2685_v26 = vsel %vm2607_vm13, %v2684_v20, 0.0 }
0x10ca   :  { %v2690_v38 = vmul.f32 %v2685_v26, %v2635_v46  ;;  %v2691_v39 = vmul.f32 %v2685_v26, %v2661_v7  ;;  %v2686_v17 = vmul.f32 %v2685_v26, %v4881_v13  ;;  %v2687_v19 = vmul.f32 %v2685_v26, %v4884_v45 }
0x10cc   :  { %v2692_v8 = vsub.f32 %v4860_v53, %v2690_v38  ;;  %v2693_v5 = vsub.f32 %v4863_v22, %v2691_v39  ;;  %v4908_v50 = vadd.f32 %v2686_v17, %v4866_v62  ;;  %v4911_v15 = vadd.f32 %v2687_v19, %v4869_v9 }
0x10cd   :  { %v2704_v53 = vadd.f32 %v3873_v61, %v2703_v63  ;;  %v2711_v22 = vand.u32 2147483648, %v2699_v4  ;;  %v2709_v62 = vand.u32 2147483647, %v2699_v4 }
0x10ce   :  { %v2694_v54 = vmul.f32 %v2692_v8, %v2692_v8  ;;  %v2695_v55 = vmul.f32 %v2693_v5, %v2693_v5 }
0x10cf   :  { %v2708_v3 = vsel %vm2707_vm0, %v3873_v61, %v2704_v53  ;;  %v2712_v9 = vor.u32 1.1754944e-38, %v2711_v22  ;;  %vm2710_vm1 = vcmp.eq.f32.partialorder %v2709_v62, 8.507059e+37 }
0x10d0   :  { %v2696_v11 = vadd.f32 %v2695_v55, %v2694_v54 }
0x10d1   :  { %v2713_v57 = vsel %vm2710_vm1, %v2712_v9, %v2708_v3 }
0x10d2   :  { %2697 = vadd.xlane.f32.xlu1 %v2696_v11 }
0x1145   :  { %v2698_v34 = vpop.xlane.xlu1 %2697 }
0x1146   :  { %v2714_v40 = vmul.f32 %v2713_v57, %v2698_v34  ;;  %v2720_v0 = vsel %vm2607_vm13, %v2698_v34, %v4897_v1 }
0x1147   :  { %vm2721_vm6 = vcmp.gt.f32.partialorder %v2720_v0, 1e-10 }
0x1148   :  { %v2715_v23 = vsel %vm2607_vm13, %v2714_v40, 0.0 }
0x1149   :  { %v2716_v56 = vmul.f32 %v2715_v23, %v4881_v13  ;;  %v2717_v28 = vmul.f32 %v2715_v23, %v4884_v45 }
0x114b   :  { %v2718_v44 = vadd.f32 %v2716_v56, %v2692_v8  ;;  %v2719_v35 = vadd.f32 %v2717_v28, %v2693_v5 }
0x114d   :  { %v2722_v59 = vpack.c.bf16 %v2718_v44, %v2718_v44  ;;  %v2723_v31 = vpack.c.bf16 %v2719_v35, %v2719_v35  ;;  %v2724_v32 = vmul.f32 0.0036559876, %v2718_v44  ;;  %v2725_v43 = vmul.f32 0.0036559876, %v2719_v35 }
0x114f   :  { %2734 = vmatmul.bf16.vlgmr.msra.gmra.mxu1 %v2722_v59  ;;  %2747 = vmatmul.bf16.vlgmr.msra.gmra.mxu2 %v2723_v31 }
0x1150   :  { %2760 = vmatmul.bf16.vlgmr.msra.gmra.mxu3 %v2722_v59  ;;  %2773 = vmatmul.bf16.vlgmr.msrb.gmra.mxu0 %v2723_v31 }
0x11cc   :  { %v2735_v29 = vpop.f32.mrf.mxu1 }
0x11cd   :  { %v2774_v10 = vpop.f32.mrf.mxu0  ;;  %v2736_v37 = vadd.f32 %v2735_v29, %v2724_v32 }
0x11d2   :  { %v2748_v42 = vpop.f32.mrf.mxu2 }
0x11d3   :  { %v2761_v46 = vpop.f32.mrf.mxu3  ;;  %v2749_v48 = vadd.f32 %v2748_v42, %v2736_v37 }
0x11d4   :  { %v2762_v2 = vadd.f32 %v2761_v46, %v2725_v43  ;;  %v2737_v13 = vpop.f32.mrf.mxu1 }
0x11d5   :  { %v2776_v6 = vpop.f32.mrf.mxu0  ;;  %v2778_v7 = vmul.f32 %v2749_v48, %v2718_v44 }
0x11d6   :  { %v2775_v45 = vadd.f32 %v2774_v10, %v2762_v2 }
0x11d8   :  { %v2779_v12 = vmul.f32 %v2775_v45, %v2719_v35 }
0x11da   :  { %v2750_v16 = vpop.f32.mrf.mxu2  ;;  %v2780_v24 = vadd.f32 %v2779_v12, %v2778_v7 }
0x11db   :  { %v2763_v21 = vpop.f32.mrf.mxu3 }
0x11dc   :  { %2781 = vadd.xlane.f32.xlu2 %v2780_v24 }
0x124f   :  { %v2782_v25 = vpop.xlane.xlu2 %2781 }
0x1250   :  { %v2783_v27 = vadd.f32 1e-30, %v2782_v25 }
0x1252   :  { %3874 = vrcp.f32 %v2783_v27  ;;  %v2795_v41 = vand.u32 2147483648, %v2783_v27  ;;  %v2793_v49 = vand.u32 2147483647, %v2783_v27  ;;  %vm2789_vm3 = vweird.f32 %v2783_v27 }
0x1254   :  { %v2796_v58 = vor.u32 1.1754944e-38, %v2795_v41  ;;  %vm2794_vm5 = vcmp.eq.f32.partialorder %v2793_v49, 8.507059e+37 }
0x1258   :  { %v3875_v30 = vpop.eup %3874 }
0x1259   :  { %v2785_v33 = vmul.f32 %v3875_v30, %v2783_v27  ;;  %vm2790_vm2 = vweird.f32 %v3875_v30 }
0x125a   :  { %vm2791_vm4 = vmor %vm2789_vm3, %vm2790_vm2 }
0x125b   :  { %v2786_v36 = vsub.f32 1.0, %v2785_v33 }
0x125d   :  { %v2787_v47 = vmul.f32 %v3875_v30, %v2786_v36 }
0x125f   :  { %v2788_v52 = vadd.f32 %v3875_v30, %v2787_v47 }
0x1261   :  { %v2792_v14 = vsel %vm2791_vm4, %v3875_v30, %v2788_v52 }
0x1262   :  { %v2797_v18 = vsel %vm2794_vm5, %v2796_v58, %v2792_v14 }
0x1263   :  { %v2798_v20 = vmul.f32 %v2797_v18, %v2720_v0 }
0x1265   :  { %v2799_v26 = vsel %vm2721_vm6, %v2798_v20, 0.0 }
0x1266   :  { %v2800_v38 = vmul.f32 %v2799_v26, %v2718_v44  ;;  %v2801_v39 = vmul.f32 %v2799_v26, %v2719_v35 }
0x1268   :  { %v2802_v17 = vadd.f32 %v2800_v38, %v4908_v50  ;;  %v2803_v19 = vadd.f32 %v2801_v39, %v4911_v15 }
0x126a   :  { %2804 = vst [vmem:[#allocation10] sm:$0xff] %v2802_v17 }
0x126b   :  { %2805 = vst [vmem:[#allocation10 + $0x8] sm:$0xff] %v2803_v19 }
0x126c   :  { %2816 = dma.vmem_to_hbm [thread:$0]  %s2812_s3, 256, %s2814_s13, [#allocation4]  }
0x126d   :  { %4002 = dma.done.wait [#allocation4], 256  }
0x126e   :  { %4003 = vsyncadd [#allocation4], 4294967040 }
0x126f   :  { %2821 = vsyncpa [#allocation3], 1 }
0x1270   :  { %2822 = vsyncpa [#allocation6], 1 }
0x1271   :  { %2823 = vsyncpa [#allocation9], 1 }
0x1272   :  { %2824 = vsyncpa [#allocation4], 1 }

</bundles_post_ra>
